<compile_context>
chip_gen: v6e
topology: v6e:2x2x1
jax: 0.10.0
libtpu: 0.0.40
codegen_flags: <defaults>
</compile_context>

<pallas_src>
import functools

import jax
import jax.numpy as jnp
import numpy as np
from jax.experimental import pallas as pl
from jax.experimental.pallas import tpu as pltpu


# ---------------------------------------------------------------------------
# One-time parameter preparation (outside the hot path)
# ---------------------------------------------------------------------------
def prepare_params(raw, heads, compute_dtype=None):
    """Prepare PyTorch-layout parameters for the fused kernel.

    * Weights stay in their (out, in) PyTorch layout -- every kernel matmul
      contracts the LAST dims of both operands, so no runtime transpose.
    * The attention scale dh**-0.5 is folded into Wq.
    * `compute_dtype` is the dtype the MXU consumes (pass jnp.bfloat16 in
      production); defaults to the dtype the weights already have.
    """
    dim = raw["wq"].shape[0]
    assert dim % heads == 0
    dh = dim // heads
    scale = float(dh) ** -0.5
    cd = compute_dtype if compute_dtype is not None else raw["wq"].dtype
    return {
        "ln_w": raw["ln_w"].reshape(1, dim).astype(jnp.float32),
        "ln_b": raw["ln_b"].reshape(1, dim).astype(jnp.float32),
        "wq": (raw["wq"] * scale).astype(cd),   # scale folded in, no per-step mul
        "wk": raw["wk"].astype(cd),
        "wv": raw["wv"].astype(cd),
        "wo": raw["wo"].astype(cd),             # (out, in) layout, no transpose
        "bo": raw["bo"].reshape(1, dim).astype(jnp.float32),
    }


# ---------------------------------------------------------------------------
# Fused kernel: one (batch, q-tile) per grid step, all heads inside the step
# ---------------------------------------------------------------------------
def _decoder_prenorm_kernel(xq_ref, xk_ref, xv_ref, m_ref,
                            g_ref, beta_ref,
                            wq_ref, wk_ref, wv_ref, wo_ref, bo_ref,
                            o_ref,
                            k_s, v_s, ctx_s,
                            *, heads, eps):
    dim = xq_ref.shape[2]
    dh = dim // heads
    w_dtype = wq_ref.dtype                      # MXU operand dtype (bf16 in prod)

    gamma = g_ref[...].astype(jnp.float32)      # (1, dim)
    beta = beta_ref[...].astype(jnp.float32)    # (1, dim)

    def layernorm(x):
        # Single-pass statistics: var = E[x^2] - mu^2, all in f32.
        x = x.astype(jnp.float32)
        mu = jnp.mean(x, axis=-1, keepdims=True)
        ms = jnp.mean(x * x, axis=-1, keepdims=True)
        inv = jax.lax.rsqrt(ms - mu * mu + eps)
        return (x - mu) * inv * gamma + beta

    def dot_t(a, b):
        # Contract the last dim of both operands: a @ b.T without a transpose.
        return jax.lax.dot_general(
            a, b, (((1,), (1,)), ((), ())), preferred_element_type=jnp.float32)

    # Full-width K/V projections for this batch element, computed once at the
    # first q-tile and cached in VMEM scratch for the remaining q-tiles.
    @pl.when(pl.program_id(1) == 0)
    def _():
        ln_k = layernorm(xk_ref[0]).astype(w_dtype)
        ln_v = layernorm(xv_ref[0]).astype(w_dtype)
        k_s[...] = dot_t(ln_k, wk_ref[...]).astype(k_s.dtype)   # (N, dim)
        v_s[...] = dot_t(ln_v, wv_ref[...]).astype(v_s.dtype)   # (N, dim)

    # Full-width Q projection for this q-tile (scale already folded into Wq).
    ln_q = layernorm(xq_ref[0]).astype(w_dtype)
    q = dot_t(ln_q, wq_ref[...]).astype(w_dtype)                # (tq, dim)

    k = k_s[...]                                                # (N, dim)
    v = v_s[...]
    masked = m_ref[0] != 0                                      # (tq, N) bool

    # Static unroll over heads: per-head work uses static lane slices of the
    # full-width q/k/v (dynamic lane offsets would not be static-slice
    # friendly), and each head's result is stored straight into the context
    # scratch so nothing stays live across heads.
    for h in range(heads):
        sl = slice(h * dh, (h + 1) * dh)
        dots = dot_t(q[:, sl], k[:, sl])                        # (tq, N) f32
        dots = jnp.where(masked, jnp.float32(-1.0e9), dots)
        m_max = jnp.max(dots, axis=-1, keepdims=True)
        e = jnp.exp(dots - m_max)                               # un-normalized
        denom = jnp.sum(e, axis=-1, keepdims=True)              # (tq, 1)
        out_h = jnp.dot(e.astype(w_dtype), v[:, sl],
                        preferred_element_type=jnp.float32)     # (tq, dh)
        # Normalization deferred to the small (tq, dh) output, EUP reciprocal.
        out_h = out_h * pl.reciprocal(denom, approx=True)
        ctx_s[:, sl] = out_h.astype(ctx_s.dtype)

    # One full-depth (K = dim) output projection + bias; lane-dense store.
    y = dot_t(ctx_s[...], wo_ref[...]) + bo_ref[...].astype(jnp.float32)
    o_ref[0] = y.astype(o_ref.dtype)


# ---------------------------------------------------------------------------
# Wrapper
# ---------------------------------------------------------------------------
def decoder_prenorm(xq, xk, xv, mask, params, heads, *, q_tile=None):
    B, N, dim = xq.shape
    assert dim % heads == 0
    tq = q_tile if q_tile is not None else min(N, 128)
    assert N % tq == 0, "sequence length must be divisible by the q tile"
    n_q = N // tq
    compute_dtype = params["wq"].dtype

    kernel = functools.partial(_decoder_prenorm_kernel, heads=heads, eps=1e-5)

    def build(weight_pipeline_mode):
        def const_spec(shape):
            # Grid-invariant operand: same block for every grid step.
            if weight_pipeline_mode is None:
                return pl.BlockSpec(shape, lambda b, qi: (0,) * len(shape))
            return pl.BlockSpec(shape, lambda b, qi: (0,) * len(shape),
                                pipeline_mode=weight_pipeline_mode)

        return pl.pallas_call(
            kernel,
            out_shape=jax.ShapeDtypeStruct((B, N, dim), xq.dtype),
            grid=(B, n_q),
            in_specs=[
                pl.BlockSpec((1, tq, dim), lambda b, qi: (b, qi, 0)),   # xq tile
                pl.BlockSpec((1, N, dim), lambda b, qi: (b, 0, 0)),     # xk (full)
                pl.BlockSpec((1, N, dim), lambda b, qi: (b, 0, 0)),     # xv (full)
                pl.BlockSpec((1, tq, N), lambda b, qi: (b, qi, 0)),     # mask int8
                const_spec((1, dim)),                                   # LN gamma
                const_spec((1, dim)),                                   # LN beta
                const_spec((dim, dim)),                                 # Wq (scaled)
                const_spec((dim, dim)),                                 # Wk
                const_spec((dim, dim)),                                 # Wv
                const_spec((dim, dim)),                                 # Wo
                const_spec((1, dim)),                                   # bo
            ],
            out_specs=pl.BlockSpec((1, tq, dim), lambda b, qi: (b, qi, 0)),
            scratch_shapes=[
                pltpu.VMEM((N, dim), compute_dtype),    # cached K projection
                pltpu.VMEM((N, dim), compute_dtype),    # cached V projection
                pltpu.VMEM((tq, dim), compute_dtype),   # head-concat context
            ],
            compiler_params=pltpu.CompilerParams(
                dimension_semantics=("parallel", "arbitrary"),
                vmem_limit_bytes=48 * 1024 * 1024),     # headroom < v7x 64 MiB
        )

    args = (xq, xk, xv, mask,
            params["ln_w"], params["ln_b"],
            params["wq"], params["wk"], params["wv"], params["wo"],
            params["bo"])

    # Prefer single-buffering the grid-invariant operands (weights, LN affine,
    # bias): their index map is constant, so double-buffering only wastes VMEM.
    # Fall back to default buffering if this jax build rejects pipeline_mode
    # on the top-level pallas_call pipeline.
    try:
        return jax.block_until_ready(build(pl.Buffered(1))(*args))
    except Exception:
        return jax.block_until_ready(build(None)(*args))


# ---------------------------------------------------------------------------
# Pure-JAX reference (takes raw PyTorch-layout parameters)
# ---------------------------------------------------------------------------
def decoder_prenorm_ref(xq, xk, xv, mask, raw, heads):
    B, N, dim = xq.shape
    dh = dim // heads
    scale = float(dh) ** -0.5

    def ln(x):
        mu = jnp.mean(x, axis=-1, keepdims=True)
        var = jnp.mean(jnp.square(x - mu), axis=-1, keepdims=True)
        return (x - mu) / jnp.sqrt(var + 1e-5) * raw["ln_w"] + raw["ln_b"]

    nq, nk, nv = ln(xq), ln(xk), ln(xv)
    q = (nq @ raw["wq"].T).reshape(B, N, heads, dh).transpose(0, 2, 1, 3)
    k = (nk @ raw["wk"].T).reshape(B, N, heads, dh).transpose(0, 2, 1, 3)
    v = (nv @ raw["wv"].T).reshape(B, N, heads, dh).transpose(0, 2, 1, 3)
    dots = jnp.einsum("bhid,bhjd->bhij", q, k) * scale
    dots = jnp.where(mask[:, None, :, :] != 0, -1.0e9, dots)
    attn = jax.nn.softmax(dots, axis=-1)
    out = jnp.einsum("bhij,bhjd->bhid", attn, v)
    out = out.transpose(0, 2, 1, 3).reshape(B, N, dim)
    return out @ raw["wo"].T + raw["bo"]


if __name__ == "__main__":
    B, N, dim, heads, q_tile = 2, 16, 32, 4, 8   # dh = 8; grid = (2, 2)

    key = jax.random.PRNGKey(0)
    ks = jax.random.split(key, 11)

    xq = jax.random.normal(ks[0], (B, N, dim), dtype=jnp.float32)
    xk = jax.random.normal(ks[1], (B, N, dim), dtype=jnp.float32)
    xv = jax.random.normal(ks[2], (B, N, dim), dtype=jnp.float32)
    # nonzero => attention disallowed (matches masked_fill_(mask.bool(), -1e9));
    # int8 keeps the O(B*N^2) mask stream small.
    mask = (jax.random.uniform(ks[3], (B, N, N)) < 0.3).astype(jnp.int8)

    raw_params = {
        "ln_w": 1.0 + 0.1 * jax.random.normal(ks[4], (dim,), jnp.float32),
        "ln_b": 0.1 * jax.random.normal(ks[5], (dim,), jnp.float32),
        "wq": 0.1 * jax.random.normal(ks[6], (dim, dim), jnp.float32),
        "wk": 0.1 * jax.random.normal(ks[7], (dim, dim), jnp.float32),
        "wv": 0.1 * jax.random.normal(ks[8], (dim, dim), jnp.float32),
        "wo": 0.1 * jax.random.normal(ks[9], (dim, dim), jnp.float32),
        "bo": 0.1 * jax.random.normal(ks[10], (dim,), jnp.float32),
    }
    # float32 params here so the numerical check is tight; pass
    # compute_dtype=jnp.bfloat16 in production for full-rate MXU operands.
    params = prepare_params(raw_params, heads)

    out = jax.block_until_ready(
        decoder_prenorm(xq, xk, xv, mask, params, heads, q_tile=q_tile))
    ref = jax.block_until_ready(
        decoder_prenorm_ref(xq, xk, xv, mask, raw_params, heads))

    # pl.reciprocal(approx=True) contributes ~1e-3-level relative error; the
    # tolerance absorbs it (use approx=False if exact parity is required).
    np.testing.assert_allclose(np.asarray(out), np.asarray(ref),
                               rtol=3e-3, atol=3e-3)
    print("KERNEL_OK")
</pallas_src>

<mosaic_0001>
module attributes {stable_mosaic.version = 11 : i64} {
  func.func @_decoder_prenorm_kernel(%arg0: i32, %arg1: i32, %arg2: memref<1x8x32xf32, #tpu.memory_space<vmem>>, %arg3: memref<1x16x32xf32, #tpu.memory_space<vmem>>, %arg4: memref<1x16x32xf32, #tpu.memory_space<vmem>>, %arg5: memref<1x8x16xi8, #tpu.memory_space<vmem>>, %arg6: memref<1x32xf32, #tpu.memory_space<vmem>>, %arg7: memref<1x32xf32, #tpu.memory_space<vmem>>, %arg8: memref<32x32xf32, #tpu.memory_space<vmem>>, %arg9: memref<32x32xf32, #tpu.memory_space<vmem>>, %arg10: memref<32x32xf32, #tpu.memory_space<vmem>>, %arg11: memref<32x32xf32, #tpu.memory_space<vmem>>, %arg12: memref<1x32xf32, #tpu.memory_space<vmem>>, %arg13: memref<1x8x32xf32, #tpu.memory_space<vmem>>, %arg14: memref<16x32xf32, #tpu.memory_space<vmem>>, %arg15: memref<16x32xf32, #tpu.memory_space<vmem>>, %arg16: memref<8x32xf32, #tpu.memory_space<vmem>>) attributes {dimension_semantics = [#tpu.dimension_semantics<parallel>, #tpu.dimension_semantics<arbitrary>], iteration_bounds = array<i64: 2, 2>, scalar_prefetch = 0 : i64, scratch_operands = 3 : i64, tpu.core_type = #tpu.core_type<tc>, window_params = [{transform_indices = @transform_0, window_bounds = array<i64: 1, 8, 32>}, {transform_indices = @transform_1, window_bounds = array<i64: 1, 16, 32>}, {transform_indices = @transform_2, window_bounds = array<i64: 1, 16, 32>}, {transform_indices = @transform_3, window_bounds = array<i64: 1, 8, 16>}, {pipeline_mode = #tpu.pipeline_mode<synchronous>, transform_indices = @transform_4, window_bounds = array<i64: 1, 32>}, {pipeline_mode = #tpu.pipeline_mode<synchronous>, transform_indices = @transform_5, window_bounds = array<i64: 1, 32>}, {pipeline_mode = #tpu.pipeline_mode<synchronous>, transform_indices = @transform_6, window_bounds = array<i64: 32, 32>}, {pipeline_mode = #tpu.pipeline_mode<synchronous>, transform_indices = @transform_7, window_bounds = array<i64: 32, 32>}, {pipeline_mode = #tpu.pipeline_mode<synchronous>, transform_indices = @transform_8, window_bounds = array<i64: 32, 32>}, {pipeline_mode = #tpu.pipeline_mode<synchronous>, transform_indices = @transform_9, window_bounds = array<i64: 32, 32>}, {pipeline_mode = #tpu.pipeline_mode<synchronous>, transform_indices = @transform_10, window_bounds = array<i64: 1, 32>}, {transform_indices = @transform_11, window_bounds = array<i64: 1, 8, 32>}]} {
    %c0 = arith.constant 0 : index
    %c0_0 = arith.constant 0 : index
    %0 = vector.load %arg6[%c0, %c0_0] : memref<1x32xf32, #tpu.memory_space<vmem>>, vector<1x32xf32>
    %c0_1 = arith.constant 0 : index
    %c0_2 = arith.constant 0 : index
    %1 = vector.load %arg7[%c0_1, %c0_2] : memref<1x32xf32, #tpu.memory_space<vmem>>, vector<1x32xf32>
    %c0_i32 = arith.constant 0 : i32
    %2 = arith.cmpi eq, %arg1, %c0_i32 : i32
    %3 = arith.extui %2 : i1 to i32
    %c0_i32_3 = arith.constant 0 : i32
    %4 = arith.cmpi ne, %3, %c0_i32_3 : i32
    scf.if %4 {
      %c0_56 = arith.constant 0 : index
      %c0_57 = arith.constant 0 : index
      %c0_58 = arith.constant 0 : index
      %118 = vector.load %arg3[%c0_56, %c0_57, %c0_58] : memref<1x16x32xf32, #tpu.memory_space<vmem>>, vector<1x16x32xf32>
      %119 = vector.shape_cast %118 : vector<1x16x32xf32> to vector<16x32xf32>
      %cst_59 = arith.constant dense<0.000000e+00> : vector<16xf32>
      %120 = vector.multi_reduction <add>, %119, %cst_59 [1] : vector<16x32xf32> to vector<16xf32>
      %121 = vector.shape_cast %120 : vector<16xf32> to vector<16x1xf32>
      %cst_60 = arith.constant 3.200000e+01 : f32
      %122 = vector.broadcast %cst_60 : f32 to vector<16x1xf32>
      %123 = arith.divf %121, %122 : vector<16x1xf32>
      %124 = arith.mulf %119, %119 : vector<16x32xf32>
      %cst_61 = arith.constant dense<0.000000e+00> : vector<16xf32>
      %125 = vector.multi_reduction <add>, %124, %cst_61 [1] : vector<16x32xf32> to vector<16xf32>
      %126 = vector.shape_cast %125 : vector<16xf32> to vector<16x1xf32>
      %cst_62 = arith.constant 3.200000e+01 : f32
      %127 = vector.broadcast %cst_62 : f32 to vector<16x1xf32>
      %128 = arith.divf %126, %127 : vector<16x1xf32>
      %129 = arith.mulf %123, %123 : vector<16x1xf32>
      %130 = arith.subf %128, %129 : vector<16x1xf32>
      %cst_63 = arith.constant 9.99999974E-6 : f32
      %131 = vector.broadcast %cst_63 : f32 to vector<16x1xf32>
      %132 = arith.addf %130, %131 : vector<16x1xf32>
      %133 = math.rsqrt %132 : vector<16x1xf32>
      %134 = vector.broadcast %123 : vector<16x1xf32> to vector<16x32xf32>
      %135 = arith.subf %119, %134 : vector<16x32xf32>
      %136 = vector.broadcast %133 : vector<16x1xf32> to vector<16x32xf32>
      %137 = arith.mulf %135, %136 : vector<16x32xf32>
      %138 = vector.broadcast %0 : vector<1x32xf32> to vector<16x32xf32>
      %139 = arith.mulf %137, %138 : vector<16x32xf32>
      %140 = vector.broadcast %1 : vector<1x32xf32> to vector<16x32xf32>
      %141 = arith.addf %139, %140 : vector<16x32xf32>
      %c0_64 = arith.constant 0 : index
      %c0_65 = arith.constant 0 : index
      %c0_66 = arith.constant 0 : index
      %142 = vector.load %arg4[%c0_64, %c0_65, %c0_66] : memref<1x16x32xf32, #tpu.memory_space<vmem>>, vector<1x16x32xf32>
      %143 = vector.shape_cast %142 : vector<1x16x32xf32> to vector<16x32xf32>
      %cst_67 = arith.constant dense<0.000000e+00> : vector<16xf32>
      %144 = vector.multi_reduction <add>, %143, %cst_67 [1] : vector<16x32xf32> to vector<16xf32>
      %145 = vector.shape_cast %144 : vector<16xf32> to vector<16x1xf32>
      %cst_68 = arith.constant 3.200000e+01 : f32
      %146 = vector.broadcast %cst_68 : f32 to vector<16x1xf32>
      %147 = arith.divf %145, %146 : vector<16x1xf32>
      %148 = arith.mulf %143, %143 : vector<16x32xf32>
      %cst_69 = arith.constant dense<0.000000e+00> : vector<16xf32>
      %149 = vector.multi_reduction <add>, %148, %cst_69 [1] : vector<16x32xf32> to vector<16xf32>
      %150 = vector.shape_cast %149 : vector<16xf32> to vector<16x1xf32>
      %cst_70 = arith.constant 3.200000e+01 : f32
      %151 = vector.broadcast %cst_70 : f32 to vector<16x1xf32>
      %152 = arith.divf %150, %151 : vector<16x1xf32>
      %153 = arith.mulf %147, %147 : vector<16x1xf32>
      %154 = arith.subf %152, %153 : vector<16x1xf32>
      %cst_71 = arith.constant 9.99999974E-6 : f32
      %155 = vector.broadcast %cst_71 : f32 to vector<16x1xf32>
      %156 = arith.addf %154, %155 : vector<16x1xf32>
      %157 = math.rsqrt %156 : vector<16x1xf32>
      %158 = vector.broadcast %147 : vector<16x1xf32> to vector<16x32xf32>
      %159 = arith.subf %143, %158 : vector<16x32xf32>
      %160 = vector.broadcast %157 : vector<16x1xf32> to vector<16x32xf32>
      %161 = arith.mulf %159, %160 : vector<16x32xf32>
      %162 = vector.broadcast %0 : vector<1x32xf32> to vector<16x32xf32>
      %163 = arith.mulf %161, %162 : vector<16x32xf32>
      %164 = vector.broadcast %1 : vector<1x32xf32> to vector<16x32xf32>
      %165 = arith.addf %163, %164 : vector<16x32xf32>
      %c0_72 = arith.constant 0 : index
      %c0_73 = arith.constant 0 : index
      %166 = vector.load %arg9[%c0_72, %c0_73] : memref<32x32xf32, #tpu.memory_space<vmem>>, vector<32x32xf32>
      %cst_74 = arith.constant dense<0.000000e+00> : vector<16x32xf32>
      %167 = tpu.matmul %141, %166, %cst_74 {dimension_numbers = #tpu.dot_dimension_numbers<[1], [1], [0], [0], [0, 0, 1, 0], [], []>} : vector<16x32xf32>, vector<32x32xf32>, vector<16x32xf32> -> vector<16x32xf32>
      %c0_75 = arith.constant 0 : index
      %c0_76 = arith.constant 0 : index
      %168 = vector.load %arg14[%c0_75, %c0_76] : memref<16x32xf32, #tpu.memory_space<vmem>>, vector<16x32xf32>
      tpu.vector_store %arg14[%c0_75, %c0_76], %167 {strides = array<i32>} : memref<16x32xf32, #tpu.memory_space<vmem>>, vector<16x32xf32>,
      %c0_77 = arith.constant 0 : index
      %c0_78 = arith.constant 0 : index
      %169 = vector.load %arg10[%c0_77, %c0_78] : memref<32x32xf32, #tpu.memory_space<vmem>>, vector<32x32xf32>
      %cst_79 = arith.constant dense<0.000000e+00> : vector<16x32xf32>
      %170 = tpu.matmul %165, %169, %cst_79 {dimension_numbers = #tpu.dot_dimension_numbers<[1], [1], [0], [0], [0, 0, 1, 0], [], []>} : vector<16x32xf32>, vector<32x32xf32>, vector<16x32xf32> -> vector<16x32xf32>
      %c0_80 = arith.constant 0 : index
      %c0_81 = arith.constant 0 : index
      %171 = vector.load %arg15[%c0_80, %c0_81] : memref<16x32xf32, #tpu.memory_space<vmem>>, vector<16x32xf32>
      tpu.vector_store %arg15[%c0_80, %c0_81], %170 {strides = array<i32>} : memref<16x32xf32, #tpu.memory_space<vmem>>, vector<16x32xf32>,
    } else {
    }
    %c0_4 = arith.constant 0 : index
    %c0_5 = arith.constant 0 : index
    %c0_6 = arith.constant 0 : index
    %5 = vector.load %arg2[%c0_4, %c0_5, %c0_6] : memref<1x8x32xf32, #tpu.memory_space<vmem>>, vector<1x8x32xf32>
    %6 = vector.shape_cast %5 : vector<1x8x32xf32> to vector<8x32xf32>
    %cst = arith.constant dense<0.000000e+00> : vector<8xf32>
    %7 = vector.multi_reduction <add>, %6, %cst [1] : vector<8x32xf32> to vector<8xf32>
    %8 = vector.shape_cast %7 : vector<8xf32> to vector<8x1xf32>
    %cst_7 = arith.constant 3.200000e+01 : f32
    %9 = vector.broadcast %cst_7 : f32 to vector<8x1xf32>
    %10 = arith.divf %8, %9 : vector<8x1xf32>
    %11 = arith.mulf %6, %6 : vector<8x32xf32>
    %cst_8 = arith.constant dense<0.000000e+00> : vector<8xf32>
    %12 = vector.multi_reduction <add>, %11, %cst_8 [1] : vector<8x32xf32> to vector<8xf32>
    %13 = vector.shape_cast %12 : vector<8xf32> to vector<8x1xf32>
    %cst_9 = arith.constant 3.200000e+01 : f32
    %14 = vector.broadcast %cst_9 : f32 to vector<8x1xf32>
    %15 = arith.divf %13, %14 : vector<8x1xf32>
    %16 = arith.mulf %10, %10 : vector<8x1xf32>
    %17 = arith.subf %15, %16 : vector<8x1xf32>
    %cst_10 = arith.constant 9.99999974E-6 : f32
    %18 = vector.broadcast %cst_10 : f32 to vector<8x1xf32>
    %19 = arith.addf %17, %18 : vector<8x1xf32>
    %20 = math.rsqrt %19 : vector<8x1xf32>
    %21 = vector.broadcast %10 : vector<8x1xf32> to vector<8x32xf32>
    %22 = arith.subf %6, %21 : vector<8x32xf32>
    %23 = vector.broadcast %20 : vector<8x1xf32> to vector<8x32xf32>
    %24 = arith.mulf %22, %23 : vector<8x32xf32>
    %25 = vector.broadcast %0 : vector<1x32xf32> to vector<8x32xf32>
    %26 = arith.mulf %24, %25 : vector<8x32xf32>
    %27 = vector.broadcast %1 : vector<1x32xf32> to vector<8x32xf32>
    %28 = arith.addf %26, %27 : vector<8x32xf32>
    %c0_11 = arith.constant 0 : index
    %c0_12 = arith.constant 0 : index
    %29 = vector.load %arg8[%c0_11, %c0_12] : memref<32x32xf32, #tpu.memory_space<vmem>>, vector<32x32xf32>
    %cst_13 = arith.constant dense<0.000000e+00> : vector<8x32xf32>
    %30 = tpu.matmul %28, %29, %cst_13 {dimension_numbers = #tpu.dot_dimension_numbers<[1], [1], [0], [0], [0, 0, 1, 0], [], []>} : vector<8x32xf32>, vector<32x32xf32>, vector<8x32xf32> -> vector<8x32xf32>
    %c0_14 = arith.constant 0 : index
    %c0_15 = arith.constant 0 : index
    %31 = vector.load %arg14[%c0_14, %c0_15] : memref<16x32xf32, #tpu.memory_space<vmem>>, vector<16x32xf32>
    %c0_16 = arith.constant 0 : index
    %c0_17 = arith.constant 0 : index
    %32 = vector.load %arg15[%c0_16, %c0_17] : memref<16x32xf32, #tpu.memory_space<vmem>>, vector<16x32xf32>
    %c0_18 = arith.constant 0 : index
    %c0_19 = arith.constant 0 : index
    %c0_20 = arith.constant 0 : index
    %33 = vector.load %arg5[%c0_18, %c0_19, %c0_20] : memref<1x8x16xi8, #tpu.memory_space<vmem>>, vector<1x8x16xi8>
    %34 = vector.shape_cast %33 : vector<1x8x16xi8> to vector<8x16xi8>
    %c0_i8 = arith.constant 0 : i8
    %35 = vector.broadcast %c0_i8 : i8 to vector<8x16xi8>
    %36 = arith.cmpi ne, %34, %35 : vector<8x16xi8>
    %37 = vector.extract_strided_slice %30 {offsets = [0, 0], sizes = [8, 8], strides = [1, 1]} : vector<8x32xf32> to vector<8x8xf32>
    %38 = vector.extract_strided_slice %31 {offsets = [0, 0], sizes = [16, 8], strides = [1, 1]} : vector<16x32xf32> to vector<16x8xf32>
    %cst_21 = arith.constant dense<0.000000e+00> : vector<8x16xf32>
    %39 = tpu.matmul %37, %38, %cst_21 {dimension_numbers = #tpu.dot_dimension_numbers<[1], [1], [0], [0], [0, 0, 1, 0], [], []>} : vector<8x8xf32>, vector<16x8xf32>, vector<8x16xf32> -> vector<8x16xf32>
    %cst_22 = arith.constant -1.000000e+09 : f32
    %40 = vector.broadcast %cst_22 : f32 to vector<8x16xf32>
    %41 = arith.select %36, %40, %39 : vector<8x16xi1>, vector<8x16xf32>
    %cst_23 = arith.constant dense<0xFF800000> : vector<8xf32>
    %42 = vector.multi_reduction <maximumf>, %41, %cst_23 [1] : vector<8x16xf32> to vector<8xf32>
    %43 = vector.shape_cast %42 : vector<8xf32> to vector<8x1xf32>
    %44 = vector.broadcast %43 : vector<8x1xf32> to vector<8x16xf32>
    %45 = arith.subf %41, %44 : vector<8x16xf32>
    %46 = math.exp %45 : vector<8x16xf32>
    %cst_24 = arith.constant dense<0.000000e+00> : vector<8xf32>
    %47 = vector.multi_reduction <add>, %46, %cst_24 [1] : vector<8x16xf32> to vector<8xf32>
    %48 = vector.shape_cast %47 : vector<8xf32> to vector<8x1xf32>
    %49 = vector.extract_strided_slice %32 {offsets = [0, 0], sizes = [16, 8], strides = [1, 1]} : vector<16x32xf32> to vector<16x8xf32>
    %cst_25 = arith.constant dense<0.000000e+00> : vector<8x8xf32>
    %50 = tpu.matmul %46, %49, %cst_25 {dimension_numbers = #tpu.dot_dimension_numbers<[1], [0], [0], [1], [0, 0, 1, 1], [], []>} : vector<8x16xf32>, vector<16x8xf32>, vector<8x8xf32> -> vector<8x8xf32>
    %51 = tpu.reciprocal %48 {approx = true} : vector<8x1xf32> -> vector<8x1xf32>
    %52 = vector.broadcast %51 : vector<8x1xf32> to vector<8x8xf32>
    %53 = arith.mulf %50, %52 : vector<8x8xf32>
    %c0_26 = arith.constant 0 : index
    %c0_27 = arith.constant 0 : index
    %54 = vector.load %arg16[%c0_26, %c0_27] : memref<8x32xf32, #tpu.memory_space<vmem>>, vector<8x8xf32>
    tpu.vector_store %arg16[%c0_26, %c0_27], %53 {strides = array<i32>} : memref<8x32xf32, #tpu.memory_space<vmem>>, vector<8x8xf32>,
    %55 = vector.extract_strided_slice %30 {offsets = [0, 8], sizes = [8, 8], strides = [1, 1]} : vector<8x32xf32> to vector<8x8xf32>
    %56 = vector.extract_strided_slice %31 {offsets = [0, 8], sizes = [16, 8], strides = [1, 1]} : vector<16x32xf32> to vector<16x8xf32>
    %cst_28 = arith.constant dense<0.000000e+00> : vector<8x16xf32>
    %57 = tpu.matmul %55, %56, %cst_28 {dimension_numbers = #tpu.dot_dimension_numbers<[1], [1], [0], [0], [0, 0, 1, 0], [], []>} : vector<8x8xf32>, vector<16x8xf32>, vector<8x16xf32> -> vector<8x16xf32>
    %cst_29 = arith.constant -1.000000e+09 : f32
    %58 = vector.broadcast %cst_29 : f32 to vector<8x16xf32>
    %59 = arith.select %36, %58, %57 : vector<8x16xi1>, vector<8x16xf32>
    %cst_30 = arith.constant dense<0xFF800000> : vector<8xf32>
    %60 = vector.multi_reduction <maximumf>, %59, %cst_30 [1] : vector<8x16xf32> to vector<8xf32>
    %61 = vector.shape_cast %60 : vector<8xf32> to vector<8x1xf32>
    %62 = vector.broadcast %61 : vector<8x1xf32> to vector<8x16xf32>
    %63 = arith.subf %59, %62 : vector<8x16xf32>
    %64 = math.exp %63 : vector<8x16xf32>
    %cst_31 = arith.constant dense<0.000000e+00> : vector<8xf32>
    %65 = vector.multi_reduction <add>, %64, %cst_31 [1] : vector<8x16xf32> to vector<8xf32>
    %66 = vector.shape_cast %65 : vector<8xf32> to vector<8x1xf32>
    %67 = vector.extract_strided_slice %32 {offsets = [0, 8], sizes = [16, 8], strides = [1, 1]} : vector<16x32xf32> to vector<16x8xf32>
    %cst_32 = arith.constant dense<0.000000e+00> : vector<8x8xf32>
    %68 = tpu.matmul %64, %67, %cst_32 {dimension_numbers = #tpu.dot_dimension_numbers<[1], [0], [0], [1], [0, 0, 1, 1], [], []>} : vector<8x16xf32>, vector<16x8xf32>, vector<8x8xf32> -> vector<8x8xf32>
    %69 = tpu.reciprocal %66 {approx = true} : vector<8x1xf32> -> vector<8x1xf32>
    %70 = vector.broadcast %69 : vector<8x1xf32> to vector<8x8xf32>
    %71 = arith.mulf %68, %70 : vector<8x8xf32>
    %c0_33 = arith.constant 0 : index
    %c8 = arith.constant 8 : index
    %72 = vector.load %arg16[%c0_33, %c8] : memref<8x32xf32, #tpu.memory_space<vmem>>, vector<8x8xf32>
    tpu.vector_store %arg16[%c0_33, %c8], %71 {strides = array<i32>} : memref<8x32xf32, #tpu.memory_space<vmem>>, vector<8x8xf32>,
    %73 = vector.extract_strided_slice %30 {offsets = [0, 16], sizes = [8, 8], strides = [1, 1]} : vector<8x32xf32> to vector<8x8xf32>
    %74 = vector.extract_strided_slice %31 {offsets = [0, 16], sizes = [16, 8], strides = [1, 1]} : vector<16x32xf32> to vector<16x8xf32>
    %cst_34 = arith.constant dense<0.000000e+00> : vector<8x16xf32>
    %75 = tpu.matmul %73, %74, %cst_34 {dimension_numbers = #tpu.dot_dimension_numbers<[1], [1], [0], [0], [0, 0, 1, 0], [], []>} : vector<8x8xf32>, vector<16x8xf32>, vector<8x16xf32> -> vector<8x16xf32>
    %cst_35 = arith.constant -1.000000e+09 : f32
    %76 = vector.broadcast %cst_35 : f32 to vector<8x16xf32>
    %77 = arith.select %36, %76, %75 : vector<8x16xi1>, vector<8x16xf32>
    %cst_36 = arith.constant dense<0xFF800000> : vector<8xf32>
    %78 = vector.multi_reduction <maximumf>, %77, %cst_36 [1] : vector<8x16xf32> to vector<8xf32>
    %79 = vector.shape_cast %78 : vector<8xf32> to vector<8x1xf32>
    %80 = vector.broadcast %79 : vector<8x1xf32> to vector<8x16xf32>
    %81 = arith.subf %77, %80 : vector<8x16xf32>
    %82 = math.exp %81 : vector<8x16xf32>
    %cst_37 = arith.constant dense<0.000000e+00> : vector<8xf32>
    %83 = vector.multi_reduction <add>, %82, %cst_37 [1] : vector<8x16xf32> to vector<8xf32>
    %84 = vector.shape_cast %83 : vector<8xf32> to vector<8x1xf32>
    %85 = vector.extract_strided_slice %32 {offsets = [0, 16], sizes = [16, 8], strides = [1, 1]} : vector<16x32xf32> to vector<16x8xf32>
    %cst_38 = arith.constant dense<0.000000e+00> : vector<8x8xf32>
    %86 = tpu.matmul %82, %85, %cst_38 {dimension_numbers = #tpu.dot_dimension_numbers<[1], [0], [0], [1], [0, 0, 1, 1], [], []>} : vector<8x16xf32>, vector<16x8xf32>, vector<8x8xf32> -> vector<8x8xf32>
    %87 = tpu.reciprocal %84 {approx = true} : vector<8x1xf32> -> vector<8x1xf32>
    %88 = vector.broadcast %87 : vector<8x1xf32> to vector<8x8xf32>
    %89 = arith.mulf %86, %88 : vector<8x8xf32>
    %c0_39 = arith.constant 0 : index
    %c16 = arith.constant 16 : index
    %90 = vector.load %arg16[%c0_39, %c16] : memref<8x32xf32, #tpu.memory_space<vmem>>, vector<8x8xf32>
    tpu.vector_store %arg16[%c0_39, %c16], %89 {strides = array<i32>} : memref<8x32xf32, #tpu.memory_space<vmem>>, vector<8x8xf32>,
    %91 = vector.extract_strided_slice %30 {offsets = [0, 24], sizes = [8, 8], strides = [1, 1]} : vector<8x32xf32> to vector<8x8xf32>
    %92 = vector.extract_strided_slice %31 {offsets = [0, 24], sizes = [16, 8], strides = [1, 1]} : vector<16x32xf32> to vector<16x8xf32>
    %cst_40 = arith.constant dense<0.000000e+00> : vector<8x16xf32>
    %93 = tpu.matmul %91, %92, %cst_40 {dimension_numbers = #tpu.dot_dimension_numbers<[1], [1], [0], [0], [0, 0, 1, 0], [], []>} : vector<8x8xf32>, vector<16x8xf32>, vector<8x16xf32> -> vector<8x16xf32>
    %cst_41 = arith.constant -1.000000e+09 : f32
    %94 = vector.broadcast %cst_41 : f32 to vector<8x16xf32>
    %95 = arith.select %36, %94, %93 : vector<8x16xi1>, vector<8x16xf32>
    %cst_42 = arith.constant dense<0xFF800000> : vector<8xf32>
    %96 = vector.multi_reduction <maximumf>, %95, %cst_42 [1] : vector<8x16xf32> to vector<8xf32>
    %97 = vector.shape_cast %96 : vector<8xf32> to vector<8x1xf32>
    %98 = vector.broadcast %97 : vector<8x1xf32> to vector<8x16xf32>
    %99 = arith.subf %95, %98 : vector<8x16xf32>
    %100 = math.exp %99 : vector<8x16xf32>
    %cst_43 = arith.constant dense<0.000000e+00> : vector<8xf32>
    %101 = vector.multi_reduction <add>, %100, %cst_43 [1] : vector<8x16xf32> to vector<8xf32>
    %102 = vector.shape_cast %101 : vector<8xf32> to vector<8x1xf32>
    %103 = vector.extract_strided_slice %32 {offsets = [0, 24], sizes = [16, 8], strides = [1, 1]} : vector<16x32xf32> to vector<16x8xf32>
    %cst_44 = arith.constant dense<0.000000e+00> : vector<8x8xf32>
    %104 = tpu.matmul %100, %103, %cst_44 {dimension_numbers = #tpu.dot_dimension_numbers<[1], [0], [0], [1], [0, 0, 1, 1], [], []>} : vector<8x16xf32>, vector<16x8xf32>, vector<8x8xf32> -> vector<8x8xf32>
    %105 = tpu.reciprocal %102 {approx = true} : vector<8x1xf32> -> vector<8x1xf32>
    %106 = vector.broadcast %105 : vector<8x1xf32> to vector<8x8xf32>
    %107 = arith.mulf %104, %106 : vector<8x8xf32>
    %c0_45 = arith.constant 0 : index
    %c24 = arith.constant 24 : index
    %108 = vector.load %arg16[%c0_45, %c24] : memref<8x32xf32, #tpu.memory_space<vmem>>, vector<8x8xf32>
    tpu.vector_store %arg16[%c0_45, %c24], %107 {strides = array<i32>} : memref<8x32xf32, #tpu.memory_space<vmem>>, vector<8x8xf32>,
    %c0_46 = arith.constant 0 : index
    %c0_47 = arith.constant 0 : index
    %109 = vector.load %arg16[%c0_46, %c0_47] : memref<8x32xf32, #tpu.memory_space<vmem>>, vector<8x32xf32>
    %c0_48 = arith.constant 0 : index
    %c0_49 = arith.constant 0 : index
    %110 = vector.load %arg11[%c0_48, %c0_49] : memref<32x32xf32, #tpu.memory_space<vmem>>, vector<32x32xf32>
    %cst_50 = arith.constant dense<0.000000e+00> : vector<8x32xf32>
    %111 = tpu.matmul %109, %110, %cst_50 {dimension_numbers = #tpu.dot_dimension_numbers<[1], [1], [0], [0], [0, 0, 1, 0], [], []>} : vector<8x32xf32>, vector<32x32xf32>, vector<8x32xf32> -> vector<8x32xf32>
    %c0_51 = arith.constant 0 : index
    %c0_52 = arith.constant 0 : index
    %112 = vector.load %arg12[%c0_51, %c0_52] : memref<1x32xf32, #tpu.memory_space<vmem>>, vector<1x32xf32>
    %113 = vector.broadcast %112 : vector<1x32xf32> to vector<8x32xf32>
    %114 = arith.addf %111, %113 : vector<8x32xf32>
    %c0_53 = arith.constant 0 : index
    %c0_54 = arith.constant 0 : index
    %c0_55 = arith.constant 0 : index
    %115 = vector.load %arg13[%c0_53, %c0_54, %c0_55] : memref<1x8x32xf32, #tpu.memory_space<vmem>>, vector<1x8x32xf32>
    %116 = vector.shape_cast %115 : vector<1x8x32xf32> to vector<8x32xf32>
    %117 = vector.shape_cast %114 : vector<8x32xf32> to vector<1x8x32xf32>
    tpu.vector_store %arg13[%c0_53, %c0_54, %c0_55], %117 {strides = array<i32>} : memref<1x8x32xf32, #tpu.memory_space<vmem>>, vector<1x8x32xf32>,
    return
  }
  func.func @transform_0(%arg0: i32, %arg1: i32) -> (i32, i32, i32) {
    %c0_i32 = arith.constant 0 : i32
    %c0_i32_0 = arith.constant 0 : i32
    return %arg0, %arg1, %c0_i32 : i32, i32, i32
  }
  func.func @transform_1(%arg0: i32, %arg1: i32) -> (i32, i32, i32) {
    %c0_i32 = arith.constant 0 : i32
    %c0_i32_0 = arith.constant 0 : i32
    %c0_i32_1 = arith.constant 0 : i32
    return %arg0, %c0_i32, %c0_i32_0 : i32, i32, i32
  }
  func.func @transform_2(%arg0: i32, %arg1: i32) -> (i32, i32, i32) {
    %c0_i32 = arith.constant 0 : i32
    %c0_i32_0 = arith.constant 0 : i32
    %c0_i32_1 = arith.constant 0 : i32
    return %arg0, %c0_i32, %c0_i32_0 : i32, i32, i32
  }
  func.func @transform_3(%arg0: i32, %arg1: i32) -> (i32, i32, i32) {
    %c0_i32 = arith.constant 0 : i32
    %c0_i32_0 = arith.constant 0 : i32
    return %arg0, %arg1, %c0_i32 : i32, i32, i32
  }
  func.func @transform_4(%arg0: i32, %arg1: i32) -> (i32, i32) {
    %c0_i32 = arith.constant 0 : i32
    %c0_i32_0 = arith.constant 0 : i32
    %c0_i32_1 = arith.constant 0 : i32
    return %c0_i32, %c0_i32_0 : i32, i32
  }
  func.func @transform_5(%arg0: i32, %arg1: i32) -> (i32, i32) {
    %c0_i32 = arith.constant 0 : i32
    %c0_i32_0 = arith.constant 0 : i32
    %c0_i32_1 = arith.constant 0 : i32
    return %c0_i32, %c0_i32_0 : i32, i32
  }
  func.func @transform_6(%arg0: i32, %arg1: i32) -> (i32, i32) {
    %c0_i32 = arith.constant 0 : i32
    %c0_i32_0 = arith.constant 0 : i32
    %c0_i32_1 = arith.constant 0 : i32
    return %c0_i32, %c0_i32_0 : i32, i32
  }
  func.func @transform_7(%arg0: i32, %arg1: i32) -> (i32, i32) {
    %c0_i32 = arith.constant 0 : i32
    %c0_i32_0 = arith.constant 0 : i32
    %c0_i32_1 = arith.constant 0 : i32
    return %c0_i32, %c0_i32_0 : i32, i32
  }
  func.func @transform_8(%arg0: i32, %arg1: i32) -> (i32, i32) {
    %c0_i32 = arith.constant 0 : i32
    %c0_i32_0 = arith.constant 0 : i32
    %c0_i32_1 = arith.constant 0 : i32
    return %c0_i32, %c0_i32_0 : i32, i32
  }
  func.func @transform_9(%arg0: i32, %arg1: i32) -> (i32, i32) {
    %c0_i32 = arith.constant 0 : i32
    %c0_i32_0 = arith.constant 0 : i32
    %c0_i32_1 = arith.constant 0 : i32
    return %c0_i32, %c0_i32_0 : i32, i32
  }
  func.func @transform_10(%arg0: i32, %arg1: i32) -> (i32, i32) {
    %c0_i32 = arith.constant 0 : i32
    %c0_i32_0 = arith.constant 0 : i32
    %c0_i32_1 = arith.constant 0 : i32
    return %c0_i32, %c0_i32_0 : i32, i32
  }
  func.func @transform_11(%arg0: i32, %arg1: i32) -> (i32, i32, i32) {
    %c0_i32 = arith.constant 0 : i32
    %c0_i32_0 = arith.constant 0 : i32
    return %arg0, %arg1, %c0_i32 : i32, i32, i32
  }
}

module attributes {stable_mosaic.version = 11 : i64} {
  func.func @_decoder_prenorm_kernel(%arg0: i32, %arg1: i32, %arg2: memref<1x8x32xf32, #tpu.memory_space<vmem>>, %arg3: memref<1x16x32xf32, #tpu.memory_space<vmem>>, %arg4: memref<1x16x32xf32, #tpu.memory_space<vmem>>, %arg5: memref<1x8x16xi8, #tpu.memory_space<vmem>>, %arg6: memref<1x32xf32, #tpu.memory_space<vmem>>, %arg7: memref<1x32xf32, #tpu.memory_space<vmem>>, %arg8: memref<32x32xf32, #tpu.memory_space<vmem>>, %arg9: memref<32x32xf32, #tpu.memory_space<vmem>>, %arg10: memref<32x32xf32, #tpu.memory_space<vmem>>, %arg11: memref<32x32xf32, #tpu.memory_space<vmem>>, %arg12: memref<1x32xf32, #tpu.memory_space<vmem>>, %arg13: memref<1x8x32xf32, #tpu.memory_space<vmem>>, %arg14: memref<16x32xf32, #tpu.memory_space<vmem>>, %arg15: memref<16x32xf32, #tpu.memory_space<vmem>>, %arg16: memref<8x32xf32, #tpu.memory_space<vmem>>) attributes {dimension_semantics = [#tpu.dimension_semantics<parallel>, #tpu.dimension_semantics<arbitrary>], iteration_bounds = array<i64: 2, 2>, scalar_prefetch = 0 : i64, scratch_operands = 3 : i64, tpu.core_type = #tpu.core_type<tc>, window_params = [{transform_indices = @transform_0, window_bounds = array<i64: 1, 8, 32>}, {transform_indices = @transform_1, window_bounds = array<i64: 1, 16, 32>}, {transform_indices = @transform_2, window_bounds = array<i64: 1, 16, 32>}, {transform_indices = @transform_3, window_bounds = array<i64: 1, 8, 16>}, {pipeline_mode = #tpu.pipeline_mode<synchronous>, transform_indices = @transform_4, window_bounds = array<i64: 1, 32>}, {pipeline_mode = #tpu.pipeline_mode<synchronous>, transform_indices = @transform_5, window_bounds = array<i64: 1, 32>}, {pipeline_mode = #tpu.pipeline_mode<synchronous>, transform_indices = @transform_6, window_bounds = array<i64: 32, 32>}, {pipeline_mode = #tpu.pipeline_mode<synchronous>, transform_indices = @transform_7, window_bounds = array<i64: 32, 32>}, {pipeline_mode = #tpu.pipeline_mode<synchronous>, transform_indices = @transform_8, window_bounds = array<i64: 32, 32>}, {pipeline_mode = #tpu.pipeline_mode<synchronous>, transform_indices = @transform_9, window_bounds = array<i64: 32, 32>}, {pipeline_mode = #tpu.pipeline_mode<synchronous>, transform_indices = @transform_10, window_bounds = array<i64: 1, 32>}, {transform_indices = @transform_11, window_bounds = array<i64: 1, 8, 32>}]} {
    %c0 = arith.constant 0 : index
    %c0_0 = arith.constant 0 : index
    %0 = vector.load %arg6[%c0, %c0_0] : memref<1x32xf32, #tpu.memory_space<vmem>>, vector<1x32xf32>
    %c0_1 = arith.constant 0 : index
    %c0_2 = arith.constant 0 : index
    %1 = vector.load %arg7[%c0_1, %c0_2] : memref<1x32xf32, #tpu.memory_space<vmem>>, vector<1x32xf32>
    %c0_i32 = arith.constant 0 : i32
    %2 = arith.cmpi eq, %arg1, %c0_i32 : i32
    %3 = arith.extui %2 : i1 to i32
    %c0_i32_3 = arith.constant 0 : i32
    %4 = arith.cmpi ne, %3, %c0_i32_3 : i32
    scf.if %4 {
      %c0_56 = arith.constant 0 : index
      %c0_57 = arith.constant 0 : index
      %c0_58 = arith.constant 0 : index
      %118 = vector.load %arg3[%c0_56, %c0_57, %c0_58] : memref<1x16x32xf32, #tpu.memory_space<vmem>>, vector<1x16x32xf32>
      %119 = vector.shape_cast %118 : vector<1x16x32xf32> to vector<16x32xf32>
      %cst_59 = arith.constant dense<0.000000e+00> : vector<16xf32>
      %120 = vector.multi_reduction <add>, %119, %cst_59 [1] : vector<16x32xf32> to vector<16xf32>
      %121 = vector.shape_cast %120 : vector<16xf32> to vector<16x1xf32>
      %cst_60 = arith.constant 3.200000e+01 : f32
      %122 = vector.broadcast %cst_60 : f32 to vector<16x1xf32>
      %123 = arith.divf %121, %122 : vector<16x1xf32>
      %124 = arith.mulf %119, %119 : vector<16x32xf32>
      %cst_61 = arith.constant dense<0.000000e+00> : vector<16xf32>
      %125 = vector.multi_reduction <add>, %124, %cst_61 [1] : vector<16x32xf32> to vector<16xf32>
      %126 = vector.shape_cast %125 : vector<16xf32> to vector<16x1xf32>
      %cst_62 = arith.constant 3.200000e+01 : f32
      %127 = vector.broadcast %cst_62 : f32 to vector<16x1xf32>
      %128 = arith.divf %126, %127 : vector<16x1xf32>
      %129 = arith.mulf %123, %123 : vector<16x1xf32>
      %130 = arith.subf %128, %129 : vector<16x1xf32>
      %cst_63 = arith.constant 9.99999974E-6 : f32
      %131 = vector.broadcast %cst_63 : f32 to vector<16x1xf32>
      %132 = arith.addf %130, %131 : vector<16x1xf32>
      %133 = math.rsqrt %132 : vector<16x1xf32>
      %134 = vector.broadcast %123 : vector<16x1xf32> to vector<16x32xf32>
      %135 = arith.subf %119, %134 : vector<16x32xf32>
      %136 = vector.broadcast %133 : vector<16x1xf32> to vector<16x32xf32>
      %137 = arith.mulf %135, %136 : vector<16x32xf32>
      %138 = vector.broadcast %0 : vector<1x32xf32> to vector<16x32xf32>
      %139 = arith.mulf %137, %138 : vector<16x32xf32>
      %140 = vector.broadcast %1 : vector<1x32xf32> to vector<16x32xf32>
      %141 = arith.addf %139, %140 : vector<16x32xf32>
      %c0_64 = arith.constant 0 : index
      %c0_65 = arith.constant 0 : index
      %c0_66 = arith.constant 0 : index
      %142 = vector.load %arg4[%c0_64, %c0_65, %c0_66] : memref<1x16x32xf32, #tpu.memory_space<vmem>>, vector<1x16x32xf32>
      %143 = vector.shape_cast %142 : vector<1x16x32xf32> to vector<16x32xf32>
      %cst_67 = arith.constant dense<0.000000e+00> : vector<16xf32>
      %144 = vector.multi_reduction <add>, %143, %cst_67 [1] : vector<16x32xf32> to vector<16xf32>
      %145 = vector.shape_cast %144 : vector<16xf32> to vector<16x1xf32>
      %cst_68 = arith.constant 3.200000e+01 : f32
      %146 = vector.broadcast %cst_68 : f32 to vector<16x1xf32>
      %147 = arith.divf %145, %146 : vector<16x1xf32>
      %148 = arith.mulf %143, %143 : vector<16x32xf32>
      %cst_69 = arith.constant dense<0.000000e+00> : vector<16xf32>
      %149 = vector.multi_reduction <add>, %148, %cst_69 [1] : vector<16x32xf32> to vector<16xf32>
      %150 = vector.shape_cast %149 : vector<16xf32> to vector<16x1xf32>
      %cst_70 = arith.constant 3.200000e+01 : f32
      %151 = vector.broadcast %cst_70 : f32 to vector<16x1xf32>
      %152 = arith.divf %150, %151 : vector<16x1xf32>
      %153 = arith.mulf %147, %147 : vector<16x1xf32>
      %154 = arith.subf %152, %153 : vector<16x1xf32>
      %cst_71 = arith.constant 9.99999974E-6 : f32
      %155 = vector.broadcast %cst_71 : f32 to vector<16x1xf32>
      %156 = arith.addf %154, %155 : vector<16x1xf32>
      %157 = math.rsqrt %156 : vector<16x1xf32>
      %158 = vector.broadcast %147 : vector<16x1xf32> to vector<16x32xf32>
      %159 = arith.subf %143, %158 : vector<16x32xf32>
      %160 = vector.broadcast %157 : vector<16x1xf32> to vector<16x32xf32>
      %161 = arith.mulf %159, %160 : vector<16x32xf32>
      %162 = vector.broadcast %0 : vector<1x32xf32> to vector<16x32xf32>
      %163 = arith.mulf %161, %162 : vector<16x32xf32>
      %164 = vector.broadcast %1 : vector<1x32xf32> to vector<16x32xf32>
      %165 = arith.addf %163, %164 : vector<16x32xf32>
      %c0_72 = arith.constant 0 : index
      %c0_73 = arith.constant 0 : index
      %166 = vector.load %arg9[%c0_72, %c0_73] : memref<32x32xf32, #tpu.memory_space<vmem>>, vector<32x32xf32>
      %cst_74 = arith.constant dense<0.000000e+00> : vector<16x32xf32>
      %167 = tpu.matmul %141, %166, %cst_74 {dimension_numbers = #tpu.dot_dimension_numbers<[1], [1], [0], [0], [0, 0, 1, 0], [], []>} : vector<16x32xf32>, vector<32x32xf32>, vector<16x32xf32> -> vector<16x32xf32>
      %c0_75 = arith.constant 0 : index
      %c0_76 = arith.constant 0 : index
      %168 = vector.load %arg14[%c0_75, %c0_76] : memref<16x32xf32, #tpu.memory_space<vmem>>, vector<16x32xf32>
      tpu.vector_store %arg14[%c0_75, %c0_76], %167 {strides = array<i32>} : memref<16x32xf32, #tpu.memory_space<vmem>>, vector<16x32xf32>,
      %c0_77 = arith.constant 0 : index
      %c0_78 = arith.constant 0 : index
      %169 = vector.load %arg10[%c0_77, %c0_78] : memref<32x32xf32, #tpu.memory_space<vmem>>, vector<32x32xf32>
      %cst_79 = arith.constant dense<0.000000e+00> : vector<16x32xf32>
      %170 = tpu.matmul %165, %169, %cst_79 {dimension_numbers = #tpu.dot_dimension_numbers<[1], [1], [0], [0], [0, 0, 1, 0], [], []>} : vector<16x32xf32>, vector<32x32xf32>, vector<16x32xf32> -> vector<16x32xf32>
      %c0_80 = arith.constant 0 : index
      %c0_81 = arith.constant 0 : index
      %171 = vector.load %arg15[%c0_80, %c0_81] : memref<16x32xf32, #tpu.memory_space<vmem>>, vector<16x32xf32>
      tpu.vector_store %arg15[%c0_80, %c0_81], %170 {strides = array<i32>} : memref<16x32xf32, #tpu.memory_space<vmem>>, vector<16x32xf32>,
    } else {
    }
    %c0_4 = arith.constant 0 : index
    %c0_5 = arith.constant 0 : index
    %c0_6 = arith.constant 0 : index
    %5 = vector.load %arg2[%c0_4, %c0_5, %c0_6] : memref<1x8x32xf32, #tpu.memory_space<vmem>>, vector<1x8x32xf32>
    %6 = vector.shape_cast %5 : vector<1x8x32xf32> to vector<8x32xf32>
    %cst = arith.constant dense<0.000000e+00> : vector<8xf32>
    %7 = vector.multi_reduction <add>, %6, %cst [1] : vector<8x32xf32> to vector<8xf32>
    %8 = vector.shape_cast %7 : vector<8xf32> to vector<8x1xf32>
    %cst_7 = arith.constant 3.200000e+01 : f32
    %9 = vector.broadcast %cst_7 : f32 to vector<8x1xf32>
    %10 = arith.divf %8, %9 : vector<8x1xf32>
    %11 = arith.mulf %6, %6 : vector<8x32xf32>
    %cst_8 = arith.constant dense<0.000000e+00> : vector<8xf32>
    %12 = vector.multi_reduction <add>, %11, %cst_8 [1] : vector<8x32xf32> to vector<8xf32>
    %13 = vector.shape_cast %12 : vector<8xf32> to vector<8x1xf32>
    %cst_9 = arith.constant 3.200000e+01 : f32
    %14 = vector.broadcast %cst_9 : f32 to vector<8x1xf32>
    %15 = arith.divf %13, %14 : vector<8x1xf32>
    %16 = arith.mulf %10, %10 : vector<8x1xf32>
    %17 = arith.subf %15, %16 : vector<8x1xf32>
    %cst_10 = arith.constant 9.99999974E-6 : f32
    %18 = vector.broadcast %cst_10 : f32 to vector<8x1xf32>
    %19 = arith.addf %17, %18 : vector<8x1xf32>
    %20 = math.rsqrt %19 : vector<8x1xf32>
    %21 = vector.broadcast %10 : vector<8x1xf32> to vector<8x32xf32>
    %22 = arith.subf %6, %21 : vector<8x32xf32>
    %23 = vector.broadcast %20 : vector<8x1xf32> to vector<8x32xf32>
    %24 = arith.mulf %22, %23 : vector<8x32xf32>
    %25 = vector.broadcast %0 : vector<1x32xf32> to vector<8x32xf32>
    %26 = arith.mulf %24, %25 : vector<8x32xf32>
    %27 = vector.broadcast %1 : vector<1x32xf32> to vector<8x32xf32>
    %28 = arith.addf %26, %27 : vector<8x32xf32>
    %c0_11 = arith.constant 0 : index
    %c0_12 = arith.constant 0 : index
    %29 = vector.load %arg8[%c0_11, %c0_12] : memref<32x32xf32, #tpu.memory_space<vmem>>, vector<32x32xf32>
    %cst_13 = arith.constant dense<0.000000e+00> : vector<8x32xf32>
    %30 = tpu.matmul %28, %29, %cst_13 {dimension_numbers = #tpu.dot_dimension_numbers<[1], [1], [0], [0], [0, 0, 1, 0], [], []>} : vector<8x32xf32>, vector<32x32xf32>, vector<8x32xf32> -> vector<8x32xf32>
    %c0_14 = arith.constant 0 : index
    %c0_15 = arith.constant 0 : index
    %31 = vector.load %arg14[%c0_14, %c0_15] : memref<16x32xf32, #tpu.memory_space<vmem>>, vector<16x32xf32>
    %c0_16 = arith.constant 0 : index
    %c0_17 = arith.constant 0 : index
    %32 = vector.load %arg15[%c0_16, %c0_17] : memref<16x32xf32, #tpu.memory_space<vmem>>, vector<16x32xf32>
    %c0_18 = arith.constant 0 : index
    %c0_19 = arith.constant 0 : index
    %c0_20 = arith.constant 0 : index
    %33 = vector.load %arg5[%c0_18, %c0_19, %c0_20] : memref<1x8x16xi8, #tpu.memory_space<vmem>>, vector<1x8x16xi8>
    %34 = vector.shape_cast %33 : vector<1x8x16xi8> to vector<8x16xi8>
    %c0_i8 = arith.constant 0 : i8
    %35 = vector.broadcast %c0_i8 : i8 to vector<8x16xi8>
    %36 = arith.cmpi ne, %34, %35 : vector<8x16xi8>
    %37 = vector.extract_strided_slice %30 {offsets = [0, 0], sizes = [8, 8], strides = [1, 1]} : vector<8x32xf32> to vector<8x8xf32>
    %38 = vector.extract_strided_slice %31 {offsets = [0, 0], sizes = [16, 8], strides = [1, 1]} : vector<16x32xf32> to vector<16x8xf32>
    %cst_21 = arith.constant dense<0.000000e+00> : vector<8x16xf32>
    %39 = tpu.matmul %37, %38, %cst_21 {dimension_numbers = #tpu.dot_dimension_numbers<[1], [1], [0], [0], [0, 0, 1, 0], [], []>} : vector<8x8xf32>, vector<16x8xf32>, vector<8x16xf32> -> vector<8x16xf32>
    %cst_22 = arith.constant -1.000000e+09 : f32
    %40 = vector.broadcast %cst_22 : f32 to vector<8x16xf32>
    %41 = arith.select %36, %40, %39 : vector<8x16xi1>, vector<8x16xf32>
    %cst_23 = arith.constant dense<0xFF800000> : vector<8xf32>
    %42 = vector.multi_reduction <maximumf>, %41, %cst_23 [1] : vector<8x16xf32> to vector<8xf32>
    %43 = vector.shape_cast %42 : vector<8xf32> to vector<8x1xf32>
    %44 = vector.broadcast %43 : vector<8x1xf32> to vector<8x16xf32>
    %45 = arith.subf %41, %44 : vector<8x16xf32>
    %46 = math.exp %45 : vector<8x16xf32>
    %cst_24 = arith.constant dense<0.000000e+00> : vector<8xf32>
    %47 = vector.multi_reduction <add>, %46, %cst_24 [1] : vector<8x16xf32> to vector<8xf32>
    %48 = vector.shape_cast %47 : vector<8xf32> to vector<8x1xf32>
    %49 = vector.extract_strided_slice %32 {offsets = [0, 0], sizes = [16, 8], strides = [1, 1]} : vector<16x32xf32> to vector<16x8xf32>
    %cst_25 = arith.constant dense<0.000000e+00> : vector<8x8xf32>
    %50 = tpu.matmul %46, %49, %cst_25 {dimension_numbers = #tpu.dot_dimension_numbers<[1], [0], [0], [1], [0, 0, 1, 1], [], []>} : vector<8x16xf32>, vector<16x8xf32>, vector<8x8xf32> -> vector<8x8xf32>
    %51 = tpu.reciprocal %48 {approx = true} : vector<8x1xf32> -> vector<8x1xf32>
    %52 = vector.broadcast %51 : vector<8x1xf32> to vector<8x8xf32>
    %53 = arith.mulf %50, %52 : vector<8x8xf32>
    %c0_26 = arith.constant 0 : index
    %c0_27 = arith.constant 0 : index
    %54 = vector.load %arg16[%c0_26, %c0_27] : memref<8x32xf32, #tpu.memory_space<vmem>>, vector<8x8xf32>
    tpu.vector_store %arg16[%c0_26, %c0_27], %53 {strides = array<i32>} : memref<8x32xf32, #tpu.memory_space<vmem>>, vector<8x8xf32>,
    %55 = vector.extract_strided_slice %30 {offsets = [0, 8], sizes = [8, 8], strides = [1, 1]} : vector<8x32xf32> to vector<8x8xf32>
    %56 = vector.extract_strided_slice %31 {offsets = [0, 8], sizes = [16, 8], strides = [1, 1]} : vector<16x32xf32> to vector<16x8xf32>
    %cst_28 = arith.constant dense<0.000000e+00> : vector<8x16xf32>
    %57 = tpu.matmul %55, %56, %cst_28 {dimension_numbers = #tpu.dot_dimension_numbers<[1], [1], [0], [0], [0, 0, 1, 0], [], []>} : vector<8x8xf32>, vector<16x8xf32>, vector<8x16xf32> -> vector<8x16xf32>
    %cst_29 = arith.constant -1.000000e+09 : f32
    %58 = vector.broadcast %cst_29 : f32 to vector<8x16xf32>
    %59 = arith.select %36, %58, %57 : vector<8x16xi1>, vector<8x16xf32>
    %cst_30 = arith.constant dense<0xFF800000> : vector<8xf32>
    %60 = vector.multi_reduction <maximumf>, %59, %cst_30 [1] : vector<8x16xf32> to vector<8xf32>
    %61 = vector.shape_cast %60 : vector<8xf32> to vector<8x1xf32>
    %62 = vector.broadcast %61 : vector<8x1xf32> to vector<8x16xf32>
    %63 = arith.subf %59, %62 : vector<8x16xf32>
    %64 = math.exp %63 : vector<8x16xf32>
    %cst_31 = arith.constant dense<0.000000e+00> : vector<8xf32>
    %65 = vector.multi_reduction <add>, %64, %cst_31 [1] : vector<8x16xf32> to vector<8xf32>
    %66 = vector.shape_cast %65 : vector<8xf32> to vector<8x1xf32>
    %67 = vector.extract_strided_slice %32 {offsets = [0, 8], sizes = [16, 8], strides = [1, 1]} : vector<16x32xf32> to vector<16x8xf32>
    %cst_32 = arith.constant dense<0.000000e+00> : vector<8x8xf32>
    %68 = tpu.matmul %64, %67, %cst_32 {dimension_numbers = #tpu.dot_dimension_numbers<[1], [0], [0], [1], [0, 0, 1, 1], [], []>} : vector<8x16xf32>, vector<16x8xf32>, vector<8x8xf32> -> vector<8x8xf32>
    %69 = tpu.reciprocal %66 {approx = true} : vector<8x1xf32> -> vector<8x1xf32>
    %70 = vector.broadcast %69 : vector<8x1xf32> to vector<8x8xf32>
    %71 = arith.mulf %68, %70 : vector<8x8xf32>
    %c0_33 = arith.constant 0 : index
    %c8 = arith.constant 8 : index
    %72 = vector.load %arg16[%c0_33, %c8] : memref<8x32xf32, #tpu.memory_space<vmem>>, vector<8x8xf32>
    tpu.vector_store %arg16[%c0_33, %c8], %71 {strides = array<i32>} : memref<8x32xf32, #tpu.memory_space<vmem>>, vector<8x8xf32>,
    %73 = vector.extract_strided_slice %30 {offsets = [0, 16], sizes = [8, 8], strides = [1, 1]} : vector<8x32xf32> to vector<8x8xf32>
    %74 = vector.extract_strided_slice %31 {offsets = [0, 16], sizes = [16, 8], strides = [1, 1]} : vector<16x32xf32> to vector<16x8xf32>
    %cst_34 = arith.constant dense<0.000000e+00> : vector<8x16xf32>
    %75 = tpu.matmul %73, %74, %cst_34 {dimension_numbers = #tpu.dot_dimension_numbers<[1], [1], [0], [0], [0, 0, 1, 0], [], []>} : vector<8x8xf32>, vector<16x8xf32>, vector<8x16xf32> -> vector<8x16xf32>
    %cst_35 = arith.constant -1.000000e+09 : f32
    %76 = vector.broadcast %cst_35 : f32 to vector<8x16xf32>
    %77 = arith.select %36, %76, %75 : vector<8x16xi1>, vector<8x16xf32>
    %cst_36 = arith.constant dense<0xFF800000> : vector<8xf32>
    %78 = vector.multi_reduction <maximumf>, %77, %cst_36 [1] : vector<8x16xf32> to vector<8xf32>
    %79 = vector.shape_cast %78 : vector<8xf32> to vector<8x1xf32>
    %80 = vector.broadcast %79 : vector<8x1xf32> to vector<8x16xf32>
    %81 = arith.subf %77, %80 : vector<8x16xf32>
    %82 = math.exp %81 : vector<8x16xf32>
    %cst_37 = arith.constant dense<0.000000e+00> : vector<8xf32>
    %83 = vector.multi_reduction <add>, %82, %cst_37 [1] : vector<8x16xf32> to vector<8xf32>
    %84 = vector.shape_cast %83 : vector<8xf32> to vector<8x1xf32>
    %85 = vector.extract_strided_slice %32 {offsets = [0, 16], sizes = [16, 8], strides = [1, 1]} : vector<16x32xf32> to vector<16x8xf32>
    %cst_38 = arith.constant dense<0.000000e+00> : vector<8x8xf32>
    %86 = tpu.matmul %82, %85, %cst_38 {dimension_numbers = #tpu.dot_dimension_numbers<[1], [0], [0], [1], [0, 0, 1, 1], [], []>} : vector<8x16xf32>, vector<16x8xf32>, vector<8x8xf32> -> vector<8x8xf32>
    %87 = tpu.reciprocal %84 {approx = true} : vector<8x1xf32> -> vector<8x1xf32>
    %88 = vector.broadcast %87 : vector<8x1xf32> to vector<8x8xf32>
    %89 = arith.mulf %86, %88 : vector<8x8xf32>
    %c0_39 = arith.constant 0 : index
    %c16 = arith.constant 16 : index
    %90 = vector.load %arg16[%c0_39, %c16] : memref<8x32xf32, #tpu.memory_space<vmem>>, vector<8x8xf32>
    tpu.vector_store %arg16[%c0_39, %c16], %89 {strides = array<i32>} : memref<8x32xf32, #tpu.memory_space<vmem>>, vector<8x8xf32>,
    %91 = vector.extract_strided_slice %30 {offsets = [0, 24], sizes = [8, 8], strides = [1, 1]} : vector<8x32xf32> to vector<8x8xf32>
    %92 = vector.extract_strided_slice %31 {offsets = [0, 24], sizes = [16, 8], strides = [1, 1]} : vector<16x32xf32> to vector<16x8xf32>
    %cst_40 = arith.constant dense<0.000000e+00> : vector<8x16xf32>
    %93 = tpu.matmul %91, %92, %cst_40 {dimension_numbers = #tpu.dot_dimension_numbers<[1], [1], [0], [0], [0, 0, 1, 0], [], []>} : vector<8x8xf32>, vector<16x8xf32>, vector<8x16xf32> -> vector<8x16xf32>
    %cst_41 = arith.constant -1.000000e+09 : f32
    %94 = vector.broadcast %cst_41 : f32 to vector<8x16xf32>
    %95 = arith.select %36, %94, %93 : vector<8x16xi1>, vector<8x16xf32>
    %cst_42 = arith.constant dense<0xFF800000> : vector<8xf32>
    %96 = vector.multi_reduction <maximumf>, %95, %cst_42 [1] : vector<8x16xf32> to vector<8xf32>
    %97 = vector.shape_cast %96 : vector<8xf32> to vector<8x1xf32>
    %98 = vector.broadcast %97 : vector<8x1xf32> to vector<8x16xf32>
    %99 = arith.subf %95, %98 : vector<8x16xf32>
    %100 = math.exp %99 : vector<8x16xf32>
    %cst_43 = arith.constant dense<0.000000e+00> : vector<8xf32>
    %101 = vector.multi_reduction <add>, %100, %cst_43 [1] : vector<8x16xf32> to vector<8xf32>
    %102 = vector.shape_cast %101 : vector<8xf32> to vector<8x1xf32>
    %103 = vector.extract_strided_slice %32 {offsets = [0, 24], sizes = [16, 8], strides = [1, 1]} : vector<16x32xf32> to vector<16x8xf32>
    %cst_44 = arith.constant dense<0.000000e+00> : vector<8x8xf32>
    %104 = tpu.matmul %100, %103, %cst_44 {dimension_numbers = #tpu.dot_dimension_numbers<[1], [0], [0], [1], [0, 0, 1, 1], [], []>} : vector<8x16xf32>, vector<16x8xf32>, vector<8x8xf32> -> vector<8x8xf32>
    %105 = tpu.reciprocal %102 {approx = true} : vector<8x1xf32> -> vector<8x1xf32>
    %106 = vector.broadcast %105 : vector<8x1xf32> to vector<8x8xf32>
    %107 = arith.mulf %104, %106 : vector<8x8xf32>
    %c0_45 = arith.constant 0 : index
    %c24 = arith.constant 24 : index
    %108 = vector.load %arg16[%c0_45, %c24] : memref<8x32xf32, #tpu.memory_space<vmem>>, vector<8x8xf32>
    tpu.vector_store %arg16[%c0_45, %c24], %107 {strides = array<i32>} : memref<8x32xf32, #tpu.memory_space<vmem>>, vector<8x8xf32>,
    %c0_46 = arith.constant 0 : index
    %c0_47 = arith.constant 0 : index
    %109 = vector.load %arg16[%c0_46, %c0_47] : memref<8x32xf32, #tpu.memory_space<vmem>>, vector<8x32xf32>
    %c0_48 = arith.constant 0 : index
    %c0_49 = arith.constant 0 : index
    %110 = vector.load %arg11[%c0_48, %c0_49] : memref<32x32xf32, #tpu.memory_space<vmem>>, vector<32x32xf32>
    %cst_50 = arith.constant dense<0.000000e+00> : vector<8x32xf32>
    %111 = tpu.matmul %109, %110, %cst_50 {dimension_numbers = #tpu.dot_dimension_numbers<[1], [1], [0], [0], [0, 0, 1, 0], [], []>} : vector<8x32xf32>, vector<32x32xf32>, vector<8x32xf32> -> vector<8x32xf32>
    %c0_51 = arith.constant 0 : index
    %c0_52 = arith.constant 0 : index
    %112 = vector.load %arg12[%c0_51, %c0_52] : memref<1x32xf32, #tpu.memory_space<vmem>>, vector<1x32xf32>
    %113 = vector.broadcast %112 : vector<1x32xf32> to vector<8x32xf32>
    %114 = arith.addf %111, %113 : vector<8x32xf32>
    %c0_53 = arith.constant 0 : index
    %c0_54 = arith.constant 0 : index
    %c0_55 = arith.constant 0 : index
    %115 = vector.load %arg13[%c0_53, %c0_54, %c0_55] : memref<1x8x32xf32, #tpu.memory_space<vmem>>, vector<1x8x32xf32>
    %116 = vector.shape_cast %115 : vector<1x8x32xf32> to vector<8x32xf32>
    %117 = vector.shape_cast %114 : vector<8x32xf32> to vector<1x8x32xf32>
    tpu.vector_store %arg13[%c0_53, %c0_54, %c0_55], %117 {strides = array<i32>} : memref<1x8x32xf32, #tpu.memory_space<vmem>>, vector<1x8x32xf32>,
    return
  }
  func.func @transform_0(%arg0: i32, %arg1: i32) -> (i32, i32, i32) {
    %c0_i32 = arith.constant 0 : i32
    %c0_i32_0 = arith.constant 0 : i32
    return %arg0, %arg1, %c0_i32 : i32, i32, i32
  }
  func.func @transform_1(%arg0: i32, %arg1: i32) -> (i32, i32, i32) {
    %c0_i32 = arith.constant 0 : i32
    %c0_i32_0 = arith.constant 0 : i32
    %c0_i32_1 = arith.constant 0 : i32
    return %arg0, %c0_i32, %c0_i32_0 : i32, i32, i32
  }
  func.func @transform_2(%arg0: i32, %arg1: i32) -> (i32, i32, i32) {
    %c0_i32 = arith.constant 0 : i32
    %c0_i32_0 = arith.constant 0 : i32
    %c0_i32_1 = arith.constant 0 : i32
    return %arg0, %c0_i32, %c0_i32_0 : i32, i32, i32
  }
  func.func @transform_3(%arg0: i32, %arg1: i32) -> (i32, i32, i32) {
    %c0_i32 = arith.constant 0 : i32
    %c0_i32_0 = arith.constant 0 : i32
    return %arg0, %arg1, %c0_i32 : i32, i32, i32
  }
  func.func @transform_4(%arg0: i32, %arg1: i32) -> (i32, i32) {
    %c0_i32 = arith.constant 0 : i32
    %c0_i32_0 = arith.constant 0 : i32
    %c0_i32_1 = arith.constant 0 : i32
    return %c0_i32, %c0_i32_0 : i32, i32
  }
  func.func @transform_5(%arg0: i32, %arg1: i32) -> (i32, i32) {
    %c0_i32 = arith.constant 0 : i32
    %c0_i32_0 = arith.constant 0 : i32
    %c0_i32_1 = arith.constant 0 : i32
    return %c0_i32, %c0_i32_0 : i32, i32
  }
  func.func @transform_6(%arg0: i32, %arg1: i32) -> (i32, i32) {
    %c0_i32 = arith.constant 0 : i32
    %c0_i32_0 = arith.constant 0 : i32
    %c0_i32_1 = arith.constant 0 : i32
    return %c0_i32, %c0_i32_0 : i32, i32
  }
  func.func @transform_7(%arg0: i32, %arg1: i32) -> (i32, i32) {
    %c0_i32 = arith.constant 0 : i32
    %c0_i32_0 = arith.constant 0 : i32
    %c0_i32_1 = arith.constant 0 : i32
    return %c0_i32, %c0_i32_0 : i32, i32
  }
  func.func @transform_8(%arg0: i32, %arg1: i32) -> (i32, i32) {
    %c0_i32 = arith.constant 0 : i32
    %c0_i32_0 = arith.constant 0 : i32
    %c0_i32_1 = arith.constant 0 : i32
    return %c0_i32, %c0_i32_0 : i32, i32
  }
  func.func @transform_9(%arg0: i32, %arg1: i32) -> (i32, i32) {
    %c0_i32 = arith.constant 0 : i32
    %c0_i32_0 = arith.constant 0 : i32
    %c0_i32_1 = arith.constant 0 : i32
    return %c0_i32, %c0_i32_0 : i32, i32
  }
  func.func @transform_10(%arg0: i32, %arg1: i32) -> (i32, i32) {
    %c0_i32 = arith.constant 0 : i32
    %c0_i32_0 = arith.constant 0 : i32
    %c0_i32_1 = arith.constant 0 : i32
    return %c0_i32, %c0_i32_0 : i32, i32
  }
  func.func @transform_11(%arg0: i32, %arg1: i32) -> (i32, i32, i32) {
    %c0_i32 = arith.constant 0 : i32
    %c0_i32_0 = arith.constant 0 : i32
    return %arg0, %arg1, %c0_i32 : i32, i32, i32
  }
}

</mosaic_0001>

<bundles_post_ra>
// kernel: tpu_custom_call.1
= control target key start
LH: loop header
LB: loop body
LE: loop exit
PB: predicated region body
PF: predicated region fallthrough
CT: control target
= control target key end

     0   :  { %s3461_s0 = inlined_call_operand.hbm [shape: f32[2,16,32], index: 0, kind: input, shape index: {}]   ;;  %s3462_s1 = inlined_call_operand.hbm [shape: f32[2,16,32], index: 1, kind: input, shape index: {}]   ;;  %s3463_s2 = inlined_call_operand.hbm [shape: f32[2,16,32], index: 2, kind: input, shape index: {}]   ;;  %s3464_s3 = inlined_call_operand.hbm [shape: s8[2,16,16], index: 3, kind: input, shape index: {}]   ;;  %s3465_s4 = inlined_call_operand.vmem [shape: f32[1,32], index: 4, kind: input, shape index: {}]   ;;  %s3466_s5 = inlined_call_operand.vmem [shape: f32[1,32], index: 5, kind: input, shape index: {}]   ;;  %s3467_s6 = inlined_call_operand.hbm [shape: f32[32,32], index: 6, kind: input, shape index: {}]   ;;  %s3468_s7 = inlined_call_operand.hbm [shape: f32[32,32], index: 7, kind: input, shape index: {}]   ;;  %s3469_s8 = inlined_call_operand.hbm [shape: f32[32,32], index: 8, kind: input, shape index: {}]   ;;  %s3470_s9 = inlined_call_operand.hbm [shape: f32[32,32], index: 9, kind: input, shape index: {}]   ;;  %s3471_s10 = inlined_call_operand.vmem [shape: f32[1,32], index: 10, kind: input, shape index: {}]   ;;  %s3472_s11 = inlined_call_operand.hbm [shape: f32[2,16,32], index: 11, kind: output, shape index: {}]  }
   0x1   :  { %3495 = sst [smem:[#allocation38_spill]] %s3462_s1 }
   0x2   :  { %3496 = sst [smem:[#allocation39_spill]] %s3463_s2 }
   0x3   :  { %3497 = sst [smem:[#allocation40_spill]] %s3465_s4 }
   0x4   :  { %3498 = sst [smem:[#allocation41_spill]] %s3466_s5 }
   0x5   :  { %3499 = sst [smem:[#allocation42_spill]] %s3467_s6 }
   0x6   :  { %3500 = sst [smem:[#allocation43_spill]] %s3468_s7 }
   0x7   :  { %3501 = sst [smem:[#allocation44_spill]] %s3469_s8 }
   0x8   :  { %3502 = sst [smem:[#allocation45_spill]] %s3470_s9 }
   0x9   :  { %3503 = sst [smem:[#allocation46_spill]] %s3471_s10 }
   0xa   :  { %3504 = sst [smem:[#allocation47_spill]] %s3472_s11 }
   0xb   :  { %16 = vsyncpa [#allocation6], 0 }
   0xc   :  { %18 = vsyncpa [#allocation6 + $0x1], 0 }
   0xd   :  { %19 = vsyncpa [#allocation9], 0 }
   0xe   :  { %21 = vsyncpa [#allocation9 + $0x1], 0 }
   0xf   :  { %22 = vsyncpa [#allocation12], 0 }
  0x10   :  { %24 = vsyncpa [#allocation12 + $0x1], 0 }
  0x11   :  { %25 = vsyncpa [#allocation15], 0 }
  0x12   :  { %26 = vsyncpa [#allocation18], 0 }
  0x13   :  { %27 = vsyncpa [#allocation7], 0 }
  0x14   :  { %29 = vsyncpa [#allocation7 + $0x1], 0  ;;  %s2885_s17 = smov 0   ;;  %s2887_s18 = smov 0  }
  0x15   :  { %s2889_s19 = smov 0   ;;  %s2891_s20 = smov 0  }
  0x16   :  { %s2893_s21 = smov 0   ;;  %s2895_s22 = smov 0  }
  0x17   :  { %s2897_s23 = smov 0   ;;  %s2899_s24 = smov 0  }
  0x18   :  { %s2901_s25 = smov 0   ;;  %s2903_s26 = smov 0  }
  0x19   :  { %s2905_s27 = smov 0  }
  0x1a LB: > { %3505 = sst [smem:[#allocation27_spill]] %s2767_s18  ;;  %s2941_s28 = sadd.s32 4294967295, %s2803_s27   ;;  %s2803_s27 = sphi %s2905_s27, %s35_s27   ;;  %s2799_s26 = sphi %s2903_s26, %s3567_s26   ;;  %s2795_s25 = sphi %s2901_s25, %s3574_s25   ;;  %s2791_s24 = sphi %s2899_s24, %s3565_s24   ;;  %s2787_s23 = sphi %s2897_s23, %s3573_s23   ;;  %s2783_s22 = sphi %s2895_s22, %s3572_s22   ;;  %s2779_s21 = sphi %s2893_s21, %s3571_s21   ;;  %s2775_s20 = sphi %s2891_s20, %s3570_s20   ;;  %s2771_s19 = sphi %s2889_s19, %s3569_s19   ;;  %s2767_s18 = sphi %s2887_s18, %s3568_s18   ;;  %s2763_s17 = sphi %s2885_s17, %s3563_s17  }
  0x1b   : > { %3506 = sst [smem:[#allocation28_spill]] %s2775_s20  ;;  %p2031_p0 = scmp.ge.s32.totalorder %s2803_s27, 1 }
  0x1c   : > { %3507 = sst [smem:[#allocation29_spill]] %s2787_s23  ;;  %p3479_p1 = scmp.eq.s32.totalorder %s2941_s28, 0 }
  0x1d   : > { %3508 = sst [smem:[#allocation30_spill]] %s2791_s24  ;;  %p335_p2 = scmp.lt.s32.totalorder %s2803_s27, 5 }
  0x1e   : > { %3509 = sst [smem:[#allocation31_spill]] %s2799_s26  ;;  %s2805_s30 = smov [#allocation13]  }
  0x1f   : > { %3510 = sst [smem:[#allocation32_spill]] %s2941_s28  ;;  %p2946_p3 = pnand %p2031_p0, %p335_p2 }
  0x20   : > { %s353_s12 = sshll.u32 %s2805_s30, 4  ;;  %s2806_s14 = smov [#allocation14]   ;;  %s354_s12 = int_to_ptr.vmem [resolvable:$true] %s353_s12 }
  0x21   : > { %p2278_p4 = pneg %p2946_p3  ;;  %s366_s15 = sshll.u32 %s2806_s14, 4  ;;  %s367_s15 = int_to_ptr.vmem [resolvable:$true] %s366_s15 }
  0x22   : > { %s2458_s16 = scalar_lea.vmem %s354_s12, 512  ;;  %p2466_p10 = scmp.lt.s32.totalorder %s354_s12, %s354_s12 }
  0x23   : > { %p2954_p5 = pnand %p2278_p4, %p3479_p1  ;;  %p2459_p7 = scmp.ne.s32.totalorder %s354_s12, %s2458_s16 }
  0x24   : > { %p2467_p11 = scmp.lt.s32.totalorder %s2458_s16, %s2458_s16 }
  0x25   : > { %p2449_p6 = pneg %p2954_p5 }
  0x26   : > { %p2468_p12 = por %p2467_p11, %p2466_p10 }
  0x27   : > { %p2461_p8 = pnand %p2459_p7, %p2449_p6 }
  0x29   : > { %p2462_p9 = pneg %p2461_p8 }
  0x2b   : > { %p2469_p13 = pnand %p2468_p12, %p2462_p9 }
  0x2d   : > { %2472 = shalt.err (!%p2469_p13)
}
  0x2e   : > { %s3474_s30 = smov 128   ;;  %s3476_s11 = smov 8  }
  0x2f   : > { %s3513_s6 = sld [smem:[#allocation42_spill]]  ;;  %s2484_s24 = scalar_lea.vmem %s367_s15, 512 }
  0x30   : > { %p2485_p0 = scmp.ne.s32.totalorder %s367_s15, %s2484_s24  ;;  %p2492_p7 = scmp.lt.s32.totalorder %s367_s15, %s367_s15 }
  0x31   : > { %p2493_p8 = scmp.lt.s32.totalorder %s2484_s24, %s2484_s24 }
  0x32   : > { %p2487_p2 = pnand %p2485_p0, %p2449_p6 }
  0x33   : > { %p2494_p9 = por %p2493_p8, %p2492_p7 }
  0x34   : > { %p2488_p4 = pneg %p2487_p2 }
  0x35   : > { %2281 = dma.hbm_to_vmem [thread:$0]  (!%p2954_p5), %s3513_s6, 512, %s354_s12, [#allocation12], %s3474_s30, %s3474_s30, %s3476_s11  }
  0x36   : > { %p2495_p10 = pnand %p2494_p9, %p2488_p4 }
  0x38   : > { %2498 = shalt.err (!%p2495_p10)
}
  0x39   : > { %s3514_s7 = sld [smem:[#allocation43_spill]]  ;;  %p64_p11 = scmp.eq.s32.totalorder %s2803_s27, 0 }
  0x3a   : > { %p89_p12 = scmp.ne.s32.totalorder %s2771_s19, %s2767_s18  ;;  %p95_p13 = scmp.ne.s32.totalorder %s2767_s18, %s2763_s17 }
  0x3b   : > { %p3478_p0 = scmp.lt.s32.totalorder %s2803_s27, 4  ;;  %s431_s12 = sand.u32 1, %s2771_s19  }
  0x3c   : > { %p91_p2 = por %p89_p12, %p64_p11  ;;  %p2994_p4 = por %p95_p13, %p3479_p1 }
  0x3d   : > { %s2040_s14 = sshll.u32 %s431_s12, 4  ;;  %s2104_s16 = sshll.u32 %s2799_s26, 8 }
  0x3e   : > { %s3515_s24 = scalar_select %p2994_p4, 1, 0 }
  0x3f   : > { %2284 = dma.hbm_to_vmem [thread:$0]  (!%p2954_p5), %s3514_s7, 512, %s367_s15, [#allocation15], %s3474_s30, %s3474_s30, %s3476_s11  }
  0x40   : > { %3516 = sst [smem:[#allocation33_spill]] %s3515_s24  ;;  %s433_s10 = scalar_lea.vmem [#allocation8], %s2040_s14 }
  0x41   : > { %s3517_s1 = sld [smem:[#allocation38_spill]]  ;;  %s440_s30 = sshll.u32 %s433_s10, 4  ;;  %s441_s30 = int_to_ptr.vmem [resolvable:$true] %s440_s30 }
  0x42   : > { %p3005_p7 = pnand %p3478_p0, %p91_p2  ;;  %s3519_s2 = sld [smem:[#allocation39_spill]] }
  0x43   : > { %s3520_s12 = sand.u32 1, %s2803_s27   ;;  %s2512_s5 = scalar_lea.vmem %s441_s30, 256 }
  0x44   : > { %s3016_s4 = scalar_lea.sflag [#allocation9], %s3520_s12  ;;  %p3480_p8 = pneg %p3005_p7 }
  0x45   : > { %p2513_p9 = scmp.ne.s32.totalorder %s441_s30, %s2512_s5  ;;  %s2809_s6 = smov [#allocation8]  }
  0x46   : > { %s2517_s10 = sshll.u32 %s2809_s6, 4  ;;  %s2518_s10 = int_to_ptr.vmem [resolvable:$false] %s2517_s10 }
  0x47   : > { %s439_s15 = scalar_lea.hbm %s3517_s1, %s2104_s16  ;;  %p2515_p10 = pnand %p2513_p9, %p3480_p8 }
  0x48   : > { %s3012_s7 = scalar_lea.hbm %s3519_s2, %s2104_s16  ;;  %s2519_s1 = scalar_lea.vmem %s2518_s10, 512 }
  0x49   : > { %p2516_p12 = pneg %p2515_p10  ;;  %p2520_p13 = scmp.lt.s32.totalorder %s441_s30, %s2518_s10 }
  0x4a   : > { %p2521_p2 = scmp.lt.s32.totalorder %s2519_s1, %s2512_s5 }
  0x4c   : > { %p2522_p0 = por %p2521_p2, %p2520_p13 }
  0x4e   : > { %p2523_p1 = pnand %p2522_p0, %p2516_p12 }
  0x50   : > { %2526 = shalt.err (!%p2523_p1)
}
  0x51   : > { %s3521_s11 = smov 8   ;;  %s3522_s23 = smov 128  }
  0x52   : > { %2297 = dma.hbm_to_vmem [thread:$0]  (!%p3005_p7), %s439_s15, 256, %s441_s30, %s3016_s4, %s3522_s23, %s3522_s23, %s3521_s11  }
  0x53   : > { %s454_s16 = scalar_lea.vmem [#allocation10], %s2040_s14  ;;  %s2810_s6 = smov [#allocation16]  }
  0x54   : > { %s461_s12 = sshll.u32 %s454_s16, 4  ;;  %s379_s2 = sshll.u32 %s2810_s6, 4  ;;  %s3029_s12 = int_to_ptr.vmem [resolvable:$true] %s461_s12  ;;  %s380_s2 = int_to_ptr.vmem [resolvable:$true] %s379_s2 }
  0x55   : > { %s2538_s10 = scalar_lea.vmem %s380_s2, 512  ;;  %p2546_p10 = scmp.lt.s32.totalorder %s380_s2, %s380_s2 }
  0x56   : > { %p2539_p9 = scmp.ne.s32.totalorder %s380_s2, %s2538_s10  ;;  %p2547_p12 = scmp.lt.s32.totalorder %s2538_s10, %s2538_s10 }
  0x58   : > { %p2541_p1 = pnand %p2539_p9, %p2449_p6  ;;  %p2548_p13 = por %p2547_p12, %p2546_p10 }
  0x5a   : > { %p2542_p0 = pneg %p2541_p1 }
  0x5c   : > { %p2549_p2 = pnand %p2548_p13, %p2542_p0 }
  0x5e   : > { %2552 = shalt.err (!%p2549_p2)
}
  0x5f   : > { %s3523_s8 = sld [smem:[#allocation44_spill]]  ;;  %s2811_s14 = smov [#allocation17]  }
  0x60   : > { %s392_s15 = sshll.u32 %s2811_s14, 4  ;;  %s393_s15 = int_to_ptr.vmem [resolvable:$true] %s392_s15 }
  0x61   : > { %s2564_s5 = scalar_lea.vmem %s393_s15, 512  ;;  %p2572_p10 = scmp.lt.s32.totalorder %s393_s15, %s393_s15 }
  0x62   : > { %p2565_p9 = scmp.ne.s32.totalorder %s393_s15, %s2564_s5  ;;  %p2573_p12 = scmp.lt.s32.totalorder %s2564_s5, %s2564_s5 }
  0x64   : > { %p2567_p1 = pnand %p2565_p9, %p2449_p6  ;;  %p2574_p13 = por %p2573_p12, %p2572_p10 }
  0x65   : > { %2287 = dma.hbm_to_vmem [thread:$0]  (!%p2954_p5), %s3523_s8, 512, %s380_s2, [#allocation15], %s3522_s23, %s3522_s23, %s3521_s11  }
  0x66   : > { %p2568_p0 = pneg %p2567_p1 }
  0x68   : > { %p2575_p2 = pnand %p2574_p13, %p2568_p0 }
  0x6a   : > { %2578 = shalt.err (!%p2575_p2)
}
  0x6b   : > { %s3524_s9 = sld [smem:[#allocation45_spill]]  ;;  %s2030_s13 = sadd.s32 4294967294, %s2803_s27  }
  0x6c   : > { %s44_s6 = sadd.s32 1, %s2795_s25  ;;  %s47_s10 = sadd.s32 1, %s2799_s26 }
  0x6d   : > { %p45_p6 = scmp.ge.s32.totalorder %s44_s6, 2  ;;  %s56_s1 = sadd.s32 1, %s2783_s22 }
  0x6e   : > { %p63_p9 = scmp.ne.s32.totalorder %s2783_s22, %s2779_s21  ;;  %p69_p0 = scmp.ne.s32.totalorder %s2779_s21, %s2775_s20 }
  0x6f   : > { %s3576_s6 = smov (%p45_p6, %s44_s6), 0  ;;  %s3578_s10 = smov (!%p45_p6, %s47_s10), %s2799_s26 }
  0x70   : > { %3525 = sst [smem:[#allocation34_spill]] %s3576_s6  ;;  %s52_s30 = ssub.s32 %s2795_s25, %s3576_s6 }
  0x71   : > { %2290 = dma.hbm_to_vmem [thread:$0]  (!%p2954_p5), %s3524_s9, 512, %s393_s15, [#allocation18], %s3522_s23, %s3522_s23, %s3521_s11  }
  0x72   : > { %p3066_p1 = por %p64_p11, %p63_p9  ;;  %p49_p5 = scmp.ge.s32.totalorder %s3578_s10, 2 }
  0x73   : > { %p322_p10 = scmp.eq.s32.totalorder %s2941_s28, 3  ;;  %p328_p12 = scmp.eq.s32.totalorder %s2030_s13, 3 }
  0x74   : > { %s3580_s10 = smov (%p49_p5, %s3578_s10), 0  ;;  %p3528_p13 = scmp.eq.s32.totalorder %s2941_s28, 0 }
  0x75   : > { %3527 = sst [smem:[#allocation35_spill]] %s3580_s10  ;;  %p3081_p6 = por %p322_p10, %p63_p9 }
  0x76   : > { %p3077_p2 = por %p3528_p13, %p69_p0  ;;  %s51_s2 = ssub.s32 %s2799_s26, %s3580_s10 }
  0x77   : > { %s3530_s5 = scalar_select %p3081_p6, 1, 0 }
  0x78   : > { %p3087_p11 = por %p328_p12, %p69_p0  ;;  %s53_s13 = sor.u32 %s52_s30, %s51_s2 }
  0x79   : > { %3531 = sst [smem:[#allocation36_spill]] %s3530_s5  ;;  %p80_p5 = scmp.eq.s32.totalorder %s51_s2, 0 }
  0x7a   : > { %s3532_s16 = scalar_select %p3087_p11, 1, 0 }
  0x7b   : > { %p54_p8 = scmp.eq.s32.totalorder %s53_s13, 0  ;;  %s3092_s8 = sand.u32 1, %s2783_s22  }
  0x7c   : > { %3533 = sst [smem:[#allocation37_spill]] %s3532_s16  ;;  %s3534_s9 = sadd.s32 1, %s2771_s19 }
  0x7d   : > { %s3097_s6 = scalar_select %p80_p5, %s2771_s19, %s3534_s9  }
  0x7e   : > { %s3100_s20 = scalar_select %p54_p8, %s2783_s22, %s56_s1  }
  0x7f   : > { %s2037_s10 = sshll.u32 %s3092_s8, 3  ;;  %s2038_s5 = sshll.u32 %s2799_s26, 1 }
  0x80   : > { %s3105_s24 = sadd.s32 %s2795_s25, %s2038_s5  ;;  %s413_s16 = scalar_lea.vmem [#allocation5], %s2037_s10 }
  0x81   : > { %s422_s30 = sshll.u32 %s413_s16, 4  ;;  %s2039_s2 = sshll.u32 %s3105_s24, 7  ;;  %s423_s30 = int_to_ptr.vmem [resolvable:$true] %s422_s30 }
  0x82   : > { %s420_s28 = scalar_lea.hbm %s3461_s0, %s2039_s2  ;;  %p3535_p9 = scmp.lt.s32.totalorder %s2803_s27, 4 }
  0x83   : > { %s2048_s1 = sshll.u32 %s3105_s24, 5  ;;  %s2046_s5 = sshll.u32 %s3092_s8, 1 }
  0x84   : > { %p3115_p0 = pnand %p3535_p9, %p3066_p1  ;;  %s410_s26 = scalar_lea.sflag [#allocation6], %s3092_s8 }
  0x85   : > { %s2592_s10 = scalar_lea.vmem %s423_s30, 128  ;;  %s2812_s18 = smov [#allocation5]  }
  0x86   : > { %p3494_p8 = pneg %p3115_p0  ;;  %p2593_p10 = scmp.ne.s32.totalorder %s423_s30, %s2592_s10 }
  0x87   : > { %s2597_s14 = sshll.u32 %s2812_s18, 4  ;;  %s2598_s14 = int_to_ptr.vmem [resolvable:$false] %s2597_s14 }
  0x88   : > { %p2595_p12 = pnand %p2593_p10, %p3494_p8  ;;  %s2599_s16 = scalar_lea.vmem %s2598_s14, 256 }
  0x89   : > { %p2600_p1 = scmp.lt.s32.totalorder %s423_s30, %s2598_s14  ;;  %p2601_p5 = scmp.lt.s32.totalorder %s2599_s16, %s2592_s10 }
  0x8a   : > { %p2596_p13 = pneg %p2595_p12 }
  0x8b   : > { %p2602_p9 = por %p2601_p5, %p2600_p1 }
  0x8d   : > { %p2603_p11 = pnand %p2602_p9, %p2596_p13 }
  0x8f   : > { %2606 = shalt.err (!%p2603_p11)
}
  0x90   : > { %2294 = dma.hbm_to_vmem [thread:$0]  (!%p3115_p0), %s420_s28, 128, %s423_s30, %s410_s26  }
  0x91   : > { %s2620_s2 = scalar_lea.vmem %s3029_s12, 256  ;;  %p3537_p10 = pneg %p3005_p7 }
  0x92   : > { %p2621_p6 = scmp.ne.s32.totalorder %s3029_s12, %s2620_s2  ;;  %s2813_s13 = smov [#allocation10]  }
  0x93   : > { %s2625_s18 = sshll.u32 %s2813_s13, 4  ;;  %s2626_s18 = int_to_ptr.vmem [resolvable:$false] %s2625_s18 }
  0x94   : > { %p2623_p12 = pnand %p2621_p6, %p3537_p10  ;;  %s2627_s10 = scalar_lea.vmem %s2626_s18, 512 }
  0x95   : > { %p2628_p1 = scmp.lt.s32.totalorder %s3029_s12, %s2626_s18  ;;  %p2629_p13 = scmp.lt.s32.totalorder %s2627_s10, %s2620_s2 }
  0x96   : > { %p2624_p8 = pneg %p2623_p12 }
  0x97   : > { %p2630_p11 = por %p2629_p13, %p2628_p1 }
  0x99   : > { %p2631_p5 = pnand %p2630_p11, %p2624_p8 }
  0x9b   : > { %2634 = shalt.err (!%p2631_p5)
}
  0x9c   : > { %2300 = dma.hbm_to_vmem [thread:$0]  (!%p3005_p7), %s3012_s7, 256, %s3029_s12, %s3016_s4, %s3522_s23, %s3522_s23, %s3521_s11  }
  0x9d   : > { %s482_s30 = scalar_lea.hbm %s3464_s3, %s2048_s1  ;;  %s475_s14 = scalar_lea.vmem [#allocation11], %s2046_s5 }
  0x9e   : > { %s484_s16 = sshll.u32 %s475_s14, 4  ;;  %s3538_s17 = sand.u32 1, %s2803_s27   ;;  %s485_s16 = int_to_ptr.vmem [resolvable:$true] %s484_s16 }
  0x9f   : > { %s472_s2 = scalar_lea.sflag [#allocation12], %s3538_s17  ;;  %s2648_s13 = scalar_lea.vmem %s485_s16, 32 }
  0xa0   : > { %p2649_p6 = scmp.ne.s32.totalorder %s485_s16, %s2648_s13  ;;  %p3539_p8 = pneg %p3115_p0 }
  0xa1   : > { %s2814_s18 = smov [#allocation11]  }
  0xa2   : > { %p2651_p9 = pnand %p2649_p6, %p3539_p8  ;;  %s2653_s10 = sshll.u32 %s2814_s18, 4  ;;  %s2654_s10 = int_to_ptr.vmem [resolvable:$false] %s2653_s10 }
  0xa3   : > { %s2655_s4 = scalar_lea.vmem %s2654_s10, 64  ;;  %p2656_p7 = scmp.lt.s32.totalorder %s485_s16, %s2654_s10 }
  0xa4   : > { %p2652_p10 = pneg %p2651_p9  ;;  %p2657_p12 = scmp.lt.s32.totalorder %s2655_s4, %s2648_s13 }
  0xa6   : > { %p2658_p1 = por %p2657_p12, %p2656_p7 }
  0xa8   : > { %p2659_p13 = pnand %p2658_p1, %p2652_p10 }
  0xaa   : > { %2662 = shalt.err (!%p2659_p13)
}
  0xab   : > { %2303 = dma.hbm_to_vmem [thread:$0]  (!%p3115_p0), %s482_s30, 32, %s485_s16, %s472_s2  }
  0xac   : > { %493 = sbr.rel (%p2946_p3) target bundleno = 2558 (0x9fe), region = 64  ;;  %s3160_s7 = sand.u32 (!%p2946_p3), 1, %s2779_s21  }
  0xad   : > { %s2050_s8 = sshll.u32 (!%p2946_p3), %s3160_s7, 3  ;;  %s496_s24 = scalar_lea.sflag (!%p2946_p3), [#allocation6], %s3160_s7 }
  0xae   : > { %s3164_s11 = scalar_lea.vmem (!%p2946_p3), [#allocation5], %s2050_s8 }
  0xb1   : > { %2734 = dma.done.wait (%p3077_p2), %s496_s24, 128  }
  0xb2   : > { %2736 = vsyncadd (%p3077_p2), %s496_s24, 4294967168  ;;  %s3540_s23 = sld [smem:[#allocation32_spill]] }
  0xb3   : > { %s3541_s12 = sld [smem:[#allocation27_spill]] }
  0xb8   : > { %s504_s29 = sand.u32 1, %s3540_s23  }
  0xb9   : > { %s506_s1 = sand.u32 1, %s3541_s12   ;;  %s505_s26 = scalar_lea.sflag [#allocation9], %s504_s29 }
  0xba   : > { %s2051_s5 = sshll.u32 %s506_s1, 4 }
  0xbb   : > { %s508_s28 = scalar_lea.vmem [#allocation8], %s2051_s5 }
  0xbc   : > { %2738 = dma.done.wait (%p2994_p4), %s505_s26, 512  }
  0xbd   : > { %2740 = vsyncadd (%p2994_p4), %s505_s26, 4294966784  ;;  %s2053_s30 = sshll.u32 %s3160_s7, 1  ;;  %s517_s14 = scalar_lea.vmem [#allocation10], %s2051_s5 }
  0xbe   : > { %s523_s16 = scalar_lea.sflag [#allocation12], %s504_s29  ;;  %s3177_s17 = scalar_lea.vmem [#allocation11], %s2053_s30 }
  0xbf   : > { %2742 = dma.done.wait (%p3077_p2), %s523_s16, 32  }
  0xc0   : > { %2744 = vsyncadd (%p3077_p2), %s523_s16, 4294967264  ;;  %p3543_p3 = scmp.eq.s32.totalorder %s3540_s23, 0 }
  0xc2   : > { %2746 = dma.done.wait (%p3543_p3), [#allocation12], 512   ;;  %p3544_p0 = pmov %p3543_p3 }
  0xc4   : > { %2748 = vsyncadd (%p3544_p0), [#allocation12], 4294966784  ;;  %p3545_p4 = pmov %p3544_p0 }
  0xc5   : > { %p3546_p11 = pmov %p3544_p0 }
  0xc6   : > { %2750 = dma.done.wait (%p3545_p4), [#allocation15], 1024  }
  0xc7   : > { %2752 = vsyncadd (%p3546_p11), [#allocation15], 4294966272  ;;  %p3547_p5 = pmov %p3544_p0 }
  0xc8   : > { %p3548_p6 = pmov %p3544_p0 }
  0xc9   : > { %2754 = dma.done.wait (%p3547_p5), [#allocation18], 512  }
  0xca   : > { %2756 = vsyncadd (%p3548_p6), [#allocation18], 4294966784  ;;  %s3549_s13 = sld [smem:[#allocation40_spill]]  ;;  %s3205_s24 = scalar_lea.vmem [#allocation19], %s2050_s8 }
  0xcb   : > { %s3550_s4 = sld [smem:[#allocation41_spill]] }
  0xcc   : > { %s3551_s12 = sld [smem:[#allocation29_spill]] }
  0xd0   : > { %v3198_v0 = vld [vmem:[%s3549_s13] sm:$0x1] }
  0xd1   : > { %v3203_v1 = vld [vmem:[%s3550_s4] sm:$0x1] }
  0xd2   : > { %p2059_p2 = scmp.ne.s32.totalorder %s3551_s12, 0 }
  0xd4   : > { %603 = sbr.rel (%p2059_p2) target bundleno = 592 (0x250), region = 100 }
  0xd9   : > { %v3208_v2 = vld [vmem:[%s508_s28 + $0x8] sm:$0xff]  ;;  %vm606_vm0 = vcmask 261120   ;;  %v3210_v3 = vld [vmem:[%s508_s28] sm:$0xff]  ;;  %v639_v52 = vlaneseq }
  0xda   : > { %v3212_v4 = vld [vmem:[%s517_s14 + $0x8] sm:$0xff]  ;;  %v610_v5 = vsel %vm606_vm0, %v3208_v2, 0.0  ;;  %v607_v6 = vsel %vm606_vm0, %v3210_v3, 0.0  ;;  %v3218_v7 = vld [vmem:[%s517_s14] sm:$0xff]  ;;  %v616_v11 = vmul.f32 %v3210_v3, %v3210_v3  ;;  %v617_v15 = vmul.f32 %v3208_v2, %v3208_v2 }
  0xdb   : > { %611 = vadd.xlane.f32.xlu1 %v610_v5  ;;  %608 = vadd.xlane.f32.xlu0 %v607_v6  ;;  %v659_v8 = vsel %vm606_vm0, %v3212_v4, 0.0  ;;  %v656_v9 = vsel %vm606_vm0, %v3218_v7, 0.0  ;;  %v664_v10 = vmul.f32 %v3218_v7, %v3218_v7  ;;  %v665_v14 = vmul.f32 %v3212_v4, %v3212_v4  ;;  %v693_v18 = vld [vmem:[#allocation14 + $0x18] sm:$0xff]  ;;  %v692_v20 = vld [vmem:[#allocation14 + $0x10] sm:$0xff]  ;;  %v691_v22 = vld [vmem:[#allocation14 + $0x8] sm:$0xff] }
  0xdc   : > { %v618_v13 = vsel %vm606_vm0, %v616_v11, 0.0  ;;  %v621_v17 = vsel %vm606_vm0, %v617_v15, 0.0  ;;  %v792_v19 = vld [vmem:[#allocation16 + $0x18] sm:$0xff]  ;;  %2152 = vmatprep.subr.msk.mxu0 %vm606_vm0, %v693_v18  ;;  %v791_v21 = vld [vmem:[#allocation16 + $0x10] sm:$0xff]  ;;  %v790_v23 = vld [vmem:[#allocation16 + $0x8] sm:$0xff]  ;;  %v640_v55 = vshrl.u32 %v639_v52, 7 }
  0xdd   : > { %v666_v12 = vsel %vm606_vm0, %v664_v10, 0.0  ;;  %v669_v16 = vsel %vm606_vm0, %v665_v14, 0.0  ;;  %2163 = vmatprep.subr.msk.mxu1 %vm606_vm0, %v792_v19  ;;  %2153 = vmatpush3.xpose.msk.msra.mxu0 %vm606_vm0, %v693_v18  ;;  %v690_v24 = vld [vmem:[#allocation14] sm:$0xff] }
  0xde   : > { %2164 = vmatpush3.xpose.msk.msra.mxu1 %vm606_vm0, %v792_v19  ;;  %2154 = vmatprep.subr.msk.mxu0 %vm606_vm0, %v692_v20  ;;  %v789_v25 = vld [vmem:[#allocation16] sm:$0xff]  ;;  %v641_v56 = vsub.s32 0, %v640_v55 }
  0xdf   : > { %660 = vadd.xlane.f32.xlu1 %v659_v8  ;;  %657 = vadd.xlane.f32.xlu0 %v656_v9 }
  0xe0   : > { %2165 = vmatprep.subr.msk.mxu1 %vm606_vm0, %v791_v21  ;;  %v642_v58 = vrot.slane %v3198_v0, %v641_v56  ;;  %v650_v62 = vrot.slane %v3203_v1, %v641_v56 }
  0xe1   : > { %2155 = vmatpush3.xpose.msk.msra.mxu0 %vm606_vm0, %v692_v20 }
  0xe2   : > { %2166 = vmatpush3.xpose.msk.msra.mxu1 %vm606_vm0, %v791_v21  ;;  %2156 = vmatprep.subr.msk.mxu0 %vm606_vm0, %v691_v22 }
  0xe3   : > { %667 = vadd.xlane.f32.xlu1 %v666_v12  ;;  %619 = vadd.xlane.f32.xlu0 %v618_v13 }
  0xe4   : > { %2167 = vmatprep.subr.msk.mxu1 %vm606_vm0, %v790_v23 }
  0xe5   : > { %2157 = vmatpush3.xpose.msk.msra.mxu0 %vm606_vm0, %v691_v22 }
  0xe6   : > { %2168 = vmatpush3.xpose.msk.msra.mxu1 %vm606_vm0, %v790_v23  ;;  %2158 = vmatprep.subr.msk.mxu0 %vm606_vm0, %v690_v24 }
  0xe7   : > { %670 = vadd.xlane.f32.xlu1 %v669_v16  ;;  %622 = vadd.xlane.f32.xlu0 %v621_v17 }
  0xe8   : > { %2169 = vmatprep.subr.msk.mxu1 %vm606_vm0, %v789_v25 }
  0xe9   : > { %2159 = vmatpush3.xpose.msk.msra.mxu0 %vm606_vm0, %v690_v24 }
  0xea   : > { %2170 = vmatpush3.xpose.msk.msra.mxu1 %vm606_vm0, %v789_v25 }
 0x164   : > { %v612_v26 = vpop.xlane.xlu1 %611  ;;  %v609_v27 = vpop.xlane.xlu0 %608 }
 0x165   : > { %v614_v30 = vmul.f32 0.03125, %v609_v27  ;;  %v615_v32 = vmul.f32 0.03125, %v612_v26 }
 0x167   : > { %v626_v36 = vmul.f32 %v614_v30, %v614_v30  ;;  %v627_v42 = vmul.f32 %v615_v32, %v615_v32  ;;  %v634_v60 = vsub.f32 %v3210_v3, %v614_v30  ;;  %v635_v10 = vsub.f32 %v3208_v2, %v615_v32 }
 0x168   : > { %v661_v28 = vpop.xlane.xlu1 %660  ;;  %v658_v29 = vpop.xlane.xlu0 %657 }
 0x169   : > { %v662_v31 = vmul.f32 0.03125, %v658_v29  ;;  %v663_v33 = vmul.f32 0.03125, %v661_v28 }
 0x16b   : > { %v674_v37 = vmul.f32 %v662_v31, %v662_v31  ;;  %v675_v43 = vmul.f32 %v663_v33, %v663_v33  ;;  %v682_v57 = vsub.f32 %v3218_v7, %v662_v31  ;;  %v683_v6 = vsub.f32 %v3212_v4, %v663_v33 }
 0x16c   : > { %v668_v34 = vpop.xlane.xlu1 %667  ;;  %v620_v35 = vpop.xlane.xlu0 %619 }
 0x16d   : > { %v672_v38 = vmul.f32 0.03125, %v668_v34  ;;  %v624_v39 = vmul.f32 0.03125, %v620_v35 }
 0x16f   : > { %v676_v40 = vsub.f32 %v672_v38, %v674_v37  ;;  %v628_v41 = vsub.f32 %v624_v39, %v626_v36 }
 0x170   : > { %v671_v44 = vpop.xlane.xlu1 %670  ;;  %v623_v45 = vpop.xlane.xlu0 %622 }
 0x171   : > { %v678_v46 = vadd.f32 1e-05, %v676_v40  ;;  %v630_v47 = vadd.f32 1e-05, %v628_v41  ;;  %v673_v48 = vmul.f32 0.03125, %v671_v44  ;;  %v625_v49 = vmul.f32 0.03125, %v623_v45 }
 0x173   : > { %2421 = vrsqrt.f32 %v678_v46  ;;  %v677_v50 = vsub.f32 %v673_v48, %v675_v43  ;;  %v629_v51 = vsub.f32 %v625_v49, %v627_v42 }
 0x174   : > { %2423 = vrsqrt.f32 %v630_v47 }
 0x175   : > { %v679_v53 = vadd.f32 1e-05, %v677_v50  ;;  %v631_v54 = vadd.f32 1e-05, %v629_v51 }
 0x177   : > { %2425 = vrsqrt.f32 %v679_v53 }
 0x178   : > { %2427 = vrsqrt.f32 %v631_v54 }
 0x180   : > { %v2422_v59 = vpop.eup %2421 }
 0x181   : > { %v2424_v61 = vpop.eup %2423  ;;  %v684_v63 = vmul.f32 %v2422_v59, %v682_v57 }
 0x182   : > { %v636_v5 = vmul.f32 %v2424_v61, %v634_v60 }
 0x183   : > { %v686_v8 = vmul.f32 %v684_v63, %v642_v58 }
 0x184   : > { %v2426_v9 = vpop.eup %2425  ;;  %v644_v11 = vmul.f32 %v642_v58, %v636_v5 }
 0x185   : > { %v2428_v12 = vpop.eup %2427  ;;  %v688_v13 = vadd.f32 %v686_v8, %v650_v62  ;;  %v685_v7 = vmul.f32 %v2426_v9, %v683_v6 }
 0x186   : > { %v652_v14 = vadd.f32 %v650_v62, %v644_v11  ;;  %v637_v15 = vmul.f32 %v2428_v12, %v635_v10 }
 0x187   : > { %2171 = vmatprep.mubr.msk.f32.mxu1 %vm606_vm0, %v688_v13  ;;  %v687_v3 = vmul.f32 %v685_v7, %v642_v58 }
 0x188   : > { %2160 = vmatprep.mubr.msk.f32.mxu0 %vm606_vm0, %v652_v14  ;;  %v645_v16 = vmul.f32 %v642_v58, %v637_v15 }
 0x189   : > { %v689_v17 = vadd.f32 %v687_v3, %v650_v62 }
 0x18a   : > { %v653_v18 = vadd.f32 %v650_v62, %v645_v16 }
 0x18b   : > { %2172 = vmatmul.mubr.msk.f32.vlgmr.msra.gmra.mxu1 %vm606_vm0, %v689_v17 }
 0x18c   : > { %2161 = vmatmul.mubr.msk.f32.vlgmr.msra.gmra.mxu0 %vm606_vm0, %v653_v18 }
 0x24b   : > { %v2173_v4 = vpop.f32.mrf.mxu1 }
 0x24c   : > { %v2162_v2 = vpop.f32.mrf.mxu0  ;;  %887 = vst.msk [vmem:[#allocation3 + $0x8] sm:$0xff] %vm606_vm0, %v2173_v4 }
 0x24d   : > { %788 = vst.msk [vmem:[#allocation2 + $0x8] sm:$0xff] %vm606_vm0, %v2162_v2  ;;  %v877_v19 = vpop.f32.mrf.mxu1 }
 0x24e   : > { %v778_v20 = vpop.f32.mrf.mxu0  ;;  %886 = vst.msk [vmem:[#allocation3] sm:$0xff] %vm606_vm0, %v877_v19 }
 0x24f   : > { %787 = vst.msk [vmem:[#allocation2] sm:$0xff] %vm606_vm0, %v778_v20 }
 0x250 PF: > { %v888_v21 = vld [vmem:[%s3164_s11] sm:$0xff]  ;;  %vm889_vm1 = vcmask 261120   ;;  %v2815_v26 = vmov 0.0   ;;  %vm2816_vm2 = vmmov 0   ;;  %v920_v29 = vld [vmem:[#allocation13] sm:$0xff]  ;;  %vm1015_vm3 = vcmask 64512  }
 0x251   : > { %v890_v22 = vsel %vm889_vm1, %v888_v21, 0.0  ;;  %v895_v23 = vmul.f32 %v888_v21, %v888_v21  ;;  %v923_v25 = vld [vmem:[#allocation13 + $0x18] sm:$0xff]  ;;  %2174 = vmatprep.subr.mxu0 %v2815_v26  ;;  %2182 = vmatprep.mubr.msk.f32.mxu0 %vm2816_vm2, %v2815_v26  ;;  %v922_v27 = vld [vmem:[#allocation13 + $0x10] sm:$0xff]  ;;  %v921_v28 = vld [vmem:[#allocation13 + $0x8] sm:$0xff]  ;;  %s2817_s8 = smov 120   ;;  %v907_v39 = vlaneseq  ;;  %s2818_s11 = smov 112  }
 0x252   : > { %891 = vadd.xlane.f32.xlu0 %v890_v22  ;;  %2175 = vmatpush3.xpose.msk.msra.mxu0 %vm889_vm1, %v923_v25  ;;  %s2819_s23 = smov 104   ;;  %v1013_v51 = vld [vmem:[%s3177_s17] sm:$0x3]  ;;  %v2820_v52 = vmov 0   ;;  %vm1099_vm6 = vcmask 130048   ;;  %s2821_s9 = smov 16  }
 0x253   : > { %v896_v24 = vsel %vm889_vm1, %v895_v23, 0.0  ;;  %2185 = vmatprep.subr.mxu1 %v2815_v26  ;;  %2176 = vmatprep.subr.mxu0 %v2815_v26  ;;  %v908_v40 = vshrl.u32 %v907_v39, 7  ;;  %v3296_v50 = vld [vmem:[#allocation3 + $0x8] sm:$0xff]  ;;  %vm1014_vm4 = vnez %v1013_v51  ;;  %s2822_s29 = smov 8   ;;  %vm1364_vm7 = vcmask 130112   ;;  %s3554_s1 = sld [smem:[#allocation30_spill]] }
 0x254   : > { %2189 = vmatprep.mubr.msk.f32.mxu1 %vm2816_vm2, %v2815_v26  ;;  %v1010_v30 = vld [vmem:[#allocation2 + $0x8] sm:$0xff]  ;;  %v1095_v53 = vsel %vm1014_vm4, 16843009, %v2820_v52  ;;  %vm1543_vm8 = vcmask 195712   ;;  %s3555_s5 = sld [smem:[#allocation29_spill]]  ;;  %s2823_s26 = smov 24  }
 0x255   : > { %2186 = vmatpush3.xpose.msk.msra.mxu1 %vm1015_vm3, %v1010_v30  ;;  %1189 = vrot.lane.b32.xlu1 %v1010_v30, %s2817_s8  ;;  %v909_v41 = vsub.s32 0, %v908_v40  ;;  %v1096_v54 = vunpack.c.0.s8 %v1095_v53  ;;  %vm1722_vm9 = vcmask 261312   ;;  %s3556_s28 = sld [smem:[#allocation36_spill]]  ;;  %s1838_s13 = sshll.u32 %s3205_s24, 4  ;;  %s1839_s13 = int_to_ptr.vmem [resolvable:$true] %s1838_s13 }
 0x256   : > { %897 = vadd.xlane.f32.xlu0 %v896_v24  ;;  %2177 = vmatpush3.xpose.msk.msra.mxu0 %vm889_vm1, %v922_v27  ;;  %v1009_v31 = vld [vmem:[#allocation2] sm:$0xff]  ;;  %s3557_s15 = sld [smem:[#allocation46_spill]] }
 0x257   : > { %2178 = vmatprep.subr.mxu0 %v2815_v26  ;;  %2187 = vmatprep.subr.mxu1 %v2815_v26  ;;  %v910_v43 = vrot.slane %v3198_v0, %v909_v41  ;;  %v917_v46 = vrot.slane %v3203_v1, %v909_v41  ;;  %v3301_v1 = vld [vmem:[#allocation3] sm:$0xff]  ;;  %vm3314_vm5 = vcmp.ne.s32.totalorder %v1096_v54, 0  ;;  %s3558_s4 = sld [smem:[#allocation47_spill]] }
 0x259   : > { %2188 = vmatpush3.xpose.msk.msra.mxu1 %vm1015_vm3, %v1009_v31  ;;  %s2100_s30 = sshll.u32 %s3554_s1, 1 }
 0x25a   : > { %2179 = vmatpush3.xpose.msk.msra.mxu0 %vm889_vm1, %v921_v28  ;;  %2192 = vmatprep.subr.mxu1 %v2815_v26  ;;  %s1834_s14 = sadd.s32 %s3555_s5, %s2100_s30 }
 0x25b   : > { %2180 = vmatprep.subr.mxu0 %v2815_v26  ;;  %s2101_s2 = sshll.u32 %s1834_s14, 7  ;;  %p3559_p9 = scmp.ne.s32.totalorder %s3556_s28, 0 }
 0x25d   : > { %s3403_s12 = scalar_lea.hbm %s3558_s4, %s2101_s2 }
 0x25e   : > { %2181 = vmatpush3.xpose.msk.msra.mxu0 %vm889_vm1, %v920_v29 }
 0x25f   : > { %2206 = vmatprep.subr.mxu0 %v2815_v26 }
 0x26c   : > { %1187 = vrot.lane.b32.xlu0 %v1009_v31, %s2817_s8 }
 0x2c7   : > { %v1190_v60 = vpop.permute.xlu1 %1189 }
 0x2db   : > { %v892_v32 = vpop.xlane.xlu0 %891 }
 0x2dc   : > { %v894_v33 = vmul.f32 0.03125, %v892_v32 }
 0x2de   : > { %v900_v35 = vmul.f32 %v894_v33, %v894_v33  ;;  %v904_v42 = vsub.f32 %v888_v21, %v894_v33 }
 0x2df   : > { %v898_v34 = vpop.xlane.xlu0 %897 }
 0x2e0   : > { %v899_v36 = vmul.f32 0.03125, %v898_v34 }
 0x2e2   : > { %v901_v37 = vsub.f32 %v899_v36, %v900_v35 }
 0x2e3   : > { %v1188_v6 = vpop.permute.xlu0 %1187 }
 0x2e4   : > { %v902_v38 = vadd.f32 1e-05, %v901_v37 }
 0x2e6   : > { %2429 = vrsqrt.f32 %v902_v38 }
 0x2f3   : > { %v2430_v44 = vpop.eup %2429 }
 0x2f4   : > { %v905_v45 = vmul.f32 %v2430_v44, %v904_v42 }
 0x2f6   : > { %v912_v47 = vmul.f32 %v910_v43, %v905_v45 }
 0x2f8   : > { %v919_v48 = vadd.f32 %v917_v46, %v912_v47 }
 0x2fa   : > { %2183 = vmatmul.mubr.msk.f32.vlgmr.msra.gmra.mxu0 %vm889_vm1, %v919_v48 }
 0x2fb   : > { %2210 = vmatprep.mubr.msk.f32.mxu0 %vm2816_vm2, %v2815_v26 }
 0x3ba   : > { %v1005_v49 = vpop.f32.mrf.mxu0 }
 0x3bb   : > { %1366 = vrot.lane.b32.xlu0 %v1005_v49, %s2818_s11  ;;  %2190 = vmatmul.mubr.msk.f32.vlgmr.msra.gmra.mxu1 %vm1015_vm3, %v1005_v49 }
 0x3bc   : > { %v2184_v0 = vpop.f32.mrf.mxu0  ;;  %2193 = vmatpush3.msra.mxu1 %v3296_v50  ;;  %2196 = vmatprep.mubr.msk.f32.mxu1 %vm2816_vm2, %v2815_v26 }
 0x3bd   : > { %2194 = vmatprep.subr.mxu1 %v2815_v26 }
 0x3be   : > { %2195 = vmatpush3.msra.mxu1 %v3301_v1 }
 0x3bf   : > { %1460 = vrot.lane.b32.xlu0 %v3296_v50, %s2818_s11  ;;  %2199 = vmatprep.subr.mxu1 %v2815_v26 }
 0x3c3   : > { %1458 = vrot.lane.b32.xlu0 %v3301_v1, %s2818_s11 }
 0x3c7   : > { %1549 = vrot.lane.b32.xlu0 %v1010_v30, %s2819_s23 }
 0x3cb   : > { %1547 = vrot.lane.b32.xlu0 %v1009_v31, %s2819_s23 }
 0x3cf   : > { %1545 = vrot.lane.b32.xlu0 %v1005_v49, %s2819_s23 }
 0x42d   : > { %v1367_v10 = vpop.permute.xlu0 %1366 }
 0x431   : > { %v1461_v12 = vpop.permute.xlu0 %1460 }
 0x435   : > { %v1459_v13 = vpop.permute.xlu0 %1458 }
 0x439   : > { %v1550_v20 = vpop.permute.xlu0 %1549 }
 0x43d   : > { %v1548_v21 = vpop.permute.xlu0 %1547 }
 0x441   : > { %v1546_v22 = vpop.permute.xlu0 %1545 }
 0x47b   : > { %v1091_v56 = vpop.f32.mrf.mxu1 }
 0x47c   : > { %v1098_v57 = vsel %vm3314_vm5, -1e+09, %v1091_v56 }
 0x47d   : > { %v2191_v58 = vpop.f32.mrf.mxu1  ;;  %v1100_v59 = vsel %vm1099_vm6, %v1098_v57, -inf }
 0x47e   : > { %1101 = vmax.xlane.f32.xlu1 %v1100_v59  ;;  %v1728_v59 = vld [vmem:[#allocation17 + $0x18] sm:$0xff] }
 0x48f   : > { %1185 = vrot.lane.b32.xlu1 %v1005_v49, %s2817_s8 }
 0x493   : > { %1370 = vrot.lane.b32.xlu1 %v1010_v30, %s2818_s11 }
 0x497   : > { %1368 = vrot.lane.b32.xlu1 %v1009_v31, %s2818_s11  ;;  %s2663_s11 = scalar_lea.vmem %s1839_s13, 128 }
 0x498   : > { %p2664_p8 = scmp.ne.s32.totalorder %s1839_s13, %s2663_s11 }
 0x49a   : > { %p2665_p10 = pnand %p2664_p8, %p3559_p9 }
 0x49c   : > { %p2666_p7 = pneg %p2665_p10 }
 0x507   : > { %v1102_v61 = vpop.xlane.xlu1 %1101 }
 0x508   : > { %v1103_v62 = vsub.f32 %v1098_v57, %v1102_v61 }
 0x50a   : > { %v1104_v63 = vmul.f32 1.442695, %v1103_v62 }
 0x50b   : > { %v1186_v8 = vpop.permute.xlu1 %1185 }
 0x50c   : > { %2431 = vpow2.f32 %v1104_v63 }
 0x50f   : > { %v1371_v9 = vpop.permute.xlu1 %1370 }
 0x513   : > { %v1369_v11 = vpop.permute.xlu1 %1368 }
 0x519   : > { %v3324_v5 = vpop.eup %2431 }
 0x51a   : > { %2197 = vmatmul.mubr.msk.f32.vlgmr.msra.gmra.mxu1 %vm1099_vm6, %v3324_v5  ;;  %v1106_v35 = vsel %vm1099_vm6, %v3324_v5, 0.0  ;;  %v1726_v5 = vld [vmem:[#allocation17 + $0x8] sm:$0xff] }
 0x51b   : > { %2200 = vmatpush3.xpose.msk.msra.mxu1 %vm1015_vm3, %v1190_v60  ;;  %2203 = vmatprep.mubr.msk.f32.mxu1 %vm2816_vm2, %v2815_v26  ;;  %v1727_v60 = vld [vmem:[#allocation17 + $0x10] sm:$0xff] }
 0x51c   : > { %2201 = vmatprep.subr.mxu1 %v2815_v26 }
 0x51f   : > { %2202 = vmatpush3.xpose.msk.msra.mxu1 %vm1015_vm3, %v1188_v6  ;;  %v1725_v6 = vld [vmem:[#allocation17] sm:$0xff] }
 0x520   : > { %2213 = vmatprep.subr.mxu1 %v2815_v26 }
 0x522   : > { %2204 = vmatmul.mubr.msk.f32.vlgmr.msra.gmra.mxu1 %vm1015_vm3, %v1186_v8 }
 0x523   : > { %2214 = vmatpush3.xpose.msk.msra.mxu1 %vm1015_vm3, %v1371_v9  ;;  %2217 = vmatprep.mubr.msk.f32.mxu1 %vm2816_vm2, %v2815_v26 }
 0x524   : > { %2215 = vmatprep.subr.mxu1 %v2815_v26 }
 0x527   : > { %2216 = vmatpush3.xpose.msk.msra.mxu1 %vm1015_vm3, %v1369_v11 }
 0x528   : > { %2220 = vmatprep.subr.mxu1 %v2815_v26 }
 0x52a   : > { %2218 = vmatmul.mubr.msk.f32.vlgmr.msra.gmra.mxu1 %vm1015_vm3, %v1367_v10 }
 0x52b   : > { %2221 = vmatpush3.msra.mxu1 %v1461_v12  ;;  %2224 = vmatprep.mubr.msk.f32.mxu1 %vm2816_vm2, %v2815_v26 }
 0x52c   : > { %2222 = vmatprep.subr.mxu1 %v2815_v26 }
 0x52d   : > { %2223 = vmatpush3.msra.mxu1 %v1459_v13 }
 0x52e   : > { %2227 = vmatprep.subr.mxu1 %v2815_v26 }
 0x5da   : > { %v1178_v7 = vpop.f32.mrf.mxu1 }
 0x5dc   : > { %v2198_v14 = vpop.f32.mrf.mxu1 }
 0x5e2   : > { %v1263_v15 = vpop.f32.mrf.mxu1 }
 0x5e3   : > { %v1267_v3 = vsel %vm3314_vm5, -1e+09, %v1263_v15 }
 0x5e4   : > { %v2205_v16 = vpop.f32.mrf.mxu1  ;;  %v1268_v17 = vsel %vm1099_vm6, %v1267_v3, -inf }
 0x5e5   : > { %1269 = vmax.xlane.f32.xlu0 %v1268_v17 }
 0x5ea   : > { %v1444_v18 = vpop.f32.mrf.mxu1 }
 0x5eb   : > { %v1448_v4 = vsel %vm3314_vm5, -1e+09, %v1444_v18 }
 0x5ec   : > { %v2219_v2 = vpop.f32.mrf.mxu1  ;;  %v1449_v19 = vsel %vm1099_vm6, %v1448_v4, -inf }
 0x5ed   : > { %1450 = vmax.xlane.f32.xlu1 %v1449_v19 }
 0x5fb   : > { %1279 = vrot.lane.b32.xlu0 %v3301_v1, %s2817_s8 }
 0x5fe   : > { %1281 = vrot.lane.b32.xlu1 %v3296_v50, %s2817_s8  ;;  %s1823_s8 = scalar_lea.sflag [#allocation7], %s3160_s7 }
 0x602   : > { %1639 = vrot.lane.b32.xlu1 %v3296_v50, %s2819_s23 }
 0x66e   : > { %v1270_v23 = vpop.xlane.xlu0 %1269 }
 0x66f   : > { %v1271_v24 = vsub.f32 %v1267_v3, %v1270_v23 }
 0x671   : > { %v1272_v25 = vmul.f32 1.442695, %v1271_v24 }
 0x672   : > { %v1280_v31 = vpop.permute.xlu0 %1279 }
 0x673   : > { %2433 = vpow2.f32 %v1272_v25 }
 0x676   : > { %v1451_v27 = vpop.xlane.xlu1 %1450 }
 0x677   : > { %v1452_v28 = vsub.f32 %v1448_v4, %v1451_v27 }
 0x679   : > { %v1453_v29 = vmul.f32 1.442695, %v1452_v28 }
 0x67a   : > { %v1282_v30 = vpop.permute.xlu1 %1281 }
 0x67b   : > { %2435 = vpow2.f32 %v1453_v29  ;;  %2207 = vmatpush3.msra.mxu0 %v1282_v30 }
 0x67c   : > { %2208 = vmatprep.subr.mxu0 %v2815_v26 }
 0x67d   : > { %2209 = vmatpush3.msra.mxu0 %v1280_v31 }
 0x67e   : > { %2234 = vmatprep.subr.mxu0 %v2815_v26  ;;  %v1640_v36 = vpop.permute.xlu1 %1639 }
 0x680   : > { %v2434_v32 = vpop.eup %2433 }
 0x681   : > { %2211 = vmatmul.mubr.msk.f32.vlgmr.msra.gmra.mxu0 %vm1099_vm6, %v2434_v32  ;;  %v1274_v0 = vsel %vm1099_vm6, %v2434_v32, 0.0 }
 0x682   : > { %2238 = vmatprep.mubr.msk.f32.mxu0 %vm2816_vm2, %v2815_v26  ;;  %2235 = vmatpush3.msra.mxu0 %v1640_v36 }
 0x683   : > { %2236 = vmatprep.subr.mxu0 %v2815_v26 }
 0x688   : > { %v2436_v33 = vpop.eup %2435 }
 0x689   : > { %2225 = vmatmul.mubr.msk.f32.vlgmr.msra.gmra.mxu1 %vm1099_vm6, %v2436_v33  ;;  %v1455_v34 = vsel %vm1099_vm6, %v2436_v33, 0.0 }
 0x68a   : > { %2228 = vmatpush3.xpose.msk.msra.mxu1 %vm1015_vm3, %v1550_v20  ;;  %1456 = vadd.xlane.f32.xlu0 %v1455_v34 }
 0x68b   : > { %2229 = vmatprep.subr.mxu1 %v2815_v26  ;;  %2231 = vmatprep.mubr.msk.f32.mxu1 %vm2816_vm2, %v2815_v26 }
 0x68e   : > { %2230 = vmatpush3.xpose.msk.msra.mxu1 %vm1015_vm3, %v1548_v21  ;;  %1107 = vadd.xlane.f32.xlu0 %v1106_v35 }
 0x691   : > { %2232 = vmatmul.mubr.msk.f32.vlgmr.msra.gmra.mxu1 %vm1015_vm3, %v1546_v22 }
 0x713   : > { %v1457_v37 = vpop.xlane.xlu0 %1456 }
 0x717   : > { %v1108_v38 = vpop.xlane.xlu0 %1107 }
 0x718   : > { %2437 = vrcp.f32 %v1108_v38 }
 0x719   : > { %2439 = vrcp.f32 %v1457_v37 }
 0x725   : > { %v2438_v39 = vpop.eup %2437 }
 0x726   : > { %v1183_v40 = vmul.f32 %v2438_v39, %v1178_v7  ;;  %v2440_v43 = vpop.eup %2439 }
 0x728   : > { %1184 = vst.msk [vmem:[#allocation4] sm:$0xff] %vm1015_vm3, %v1183_v40 }
 0x741   : > { %v1354_v41 = vpop.f32.mrf.mxu0 }
 0x743   : > { %v2212_v42 = vpop.f32.mrf.mxu0 }
 0x749   : > { %v1533_v44 = vpop.f32.mrf.mxu1 }
 0x74a   : > { %v1538_v45 = vmul.f32 %v2440_v43, %v1533_v44 }
 0x74b   : > { %v2226_v46 = vpop.f32.mrf.mxu1 }
 0x74c   : > { %1540 = vrot.lane.b32.xlu0 %v1538_v45, %s2821_s9 }
 0x751   : > { %v1623_v47 = vpop.f32.mrf.mxu1 }
 0x752   : > { %v1627_v48 = vsel %vm3314_vm5, -1e+09, %v1623_v47 }
 0x753   : > { %v2233_v49 = vpop.f32.mrf.mxu1  ;;  %v1628_v50 = vsel %vm1099_vm6, %v1627_v48, -inf }
 0x754   : > { %1629 = vmax.xlane.f32.xlu1 %v1628_v50 }
 0x765   : > { %1637 = vrot.lane.b32.xlu1 %v3301_v1, %s2819_s23  ;;  %s2824_s23 = smov [#allocation19]  }
 0x766   : > { %s2667_s9 = sshll.u32 %s2824_s23, 4  ;;  %s2668_s9 = int_to_ptr.vmem [resolvable:$false] %s2667_s9 }
 0x767   : > { %p2670_p12 = scmp.lt.s32.totalorder %s1839_s13, %s2668_s9 }
 0x789   : > { %1275 = vadd.xlane.f32.xlu1 %v1274_v0 }
 0x7be   : > { %v1541_v63 = vpop.permute.xlu0 %1540 }
 0x7dd   : > { %v1630_v51 = vpop.xlane.xlu1 %1629 }
 0x7de   : > { %v1631_v52 = vsub.f32 %v1627_v48, %v1630_v51 }
 0x7e0   : > { %v1632_v53 = vmul.f32 1.442695, %v1631_v52 }
 0x7e1   : > { %v1638_v54 = vpop.permute.xlu1 %1637 }
 0x7e2   : > { %2441 = vpow2.f32 %v1632_v53  ;;  %2237 = vmatpush3.msra.mxu0 %v1638_v54 }
 0x7e3   : > { %2241 = vmatprep.subr.mxu0 %v2815_v26 }
 0x7ef   : > { %v2442_v55 = vpop.eup %2441 }
 0x7f0   : > { %2239 = vmatmul.mubr.msk.f32.vlgmr.msra.gmra.mxu0 %vm1099_vm6, %v2442_v55  ;;  %v1634_v56 = vsel %vm1099_vm6, %v2442_v55, 0.0 }
 0x7f1   : > { %1635 = vadd.xlane.f32.xlu1 %v1634_v56  ;;  %2249 = vmatprep.mubr.msk.f32.mxu0 %vm2816_vm2, %v2815_v26 }
 0x7f2   : > { %2242 = vmatpush3.xpose.msk.msra.mxu0 %vm889_vm1, %v1728_v59 }
 0x7f3   : > { %2243 = vmatprep.subr.mxu0 %v2815_v26 }
 0x7f6   : > { %2244 = vmatpush3.xpose.msk.msra.mxu0 %vm889_vm1, %v1727_v60 }
 0x7f7   : > { %2245 = vmatprep.subr.mxu0 %v2815_v26 }
 0x7fa   : > { %2246 = vmatpush3.xpose.msk.msra.mxu0 %vm889_vm1, %v1726_v5 }
 0x7fb   : > { %2247 = vmatprep.subr.mxu0 %v2815_v26  ;;  %v2093_v26 = vld [vmem:[%s3557_s15] ss:$0 sm:$0xff] }
 0x7fe   : > { %2248 = vmatpush3.xpose.msk.msra.mxu0 %vm889_vm1, %v1725_v6 }
 0x812   : > { %v1276_v1 = vpop.xlane.xlu1 %1275 }
 0x813   : > { %2443 = vrcp.f32 %v1276_v1 }
 0x820   : > { %v2444_v57 = vpop.eup %2443 }
 0x821   : > { %v1359_v58 = vmul.f32 %v2444_v57, %v1354_v41 }
 0x823   : > { %1361 = vrot.lane.b32.xlu1 %v1359_v58, %s2822_s29  ;;  %s2669_s29 = scalar_lea.vmem %s2668_s9, 256 }
 0x824   : > { %p2671_p1 = scmp.lt.s32.totalorder %s2669_s29, %s2663_s11 }
 0x826   : > { %p2672_p13 = por %p2671_p1, %p2670_p12 }
 0x828   : > { %p2673_p3 = pnand %p2672_p13, %p2666_p7 }
 0x87a   : > { %v1636_v61 = vpop.xlane.xlu1 %1635 }
 0x87b   : > { %2445 = vrcp.f32 %v1636_v61 }
 0x888   : > { %v2446_v8 = vpop.eup %2445 }
 0x895   : > { %v1362_v62 = vpop.permute.xlu1 %1361 }
 0x896   : > { %1365 = vst.msk [vmem:[#allocation4] sm:$0xff] %vm1364_vm7, %v1362_v62 }
 0x897   : > { %1544 = vst.msk [vmem:[#allocation4] sm:$0xff] %vm1543_vm8, %v1541_v63 }
 0x8b0   : > { %v1712_v9 = vpop.f32.mrf.mxu0 }
 0x8b1   : > { %v1717_v10 = vmul.f32 %v2446_v8, %v1712_v9 }
 0x8b2   : > { %v2240_v11 = vpop.f32.mrf.mxu0 }
 0x8b3   : > { %1719 = vrot.lane.b32.xlu1 %v1717_v10, %s2823_s26 }
 0x925   : > { %v1720_v12 = vpop.permute.xlu1 %1719 }
 0x926   : > { %1723 = vst.msk [vmem:[#allocation4] sm:$0xff] %vm1722_vm9, %v1720_v12 }
 0x92d   : > { %v1724_v13 = vld [vmem:[#allocation4] sm:$0xff] }
 0x92e   : > { %2250 = vmatmul.mubr.msk.f32.vlgmr.msra.gmra.mxu0 %vm889_vm1, %v1724_v13 }
 0x9ee   : > { %v1817_v7 = vpop.f32.mrf.mxu0 }
 0x9ef   : > { %v1818_v14 = vadd.f32 %v2093_v26, %v1817_v7 }
 0x9f0   : > { %v2251_v15 = vpop.f32.mrf.mxu0 }
 0x9f1   : > { %1821 = vst.msk [vmem:[%s3205_s24] sm:$0xff] %vm889_vm1, %v1818_v14 }
 0x9f2   : > { %2676 = shalt.err (!%p2673_p3)
}
 0x9f3   : > { %s2677_s24 = scalar_lea.hbm %s3403_s12, 128  ;;  %s2681_s5 = scalar_lea.hbm %s3558_s4, 512 }
 0x9f4   : > { %p2678_p0 = scmp.ne.s32.totalorder %s3403_s12, %s2677_s24  ;;  %p2682_p5 = scmp.lt.s32.totalorder %s3403_s12, %s3558_s4 }
 0x9f5   : > { %p2683_p6 = scmp.lt.s32.totalorder %s2681_s5, %s2677_s24 }
 0x9f6   : > { %p2679_p4 = pnand %p2678_p0, %p3559_p9 }
 0x9f7   : > { %p2684_p2 = por %p2683_p6, %p2682_p5 }
 0x9f8   : > { %p2680_p11 = pneg %p2679_p4 }
 0x9fa   : > { %p2685_p8 = pnand %p2684_p2, %p2680_p11 }
 0x9fc   : > { %2688 = shalt.err (!%p2685_p8)
}
 0x9fd   : > { %2276 = dma.vmem_to_hbm [thread:$0]  (%p3559_p9), %s1839_s13, 128, %s3403_s12, %s1823_s8  }
 0x9fe PF: > { %s3560_s14 = sld [smem:[#allocation28_spill]]  ;;  %p2317_p10 = scmp.ge.s32.totalorder %s2803_s27, 2 }
 0x9ff   : > { %s3561_s16 = sld [smem:[#allocation37_spill]] }
 0xa04   : > { %s1850_s17 = sand.u32 1, %s3560_s14  }
 0xa05   : > { %p3562_p7 = scmp.ne.s32.totalorder %s3561_s16, 0  ;;  %s1851_s15 = scalar_lea.sflag [#allocation7], %s1850_s17 }
 0xa07   : > { %p2305_p12 = pnand %p2317_p10, %p3562_p7 }
 0xa09   : > { %p2306_p1 = pneg %p2305_p12 }
 0xa0b   : > { %2758 = dma.done.wait (%p2306_p1), %s1851_s15, 128  }
 0xa0c   : > { %2760 = vsyncadd (%p2306_p1), %s1851_s15, 4294967168  ;;  %s35_s27 = sadd.s32 1, %s2803_s27   ;;  %s3563_s17 = sld [smem:[#allocation27_spill]] }
 0xa0d   : > { %p32_p13 = scmp.ge.s32.totalorder %s35_s27, 6   ;;  %s3564_s28 = smov %s3100_s20 }
 0xa0e   : > { %s3565_s24 = sld [smem:[#allocation31_spill]]  ;;  %s3568_s18 = smov %s2771_s19 }
 0xa0f   : > { %s3566_s2 = sld [smem:[#allocation34_spill]]  ;;  %s3569_s19 = smov %s3097_s6 }
 0xa10   : > { %s3567_s26 = sld [smem:[#allocation35_spill]]  ;;  %s3570_s20 = smov %s2779_s21 }
 0xa11   : > { %s3571_s21 = smov %s2783_s22  ;;  %s3572_s22 = smov %s3564_s28 }
 0xa12   : > { %s3573_s23 = smov %s2795_s25  ;;  %34 = sbr.rel (!%p32_p13) target bundleno = 26 (0x1a), region = 166 }
 0xa15   : > { %s3574_s25 = smov %s3566_s2 }
 0xa17   :  { %1856 = vsyncpa [#allocation6], 1 }
 0xa18   :  { %1858 = vsyncpa [#allocation6 + $0x1], 1 }
 0xa19   :  { %1859 = vsyncpa [#allocation9], 1 }
 0xa1a   :  { %1861 = vsyncpa [#allocation9 + $0x1], 1 }
 0xa1b   :  { %1862 = vsyncpa [#allocation12], 1 }
 0xa1c   :  { %1864 = vsyncpa [#allocation12 + $0x1], 1 }
 0xa1d   :  { %1865 = vsyncpa [#allocation15], 1 }
 0xa1e   :  { %1866 = vsyncpa [#allocation18], 1 }
 0xa1f   :  { %1867 = vsyncpa [#allocation7], 1 }
 0xa20   :  { %1869 = vsyncpa [#allocation7 + $0x1], 1 }

// kernel: tpu_custom_call.1
= control target key start
LH: loop header
LB: loop body
LE: loop exit
PB: predicated region body
PF: predicated region fallthrough
CT: control target
= control target key end

     0   :  { %s3461_s0 = inlined_call_operand.hbm [shape: f32[2,16,32], index: 0, kind: input, shape index: {}]   ;;  %s3462_s1 = inlined_call_operand.hbm [shape: f32[2,16,32], index: 1, kind: input, shape index: {}]   ;;  %s3463_s2 = inlined_call_operand.hbm [shape: f32[2,16,32], index: 2, kind: input, shape index: {}]   ;;  %s3464_s3 = inlined_call_operand.hbm [shape: s8[2,16,16], index: 3, kind: input, shape index: {}]   ;;  %s3465_s4 = inlined_call_operand.vmem [shape: f32[1,32], index: 4, kind: input, shape index: {}]   ;;  %s3466_s5 = inlined_call_operand.vmem [shape: f32[1,32], index: 5, kind: input, shape index: {}]   ;;  %s3467_s6 = inlined_call_operand.hbm [shape: f32[32,32], index: 6, kind: input, shape index: {}]   ;;  %s3468_s7 = inlined_call_operand.hbm [shape: f32[32,32], index: 7, kind: input, shape index: {}]   ;;  %s3469_s8 = inlined_call_operand.hbm [shape: f32[32,32], index: 8, kind: input, shape index: {}]   ;;  %s3470_s9 = inlined_call_operand.hbm [shape: f32[32,32], index: 9, kind: input, shape index: {}]   ;;  %s3471_s10 = inlined_call_operand.vmem [shape: f32[1,32], index: 10, kind: input, shape index: {}]   ;;  %s3472_s11 = inlined_call_operand.hbm [shape: f32[2,16,32], index: 11, kind: output, shape index: {}]  }
   0x1   :  { %3495 = sst [smem:[#allocation38_spill]] %s3462_s1 }
   0x2   :  { %3496 = sst [smem:[#allocation39_spill]] %s3463_s2 }
   0x3   :  { %3497 = sst [smem:[#allocation40_spill]] %s3465_s4 }
   0x4   :  { %3498 = sst [smem:[#allocation41_spill]] %s3466_s5 }
   0x5   :  { %3499 = sst [smem:[#allocation42_spill]] %s3467_s6 }
   0x6   :  { %3500 = sst [smem:[#allocation43_spill]] %s3468_s7 }
   0x7   :  { %3501 = sst [smem:[#allocation44_spill]] %s3469_s8 }
   0x8   :  { %3502 = sst [smem:[#allocation45_spill]] %s3470_s9 }
   0x9   :  { %3503 = sst [smem:[#allocation46_spill]] %s3471_s10 }
   0xa   :  { %3504 = sst [smem:[#allocation47_spill]] %s3472_s11 }
   0xb   :  { %16 = vsyncpa [#allocation6], 0 }
   0xc   :  { %18 = vsyncpa [#allocation6 + $0x1], 0 }
   0xd   :  { %19 = vsyncpa [#allocation9], 0 }
   0xe   :  { %21 = vsyncpa [#allocation9 + $0x1], 0 }
   0xf   :  { %22 = vsyncpa [#allocation12], 0 }
  0x10   :  { %24 = vsyncpa [#allocation12 + $0x1], 0 }
  0x11   :  { %25 = vsyncpa [#allocation15], 0 }
  0x12   :  { %26 = vsyncpa [#allocation18], 0 }
  0x13   :  { %27 = vsyncpa [#allocation7], 0 }
  0x14   :  { %29 = vsyncpa [#allocation7 + $0x1], 0  ;;  %s2885_s17 = smov 0   ;;  %s2887_s18 = smov 0  }
  0x15   :  { %s2889_s19 = smov 0   ;;  %s2891_s20 = smov 0  }
  0x16   :  { %s2893_s21 = smov 0   ;;  %s2895_s22 = smov 0  }
  0x17   :  { %s2897_s23 = smov 0   ;;  %s2899_s24 = smov 0  }
  0x18   :  { %s2901_s25 = smov 0   ;;  %s2903_s26 = smov 0  }
  0x19   :  { %s2905_s27 = smov 0  }
  0x1a LB: > { %3505 = sst [smem:[#allocation27_spill]] %s2767_s18  ;;  %s2941_s28 = sadd.s32 4294967295, %s2803_s27   ;;  %s2803_s27 = sphi %s2905_s27, %s35_s27   ;;  %s2799_s26 = sphi %s2903_s26, %s3567_s26   ;;  %s2795_s25 = sphi %s2901_s25, %s3574_s25   ;;  %s2791_s24 = sphi %s2899_s24, %s3565_s24   ;;  %s2787_s23 = sphi %s2897_s23, %s3573_s23   ;;  %s2783_s22 = sphi %s2895_s22, %s3572_s22   ;;  %s2779_s21 = sphi %s2893_s21, %s3571_s21   ;;  %s2775_s20 = sphi %s2891_s20, %s3570_s20   ;;  %s2771_s19 = sphi %s2889_s19, %s3569_s19   ;;  %s2767_s18 = sphi %s2887_s18, %s3568_s18   ;;  %s2763_s17 = sphi %s2885_s17, %s3563_s17  }
  0x1b   : > { %3506 = sst [smem:[#allocation28_spill]] %s2775_s20  ;;  %p2031_p0 = scmp.ge.s32.totalorder %s2803_s27, 1 }
  0x1c   : > { %3507 = sst [smem:[#allocation29_spill]] %s2787_s23  ;;  %p3479_p1 = scmp.eq.s32.totalorder %s2941_s28, 0 }
  0x1d   : > { %3508 = sst [smem:[#allocation30_spill]] %s2791_s24  ;;  %p335_p2 = scmp.lt.s32.totalorder %s2803_s27, 5 }
  0x1e   : > { %3509 = sst [smem:[#allocation31_spill]] %s2799_s26  ;;  %s2805_s30 = smov [#allocation13]  }
  0x1f   : > { %3510 = sst [smem:[#allocation32_spill]] %s2941_s28  ;;  %p2946_p3 = pnand %p2031_p0, %p335_p2 }
  0x20   : > { %s353_s12 = sshll.u32 %s2805_s30, 4  ;;  %s2806_s14 = smov [#allocation14]   ;;  %s354_s12 = int_to_ptr.vmem [resolvable:$true] %s353_s12 }
  0x21   : > { %p2278_p4 = pneg %p2946_p3  ;;  %s366_s15 = sshll.u32 %s2806_s14, 4  ;;  %s367_s15 = int_to_ptr.vmem [resolvable:$true] %s366_s15 }
  0x22   : > { %s2458_s16 = scalar_lea.vmem %s354_s12, 512  ;;  %p2466_p10 = scmp.lt.s32.totalorder %s354_s12, %s354_s12 }
  0x23   : > { %p2954_p5 = pnand %p2278_p4, %p3479_p1  ;;  %p2459_p7 = scmp.ne.s32.totalorder %s354_s12, %s2458_s16 }
  0x24   : > { %p2467_p11 = scmp.lt.s32.totalorder %s2458_s16, %s2458_s16 }
  0x25   : > { %p2449_p6 = pneg %p2954_p5 }
  0x26   : > { %p2468_p12 = por %p2467_p11, %p2466_p10 }
  0x27   : > { %p2461_p8 = pnand %p2459_p7, %p2449_p6 }
  0x29   : > { %p2462_p9 = pneg %p2461_p8 }
  0x2b   : > { %p2469_p13 = pnand %p2468_p12, %p2462_p9 }
  0x2d   : > { %2472 = shalt.err (!%p2469_p13)
}
  0x2e   : > { %s3474_s30 = smov 128   ;;  %s3476_s11 = smov 8  }
  0x2f   : > { %s3513_s6 = sld [smem:[#allocation42_spill]]  ;;  %s2484_s24 = scalar_lea.vmem %s367_s15, 512 }
  0x30   : > { %p2485_p0 = scmp.ne.s32.totalorder %s367_s15, %s2484_s24  ;;  %p2492_p7 = scmp.lt.s32.totalorder %s367_s15, %s367_s15 }
  0x31   : > { %p2493_p8 = scmp.lt.s32.totalorder %s2484_s24, %s2484_s24 }
  0x32   : > { %p2487_p2 = pnand %p2485_p0, %p2449_p6 }
  0x33   : > { %p2494_p9 = por %p2493_p8, %p2492_p7 }
  0x34   : > { %p2488_p4 = pneg %p2487_p2 }
  0x35   : > { %2281 = dma.hbm_to_vmem [thread:$0]  (!%p2954_p5), %s3513_s6, 512, %s354_s12, [#allocation12], %s3474_s30, %s3474_s30, %s3476_s11  }
  0x36   : > { %p2495_p10 = pnand %p2494_p9, %p2488_p4 }
  0x38   : > { %2498 = shalt.err (!%p2495_p10)
}
  0x39   : > { %s3514_s7 = sld [smem:[#allocation43_spill]]  ;;  %p64_p11 = scmp.eq.s32.totalorder %s2803_s27, 0 }
  0x3a   : > { %p89_p12 = scmp.ne.s32.totalorder %s2771_s19, %s2767_s18  ;;  %p95_p13 = scmp.ne.s32.totalorder %s2767_s18, %s2763_s17 }
  0x3b   : > { %p3478_p0 = scmp.lt.s32.totalorder %s2803_s27, 4  ;;  %s431_s12 = sand.u32 1, %s2771_s19  }
  0x3c   : > { %p91_p2 = por %p89_p12, %p64_p11  ;;  %p2994_p4 = por %p95_p13, %p3479_p1 }
  0x3d   : > { %s2040_s14 = sshll.u32 %s431_s12, 4  ;;  %s2104_s16 = sshll.u32 %s2799_s26, 8 }
  0x3e   : > { %s3515_s24 = scalar_select %p2994_p4, 1, 0 }
  0x3f   : > { %2284 = dma.hbm_to_vmem [thread:$0]  (!%p2954_p5), %s3514_s7, 512, %s367_s15, [#allocation15], %s3474_s30, %s3474_s30, %s3476_s11  }
  0x40   : > { %3516 = sst [smem:[#allocation33_spill]] %s3515_s24  ;;  %s433_s10 = scalar_lea.vmem [#allocation8], %s2040_s14 }
  0x41   : > { %s3517_s1 = sld [smem:[#allocation38_spill]]  ;;  %s440_s30 = sshll.u32 %s433_s10, 4  ;;  %s441_s30 = int_to_ptr.vmem [resolvable:$true] %s440_s30 }
  0x42   : > { %p3005_p7 = pnand %p3478_p0, %p91_p2  ;;  %s3519_s2 = sld [smem:[#allocation39_spill]] }
  0x43   : > { %s3520_s12 = sand.u32 1, %s2803_s27   ;;  %s2512_s5 = scalar_lea.vmem %s441_s30, 256 }
  0x44   : > { %s3016_s4 = scalar_lea.sflag [#allocation9], %s3520_s12  ;;  %p3480_p8 = pneg %p3005_p7 }
  0x45   : > { %p2513_p9 = scmp.ne.s32.totalorder %s441_s30, %s2512_s5  ;;  %s2809_s6 = smov [#allocation8]  }
  0x46   : > { %s2517_s10 = sshll.u32 %s2809_s6, 4  ;;  %s2518_s10 = int_to_ptr.vmem [resolvable:$false] %s2517_s10 }
  0x47   : > { %s439_s15 = scalar_lea.hbm %s3517_s1, %s2104_s16  ;;  %p2515_p10 = pnand %p2513_p9, %p3480_p8 }
  0x48   : > { %s3012_s7 = scalar_lea.hbm %s3519_s2, %s2104_s16  ;;  %s2519_s1 = scalar_lea.vmem %s2518_s10, 512 }
  0x49   : > { %p2516_p12 = pneg %p2515_p10  ;;  %p2520_p13 = scmp.lt.s32.totalorder %s441_s30, %s2518_s10 }
  0x4a   : > { %p2521_p2 = scmp.lt.s32.totalorder %s2519_s1, %s2512_s5 }
  0x4c   : > { %p2522_p0 = por %p2521_p2, %p2520_p13 }
  0x4e   : > { %p2523_p1 = pnand %p2522_p0, %p2516_p12 }
  0x50   : > { %2526 = shalt.err (!%p2523_p1)
}
  0x51   : > { %s3521_s11 = smov 8   ;;  %s3522_s23 = smov 128  }
  0x52   : > { %2297 = dma.hbm_to_vmem [thread:$0]  (!%p3005_p7), %s439_s15, 256, %s441_s30, %s3016_s4, %s3522_s23, %s3522_s23, %s3521_s11  }
  0x53   : > { %s454_s16 = scalar_lea.vmem [#allocation10], %s2040_s14  ;;  %s2810_s6 = smov [#allocation16]  }
  0x54   : > { %s461_s12 = sshll.u32 %s454_s16, 4  ;;  %s379_s2 = sshll.u32 %s2810_s6, 4  ;;  %s3029_s12 = int_to_ptr.vmem [resolvable:$true] %s461_s12  ;;  %s380_s2 = int_to_ptr.vmem [resolvable:$true] %s379_s2 }
  0x55   : > { %s2538_s10 = scalar_lea.vmem %s380_s2, 512  ;;  %p2546_p10 = scmp.lt.s32.totalorder %s380_s2, %s380_s2 }
  0x56   : > { %p2539_p9 = scmp.ne.s32.totalorder %s380_s2, %s2538_s10  ;;  %p2547_p12 = scmp.lt.s32.totalorder %s2538_s10, %s2538_s10 }
  0x58   : > { %p2541_p1 = pnand %p2539_p9, %p2449_p6  ;;  %p2548_p13 = por %p2547_p12, %p2546_p10 }
  0x5a   : > { %p2542_p0 = pneg %p2541_p1 }
  0x5c   : > { %p2549_p2 = pnand %p2548_p13, %p2542_p0 }
  0x5e   : > { %2552 = shalt.err (!%p2549_p2)
}
  0x5f   : > { %s3523_s8 = sld [smem:[#allocation44_spill]]  ;;  %s2811_s14 = smov [#allocation17]  }
  0x60   : > { %s392_s15 = sshll.u32 %s2811_s14, 4  ;;  %s393_s15 = int_to_ptr.vmem [resolvable:$true] %s392_s15 }
  0x61   : > { %s2564_s5 = scalar_lea.vmem %s393_s15, 512  ;;  %p2572_p10 = scmp.lt.s32.totalorder %s393_s15, %s393_s15 }
  0x62   : > { %p2565_p9 = scmp.ne.s32.totalorder %s393_s15, %s2564_s5  ;;  %p2573_p12 = scmp.lt.s32.totalorder %s2564_s5, %s2564_s5 }
  0x64   : > { %p2567_p1 = pnand %p2565_p9, %p2449_p6  ;;  %p2574_p13 = por %p2573_p12, %p2572_p10 }
  0x65   : > { %2287 = dma.hbm_to_vmem [thread:$0]  (!%p2954_p5), %s3523_s8, 512, %s380_s2, [#allocation15], %s3522_s23, %s3522_s23, %s3521_s11  }
  0x66   : > { %p2568_p0 = pneg %p2567_p1 }
  0x68   : > { %p2575_p2 = pnand %p2574_p13, %p2568_p0 }
  0x6a   : > { %2578 = shalt.err (!%p2575_p2)
}
  0x6b   : > { %s3524_s9 = sld [smem:[#allocation45_spill]]  ;;  %s2030_s13 = sadd.s32 4294967294, %s2803_s27  }
  0x6c   : > { %s44_s6 = sadd.s32 1, %s2795_s25  ;;  %s47_s10 = sadd.s32 1, %s2799_s26 }
  0x6d   : > { %p45_p6 = scmp.ge.s32.totalorder %s44_s6, 2  ;;  %s56_s1 = sadd.s32 1, %s2783_s22 }
  0x6e   : > { %p63_p9 = scmp.ne.s32.totalorder %s2783_s22, %s2779_s21  ;;  %p69_p0 = scmp.ne.s32.totalorder %s2779_s21, %s2775_s20 }
  0x6f   : > { %s3576_s6 = smov (%p45_p6, %s44_s6), 0  ;;  %s3578_s10 = smov (!%p45_p6, %s47_s10), %s2799_s26 }
  0x70   : > { %3525 = sst [smem:[#allocation34_spill]] %s3576_s6  ;;  %s52_s30 = ssub.s32 %s2795_s25, %s3576_s6 }
  0x71   : > { %2290 = dma.hbm_to_vmem [thread:$0]  (!%p2954_p5), %s3524_s9, 512, %s393_s15, [#allocation18], %s3522_s23, %s3522_s23, %s3521_s11  }
  0x72   : > { %p3066_p1 = por %p64_p11, %p63_p9  ;;  %p49_p5 = scmp.ge.s32.totalorder %s3578_s10, 2 }
  0x73   : > { %p322_p10 = scmp.eq.s32.totalorder %s2941_s28, 3  ;;  %p328_p12 = scmp.eq.s32.totalorder %s2030_s13, 3 }
  0x74   : > { %s3580_s10 = smov (%p49_p5, %s3578_s10), 0  ;;  %p3528_p13 = scmp.eq.s32.totalorder %s2941_s28, 0 }
  0x75   : > { %3527 = sst [smem:[#allocation35_spill]] %s3580_s10  ;;  %p3081_p6 = por %p322_p10, %p63_p9 }
  0x76   : > { %p3077_p2 = por %p3528_p13, %p69_p0  ;;  %s51_s2 = ssub.s32 %s2799_s26, %s3580_s10 }
  0x77   : > { %s3530_s5 = scalar_select %p3081_p6, 1, 0 }
  0x78   : > { %p3087_p11 = por %p328_p12, %p69_p0  ;;  %s53_s13 = sor.u32 %s52_s30, %s51_s2 }
  0x79   : > { %3531 = sst [smem:[#allocation36_spill]] %s3530_s5  ;;  %p80_p5 = scmp.eq.s32.totalorder %s51_s2, 0 }
  0x7a   : > { %s3532_s16 = scalar_select %p3087_p11, 1, 0 }
  0x7b   : > { %p54_p8 = scmp.eq.s32.totalorder %s53_s13, 0  ;;  %s3092_s8 = sand.u32 1, %s2783_s22  }
  0x7c   : > { %3533 = sst [smem:[#allocation37_spill]] %s3532_s16  ;;  %s3534_s9 = sadd.s32 1, %s2771_s19 }
  0x7d   : > { %s3097_s6 = scalar_select %p80_p5, %s2771_s19, %s3534_s9  }
  0x7e   : > { %s3100_s20 = scalar_select %p54_p8, %s2783_s22, %s56_s1  }
  0x7f   : > { %s2037_s10 = sshll.u32 %s3092_s8, 3  ;;  %s2038_s5 = sshll.u32 %s2799_s26, 1 }
  0x80   : > { %s3105_s24 = sadd.s32 %s2795_s25, %s2038_s5  ;;  %s413_s16 = scalar_lea.vmem [#allocation5], %s2037_s10 }
  0x81   : > { %s422_s30 = sshll.u32 %s413_s16, 4  ;;  %s2039_s2 = sshll.u32 %s3105_s24, 7  ;;  %s423_s30 = int_to_ptr.vmem [resolvable:$true] %s422_s30 }
  0x82   : > { %s420_s28 = scalar_lea.hbm %s3461_s0, %s2039_s2  ;;  %p3535_p9 = scmp.lt.s32.totalorder %s2803_s27, 4 }
  0x83   : > { %s2048_s1 = sshll.u32 %s3105_s24, 5  ;;  %s2046_s5 = sshll.u32 %s3092_s8, 1 }
  0x84   : > { %p3115_p0 = pnand %p3535_p9, %p3066_p1  ;;  %s410_s26 = scalar_lea.sflag [#allocation6], %s3092_s8 }
  0x85   : > { %s2592_s10 = scalar_lea.vmem %s423_s30, 128  ;;  %s2812_s18 = smov [#allocation5]  }
  0x86   : > { %p3494_p8 = pneg %p3115_p0  ;;  %p2593_p10 = scmp.ne.s32.totalorder %s423_s30, %s2592_s10 }
  0x87   : > { %s2597_s14 = sshll.u32 %s2812_s18, 4  ;;  %s2598_s14 = int_to_ptr.vmem [resolvable:$false] %s2597_s14 }
  0x88   : > { %p2595_p12 = pnand %p2593_p10, %p3494_p8  ;;  %s2599_s16 = scalar_lea.vmem %s2598_s14, 256 }
  0x89   : > { %p2600_p1 = scmp.lt.s32.totalorder %s423_s30, %s2598_s14  ;;  %p2601_p5 = scmp.lt.s32.totalorder %s2599_s16, %s2592_s10 }
  0x8a   : > { %p2596_p13 = pneg %p2595_p12 }
  0x8b   : > { %p2602_p9 = por %p2601_p5, %p2600_p1 }
  0x8d   : > { %p2603_p11 = pnand %p2602_p9, %p2596_p13 }
  0x8f   : > { %2606 = shalt.err (!%p2603_p11)
}
  0x90   : > { %2294 = dma.hbm_to_vmem [thread:$0]  (!%p3115_p0), %s420_s28, 128, %s423_s30, %s410_s26  }
  0x91   : > { %s2620_s2 = scalar_lea.vmem %s3029_s12, 256  ;;  %p3537_p10 = pneg %p3005_p7 }
  0x92   : > { %p2621_p6 = scmp.ne.s32.totalorder %s3029_s12, %s2620_s2  ;;  %s2813_s13 = smov [#allocation10]  }
  0x93   : > { %s2625_s18 = sshll.u32 %s2813_s13, 4  ;;  %s2626_s18 = int_to_ptr.vmem [resolvable:$false] %s2625_s18 }
  0x94   : > { %p2623_p12 = pnand %p2621_p6, %p3537_p10  ;;  %s2627_s10 = scalar_lea.vmem %s2626_s18, 512 }
  0x95   : > { %p2628_p1 = scmp.lt.s32.totalorder %s3029_s12, %s2626_s18  ;;  %p2629_p13 = scmp.lt.s32.totalorder %s2627_s10, %s2620_s2 }
  0x96   : > { %p2624_p8 = pneg %p2623_p12 }
  0x97   : > { %p2630_p11 = por %p2629_p13, %p2628_p1 }
  0x99   : > { %p2631_p5 = pnand %p2630_p11, %p2624_p8 }
  0x9b   : > { %2634 = shalt.err (!%p2631_p5)
}
  0x9c   : > { %2300 = dma.hbm_to_vmem [thread:$0]  (!%p3005_p7), %s3012_s7, 256, %s3029_s12, %s3016_s4, %s3522_s23, %s3522_s23, %s3521_s11  }
  0x9d   : > { %s482_s30 = scalar_lea.hbm %s3464_s3, %s2048_s1  ;;  %s475_s14 = scalar_lea.vmem [#allocation11], %s2046_s5 }
  0x9e   : > { %s484_s16 = sshll.u32 %s475_s14, 4  ;;  %s3538_s17 = sand.u32 1, %s2803_s27   ;;  %s485_s16 = int_to_ptr.vmem [resolvable:$true] %s484_s16 }
  0x9f   : > { %s472_s2 = scalar_lea.sflag [#allocation12], %s3538_s17  ;;  %s2648_s13 = scalar_lea.vmem %s485_s16, 32 }
  0xa0   : > { %p2649_p6 = scmp.ne.s32.totalorder %s485_s16, %s2648_s13  ;;  %p3539_p8 = pneg %p3115_p0 }
  0xa1   : > { %s2814_s18 = smov [#allocation11]  }
  0xa2   : > { %p2651_p9 = pnand %p2649_p6, %p3539_p8  ;;  %s2653_s10 = sshll.u32 %s2814_s18, 4  ;;  %s2654_s10 = int_to_ptr.vmem [resolvable:$false] %s2653_s10 }
  0xa3   : > { %s2655_s4 = scalar_lea.vmem %s2654_s10, 64  ;;  %p2656_p7 = scmp.lt.s32.totalorder %s485_s16, %s2654_s10 }
  0xa4   : > { %p2652_p10 = pneg %p2651_p9  ;;  %p2657_p12 = scmp.lt.s32.totalorder %s2655_s4, %s2648_s13 }
  0xa6   : > { %p2658_p1 = por %p2657_p12, %p2656_p7 }
  0xa8   : > { %p2659_p13 = pnand %p2658_p1, %p2652_p10 }
  0xaa   : > { %2662 = shalt.err (!%p2659_p13)
}
  0xab   : > { %2303 = dma.hbm_to_vmem [thread:$0]  (!%p3115_p0), %s482_s30, 32, %s485_s16, %s472_s2  }
  0xac   : > { %493 = sbr.rel (%p2946_p3) target bundleno = 2558 (0x9fe), region = 64  ;;  %s3160_s7 = sand.u32 (!%p2946_p3), 1, %s2779_s21  }
  0xad   : > { %s2050_s8 = sshll.u32 (!%p2946_p3), %s3160_s7, 3  ;;  %s496_s24 = scalar_lea.sflag (!%p2946_p3), [#allocation6], %s3160_s7 }
  0xae   : > { %s3164_s11 = scalar_lea.vmem (!%p2946_p3), [#allocation5], %s2050_s8 }
  0xb1   : > { %2734 = dma.done.wait (%p3077_p2), %s496_s24, 128  }
  0xb2   : > { %2736 = vsyncadd (%p3077_p2), %s496_s24, 4294967168  ;;  %s3540_s23 = sld [smem:[#allocation32_spill]] }
  0xb3   : > { %s3541_s12 = sld [smem:[#allocation27_spill]] }
  0xb8   : > { %s504_s29 = sand.u32 1, %s3540_s23  }
  0xb9   : > { %s506_s1 = sand.u32 1, %s3541_s12   ;;  %s505_s26 = scalar_lea.sflag [#allocation9], %s504_s29 }
  0xba   : > { %s2051_s5 = sshll.u32 %s506_s1, 4 }
  0xbb   : > { %s508_s28 = scalar_lea.vmem [#allocation8], %s2051_s5 }
  0xbc   : > { %2738 = dma.done.wait (%p2994_p4), %s505_s26, 512  }
  0xbd   : > { %2740 = vsyncadd (%p2994_p4), %s505_s26, 4294966784  ;;  %s2053_s30 = sshll.u32 %s3160_s7, 1  ;;  %s517_s14 = scalar_lea.vmem [#allocation10], %s2051_s5 }
  0xbe   : > { %s523_s16 = scalar_lea.sflag [#allocation12], %s504_s29  ;;  %s3177_s17 = scalar_lea.vmem [#allocation11], %s2053_s30 }
  0xbf   : > { %2742 = dma.done.wait (%p3077_p2), %s523_s16, 32  }
  0xc0   : > { %2744 = vsyncadd (%p3077_p2), %s523_s16, 4294967264  ;;  %p3543_p3 = scmp.eq.s32.totalorder %s3540_s23, 0 }
  0xc2   : > { %2746 = dma.done.wait (%p3543_p3), [#allocation12], 512   ;;  %p3544_p0 = pmov %p3543_p3 }
  0xc4   : > { %2748 = vsyncadd (%p3544_p0), [#allocation12], 4294966784  ;;  %p3545_p4 = pmov %p3544_p0 }
  0xc5   : > { %p3546_p11 = pmov %p3544_p0 }
  0xc6   : > { %2750 = dma.done.wait (%p3545_p4), [#allocation15], 1024  }
  0xc7   : > { %2752 = vsyncadd (%p3546_p11), [#allocation15], 4294966272  ;;  %p3547_p5 = pmov %p3544_p0 }
  0xc8   : > { %p3548_p6 = pmov %p3544_p0 }
  0xc9   : > { %2754 = dma.done.wait (%p3547_p5), [#allocation18], 512  }
  0xca   : > { %2756 = vsyncadd (%p3548_p6), [#allocation18], 4294966784  ;;  %s3549_s13 = sld [smem:[#allocation40_spill]]  ;;  %s3205_s24 = scalar_lea.vmem [#allocation19], %s2050_s8 }
  0xcb   : > { %s3550_s4 = sld [smem:[#allocation41_spill]] }
  0xcc   : > { %s3551_s12 = sld [smem:[#allocation29_spill]] }
  0xd0   : > { %v3198_v0 = vld [vmem:[%s3549_s13] sm:$0x1] }
  0xd1   : > { %v3203_v1 = vld [vmem:[%s3550_s4] sm:$0x1] }
  0xd2   : > { %p2059_p2 = scmp.ne.s32.totalorder %s3551_s12, 0 }
  0xd4   : > { %603 = sbr.rel (%p2059_p2) target bundleno = 592 (0x250), region = 100 }
  0xd9   : > { %v3208_v2 = vld [vmem:[%s508_s28 + $0x8] sm:$0xff]  ;;  %vm606_vm0 = vcmask 261120   ;;  %v3210_v3 = vld [vmem:[%s508_s28] sm:$0xff]  ;;  %v639_v52 = vlaneseq }
  0xda   : > { %v3212_v4 = vld [vmem:[%s517_s14 + $0x8] sm:$0xff]  ;;  %v610_v5 = vsel %vm606_vm0, %v3208_v2, 0.0  ;;  %v607_v6 = vsel %vm606_vm0, %v3210_v3, 0.0  ;;  %v3218_v7 = vld [vmem:[%s517_s14] sm:$0xff]  ;;  %v616_v11 = vmul.f32 %v3210_v3, %v3210_v3  ;;  %v617_v15 = vmul.f32 %v3208_v2, %v3208_v2 }
  0xdb   : > { %611 = vadd.xlane.f32.xlu1 %v610_v5  ;;  %608 = vadd.xlane.f32.xlu0 %v607_v6  ;;  %v659_v8 = vsel %vm606_vm0, %v3212_v4, 0.0  ;;  %v656_v9 = vsel %vm606_vm0, %v3218_v7, 0.0  ;;  %v664_v10 = vmul.f32 %v3218_v7, %v3218_v7  ;;  %v665_v14 = vmul.f32 %v3212_v4, %v3212_v4  ;;  %v693_v18 = vld [vmem:[#allocation14 + $0x18] sm:$0xff]  ;;  %v692_v20 = vld [vmem:[#allocation14 + $0x10] sm:$0xff]  ;;  %v691_v22 = vld [vmem:[#allocation14 + $0x8] sm:$0xff] }
  0xdc   : > { %v618_v13 = vsel %vm606_vm0, %v616_v11, 0.0  ;;  %v621_v17 = vsel %vm606_vm0, %v617_v15, 0.0  ;;  %v792_v19 = vld [vmem:[#allocation16 + $0x18] sm:$0xff]  ;;  %2152 = vmatprep.subr.msk.mxu0 %vm606_vm0, %v693_v18  ;;  %v791_v21 = vld [vmem:[#allocation16 + $0x10] sm:$0xff]  ;;  %v790_v23 = vld [vmem:[#allocation16 + $0x8] sm:$0xff]  ;;  %v640_v55 = vshrl.u32 %v639_v52, 7 }
  0xdd   : > { %v666_v12 = vsel %vm606_vm0, %v664_v10, 0.0  ;;  %v669_v16 = vsel %vm606_vm0, %v665_v14, 0.0  ;;  %2163 = vmatprep.subr.msk.mxu1 %vm606_vm0, %v792_v19  ;;  %2153 = vmatpush3.xpose.msk.msra.mxu0 %vm606_vm0, %v693_v18  ;;  %v690_v24 = vld [vmem:[#allocation14] sm:$0xff] }
  0xde   : > { %2164 = vmatpush3.xpose.msk.msra.mxu1 %vm606_vm0, %v792_v19  ;;  %2154 = vmatprep.subr.msk.mxu0 %vm606_vm0, %v692_v20  ;;  %v789_v25 = vld [vmem:[#allocation16] sm:$0xff]  ;;  %v641_v56 = vsub.s32 0, %v640_v55 }
  0xdf   : > { %660 = vadd.xlane.f32.xlu1 %v659_v8  ;;  %657 = vadd.xlane.f32.xlu0 %v656_v9 }
  0xe0   : > { %2165 = vmatprep.subr.msk.mxu1 %vm606_vm0, %v791_v21  ;;  %v642_v58 = vrot.slane %v3198_v0, %v641_v56  ;;  %v650_v62 = vrot.slane %v3203_v1, %v641_v56 }
  0xe1   : > { %2155 = vmatpush3.xpose.msk.msra.mxu0 %vm606_vm0, %v692_v20 }
  0xe2   : > { %2166 = vmatpush3.xpose.msk.msra.mxu1 %vm606_vm0, %v791_v21  ;;  %2156 = vmatprep.subr.msk.mxu0 %vm606_vm0, %v691_v22 }
  0xe3   : > { %667 = vadd.xlane.f32.xlu1 %v666_v12  ;;  %619 = vadd.xlane.f32.xlu0 %v618_v13 }
  0xe4   : > { %2167 = vmatprep.subr.msk.mxu1 %vm606_vm0, %v790_v23 }
  0xe5   : > { %2157 = vmatpush3.xpose.msk.msra.mxu0 %vm606_vm0, %v691_v22 }
  0xe6   : > { %2168 = vmatpush3.xpose.msk.msra.mxu1 %vm606_vm0, %v790_v23  ;;  %2158 = vmatprep.subr.msk.mxu0 %vm606_vm0, %v690_v24 }
  0xe7   : > { %670 = vadd.xlane.f32.xlu1 %v669_v16  ;;  %622 = vadd.xlane.f32.xlu0 %v621_v17 }
  0xe8   : > { %2169 = vmatprep.subr.msk.mxu1 %vm606_vm0, %v789_v25 }
  0xe9   : > { %2159 = vmatpush3.xpose.msk.msra.mxu0 %vm606_vm0, %v690_v24 }
  0xea   : > { %2170 = vmatpush3.xpose.msk.msra.mxu1 %vm606_vm0, %v789_v25 }
 0x164   : > { %v612_v26 = vpop.xlane.xlu1 %611  ;;  %v609_v27 = vpop.xlane.xlu0 %608 }
 0x165   : > { %v614_v30 = vmul.f32 0.03125, %v609_v27  ;;  %v615_v32 = vmul.f32 0.03125, %v612_v26 }
 0x167   : > { %v626_v36 = vmul.f32 %v614_v30, %v614_v30  ;;  %v627_v42 = vmul.f32 %v615_v32, %v615_v32  ;;  %v634_v60 = vsub.f32 %v3210_v3, %v614_v30  ;;  %v635_v10 = vsub.f32 %v3208_v2, %v615_v32 }
 0x168   : > { %v661_v28 = vpop.xlane.xlu1 %660  ;;  %v658_v29 = vpop.xlane.xlu0 %657 }
 0x169   : > { %v662_v31 = vmul.f32 0.03125, %v658_v29  ;;  %v663_v33 = vmul.f32 0.03125, %v661_v28 }
 0x16b   : > { %v674_v37 = vmul.f32 %v662_v31, %v662_v31  ;;  %v675_v43 = vmul.f32 %v663_v33, %v663_v33  ;;  %v682_v57 = vsub.f32 %v3218_v7, %v662_v31  ;;  %v683_v6 = vsub.f32 %v3212_v4, %v663_v33 }
 0x16c   : > { %v668_v34 = vpop.xlane.xlu1 %667  ;;  %v620_v35 = vpop.xlane.xlu0 %619 }
 0x16d   : > { %v672_v38 = vmul.f32 0.03125, %v668_v34  ;;  %v624_v39 = vmul.f32 0.03125, %v620_v35 }
 0x16f   : > { %v676_v40 = vsub.f32 %v672_v38, %v674_v37  ;;  %v628_v41 = vsub.f32 %v624_v39, %v626_v36 }
 0x170   : > { %v671_v44 = vpop.xlane.xlu1 %670  ;;  %v623_v45 = vpop.xlane.xlu0 %622 }
 0x171   : > { %v678_v46 = vadd.f32 1e-05, %v676_v40  ;;  %v630_v47 = vadd.f32 1e-05, %v628_v41  ;;  %v673_v48 = vmul.f32 0.03125, %v671_v44  ;;  %v625_v49 = vmul.f32 0.03125, %v623_v45 }
 0x173   : > { %2421 = vrsqrt.f32 %v678_v46  ;;  %v677_v50 = vsub.f32 %v673_v48, %v675_v43  ;;  %v629_v51 = vsub.f32 %v625_v49, %v627_v42 }
 0x174   : > { %2423 = vrsqrt.f32 %v630_v47 }
 0x175   : > { %v679_v53 = vadd.f32 1e-05, %v677_v50  ;;  %v631_v54 = vadd.f32 1e-05, %v629_v51 }
 0x177   : > { %2425 = vrsqrt.f32 %v679_v53 }
 0x178   : > { %2427 = vrsqrt.f32 %v631_v54 }
 0x180   : > { %v2422_v59 = vpop.eup %2421 }
 0x181   : > { %v2424_v61 = vpop.eup %2423  ;;  %v684_v63 = vmul.f32 %v2422_v59, %v682_v57 }
 0x182   : > { %v636_v5 = vmul.f32 %v2424_v61, %v634_v60 }
 0x183   : > { %v686_v8 = vmul.f32 %v684_v63, %v642_v58 }
 0x184   : > { %v2426_v9 = vpop.eup %2425  ;;  %v644_v11 = vmul.f32 %v642_v58, %v636_v5 }
 0x185   : > { %v2428_v12 = vpop.eup %2427  ;;  %v688_v13 = vadd.f32 %v686_v8, %v650_v62  ;;  %v685_v7 = vmul.f32 %v2426_v9, %v683_v6 }
 0x186   : > { %v652_v14 = vadd.f32 %v650_v62, %v644_v11  ;;  %v637_v15 = vmul.f32 %v2428_v12, %v635_v10 }
 0x187   : > { %2171 = vmatprep.mubr.msk.f32.mxu1 %vm606_vm0, %v688_v13  ;;  %v687_v3 = vmul.f32 %v685_v7, %v642_v58 }
 0x188   : > { %2160 = vmatprep.mubr.msk.f32.mxu0 %vm606_vm0, %v652_v14  ;;  %v645_v16 = vmul.f32 %v642_v58, %v637_v15 }
 0x189   : > { %v689_v17 = vadd.f32 %v687_v3, %v650_v62 }
 0x18a   : > { %v653_v18 = vadd.f32 %v650_v62, %v645_v16 }
 0x18b   : > { %2172 = vmatmul.mubr.msk.f32.vlgmr.msra.gmra.mxu1 %vm606_vm0, %v689_v17 }
 0x18c   : > { %2161 = vmatmul.mubr.msk.f32.vlgmr.msra.gmra.mxu0 %vm606_vm0, %v653_v18 }
 0x24b   : > { %v2173_v4 = vpop.f32.mrf.mxu1 }
 0x24c   : > { %v2162_v2 = vpop.f32.mrf.mxu0  ;;  %887 = vst.msk [vmem:[#allocation3 + $0x8] sm:$0xff] %vm606_vm0, %v2173_v4 }
 0x24d   : > { %788 = vst.msk [vmem:[#allocation2 + $0x8] sm:$0xff] %vm606_vm0, %v2162_v2  ;;  %v877_v19 = vpop.f32.mrf.mxu1 }
 0x24e   : > { %v778_v20 = vpop.f32.mrf.mxu0  ;;  %886 = vst.msk [vmem:[#allocation3] sm:$0xff] %vm606_vm0, %v877_v19 }
 0x24f   : > { %787 = vst.msk [vmem:[#allocation2] sm:$0xff] %vm606_vm0, %v778_v20 }
 0x250 PF: > { %v888_v21 = vld [vmem:[%s3164_s11] sm:$0xff]  ;;  %vm889_vm1 = vcmask 261120   ;;  %v2815_v26 = vmov 0.0   ;;  %vm2816_vm2 = vmmov 0   ;;  %v920_v29 = vld [vmem:[#allocation13] sm:$0xff]  ;;  %vm1015_vm3 = vcmask 64512  }
 0x251   : > { %v890_v22 = vsel %vm889_vm1, %v888_v21, 0.0  ;;  %v895_v23 = vmul.f32 %v888_v21, %v888_v21  ;;  %v923_v25 = vld [vmem:[#allocation13 + $0x18] sm:$0xff]  ;;  %2174 = vmatprep.subr.mxu0 %v2815_v26  ;;  %2182 = vmatprep.mubr.msk.f32.mxu0 %vm2816_vm2, %v2815_v26  ;;  %v922_v27 = vld [vmem:[#allocation13 + $0x10] sm:$0xff]  ;;  %v921_v28 = vld [vmem:[#allocation13 + $0x8] sm:$0xff]  ;;  %s2817_s8 = smov 120   ;;  %v907_v39 = vlaneseq  ;;  %s2818_s11 = smov 112  }
 0x252   : > { %891 = vadd.xlane.f32.xlu0 %v890_v22  ;;  %2175 = vmatpush3.xpose.msk.msra.mxu0 %vm889_vm1, %v923_v25  ;;  %s2819_s23 = smov 104   ;;  %v1013_v51 = vld [vmem:[%s3177_s17] sm:$0x3]  ;;  %v2820_v52 = vmov 0   ;;  %vm1099_vm6 = vcmask 130048   ;;  %s2821_s9 = smov 16  }
 0x253   : > { %v896_v24 = vsel %vm889_vm1, %v895_v23, 0.0  ;;  %2185 = vmatprep.subr.mxu1 %v2815_v26  ;;  %2176 = vmatprep.subr.mxu0 %v2815_v26  ;;  %v908_v40 = vshrl.u32 %v907_v39, 7  ;;  %v3296_v50 = vld [vmem:[#allocation3 + $0x8] sm:$0xff]  ;;  %vm1014_vm4 = vnez %v1013_v51  ;;  %s2822_s29 = smov 8   ;;  %vm1364_vm7 = vcmask 130112   ;;  %s3554_s1 = sld [smem:[#allocation30_spill]] }
 0x254   : > { %2189 = vmatprep.mubr.msk.f32.mxu1 %vm2816_vm2, %v2815_v26  ;;  %v1010_v30 = vld [vmem:[#allocation2 + $0x8] sm:$0xff]  ;;  %v1095_v53 = vsel %vm1014_vm4, 16843009, %v2820_v52  ;;  %vm1543_vm8 = vcmask 195712   ;;  %s3555_s5 = sld [smem:[#allocation29_spill]]  ;;  %s2823_s26 = smov 24  }
 0x255   : > { %2186 = vmatpush3.xpose.msk.msra.mxu1 %vm1015_vm3, %v1010_v30  ;;  %1189 = vrot.lane.b32.xlu1 %v1010_v30, %s2817_s8  ;;  %v909_v41 = vsub.s32 0, %v908_v40  ;;  %v1096_v54 = vunpack.c.0.s8 %v1095_v53  ;;  %vm1722_vm9 = vcmask 261312   ;;  %s3556_s28 = sld [smem:[#allocation36_spill]]  ;;  %s1838_s13 = sshll.u32 %s3205_s24, 4  ;;  %s1839_s13 = int_to_ptr.vmem [resolvable:$true] %s1838_s13 }
 0x256   : > { %897 = vadd.xlane.f32.xlu0 %v896_v24  ;;  %2177 = vmatpush3.xpose.msk.msra.mxu0 %vm889_vm1, %v922_v27  ;;  %v1009_v31 = vld [vmem:[#allocation2] sm:$0xff]  ;;  %s3557_s15 = sld [smem:[#allocation46_spill]] }
 0x257   : > { %2178 = vmatprep.subr.mxu0 %v2815_v26  ;;  %2187 = vmatprep.subr.mxu1 %v2815_v26  ;;  %v910_v43 = vrot.slane %v3198_v0, %v909_v41  ;;  %v917_v46 = vrot.slane %v3203_v1, %v909_v41  ;;  %v3301_v1 = vld [vmem:[#allocation3] sm:$0xff]  ;;  %vm3314_vm5 = vcmp.ne.s32.totalorder %v1096_v54, 0  ;;  %s3558_s4 = sld [smem:[#allocation47_spill]] }
 0x259   : > { %2188 = vmatpush3.xpose.msk.msra.mxu1 %vm1015_vm3, %v1009_v31  ;;  %s2100_s30 = sshll.u32 %s3554_s1, 1 }
 0x25a   : > { %2179 = vmatpush3.xpose.msk.msra.mxu0 %vm889_vm1, %v921_v28  ;;  %2192 = vmatprep.subr.mxu1 %v2815_v26  ;;  %s1834_s14 = sadd.s32 %s3555_s5, %s2100_s30 }
 0x25b   : > { %2180 = vmatprep.subr.mxu0 %v2815_v26  ;;  %s2101_s2 = sshll.u32 %s1834_s14, 7  ;;  %p3559_p9 = scmp.ne.s32.totalorder %s3556_s28, 0 }
 0x25d   : > { %s3403_s12 = scalar_lea.hbm %s3558_s4, %s2101_s2 }
 0x25e   : > { %2181 = vmatpush3.xpose.msk.msra.mxu0 %vm889_vm1, %v920_v29 }
 0x25f   : > { %2206 = vmatprep.subr.mxu0 %v2815_v26 }
 0x26c   : > { %1187 = vrot.lane.b32.xlu0 %v1009_v31, %s2817_s8 }
 0x2c7   : > { %v1190_v60 = vpop.permute.xlu1 %1189 }
 0x2db   : > { %v892_v32 = vpop.xlane.xlu0 %891 }
 0x2dc   : > { %v894_v33 = vmul.f32 0.03125, %v892_v32 }
 0x2de   : > { %v900_v35 = vmul.f32 %v894_v33, %v894_v33  ;;  %v904_v42 = vsub.f32 %v888_v21, %v894_v33 }
 0x2df   : > { %v898_v34 = vpop.xlane.xlu0 %897 }
 0x2e0   : > { %v899_v36 = vmul.f32 0.03125, %v898_v34 }
 0x2e2   : > { %v901_v37 = vsub.f32 %v899_v36, %v900_v35 }
 0x2e3   : > { %v1188_v6 = vpop.permute.xlu0 %1187 }
 0x2e4   : > { %v902_v38 = vadd.f32 1e-05, %v901_v37 }
 0x2e6   : > { %2429 = vrsqrt.f32 %v902_v38 }
 0x2f3   : > { %v2430_v44 = vpop.eup %2429 }
 0x2f4   : > { %v905_v45 = vmul.f32 %v2430_v44, %v904_v42 }
 0x2f6   : > { %v912_v47 = vmul.f32 %v910_v43, %v905_v45 }
 0x2f8   : > { %v919_v48 = vadd.f32 %v917_v46, %v912_v47 }
 0x2fa   : > { %2183 = vmatmul.mubr.msk.f32.vlgmr.msra.gmra.mxu0 %vm889_vm1, %v919_v48 }
 0x2fb   : > { %2210 = vmatprep.mubr.msk.f32.mxu0 %vm2816_vm2, %v2815_v26 }
 0x3ba   : > { %v1005_v49 = vpop.f32.mrf.mxu0 }
 0x3bb   : > { %1366 = vrot.lane.b32.xlu0 %v1005_v49, %s2818_s11  ;;  %2190 = vmatmul.mubr.msk.f32.vlgmr.msra.gmra.mxu1 %vm1015_vm3, %v1005_v49 }
 0x3bc   : > { %v2184_v0 = vpop.f32.mrf.mxu0  ;;  %2193 = vmatpush3.msra.mxu1 %v3296_v50  ;;  %2196 = vmatprep.mubr.msk.f32.mxu1 %vm2816_vm2, %v2815_v26 }
 0x3bd   : > { %2194 = vmatprep.subr.mxu1 %v2815_v26 }
 0x3be   : > { %2195 = vmatpush3.msra.mxu1 %v3301_v1 }
 0x3bf   : > { %1460 = vrot.lane.b32.xlu0 %v3296_v50, %s2818_s11  ;;  %2199 = vmatprep.subr.mxu1 %v2815_v26 }
 0x3c3   : > { %1458 = vrot.lane.b32.xlu0 %v3301_v1, %s2818_s11 }
 0x3c7   : > { %1549 = vrot.lane.b32.xlu0 %v1010_v30, %s2819_s23 }
 0x3cb   : > { %1547 = vrot.lane.b32.xlu0 %v1009_v31, %s2819_s23 }
 0x3cf   : > { %1545 = vrot.lane.b32.xlu0 %v1005_v49, %s2819_s23 }
 0x42d   : > { %v1367_v10 = vpop.permute.xlu0 %1366 }
 0x431   : > { %v1461_v12 = vpop.permute.xlu0 %1460 }
 0x435   : > { %v1459_v13 = vpop.permute.xlu0 %1458 }
 0x439   : > { %v1550_v20 = vpop.permute.xlu0 %1549 }
 0x43d   : > { %v1548_v21 = vpop.permute.xlu0 %1547 }
 0x441   : > { %v1546_v22 = vpop.permute.xlu0 %1545 }
 0x47b   : > { %v1091_v56 = vpop.f32.mrf.mxu1 }
 0x47c   : > { %v1098_v57 = vsel %vm3314_vm5, -1e+09, %v1091_v56 }
 0x47d   : > { %v2191_v58 = vpop.f32.mrf.mxu1  ;;  %v1100_v59 = vsel %vm1099_vm6, %v1098_v57, -inf }
 0x47e   : > { %1101 = vmax.xlane.f32.xlu1 %v1100_v59  ;;  %v1728_v59 = vld [vmem:[#allocation17 + $0x18] sm:$0xff] }
 0x48f   : > { %1185 = vrot.lane.b32.xlu1 %v1005_v49, %s2817_s8 }
 0x493   : > { %1370 = vrot.lane.b32.xlu1 %v1010_v30, %s2818_s11 }
 0x497   : > { %1368 = vrot.lane.b32.xlu1 %v1009_v31, %s2818_s11  ;;  %s2663_s11 = scalar_lea.vmem %s1839_s13, 128 }
 0x498   : > { %p2664_p8 = scmp.ne.s32.totalorder %s1839_s13, %s2663_s11 }
 0x49a   : > { %p2665_p10 = pnand %p2664_p8, %p3559_p9 }
 0x49c   : > { %p2666_p7 = pneg %p2665_p10 }
 0x507   : > { %v1102_v61 = vpop.xlane.xlu1 %1101 }
 0x508   : > { %v1103_v62 = vsub.f32 %v1098_v57, %v1102_v61 }
 0x50a   : > { %v1104_v63 = vmul.f32 1.442695, %v1103_v62 }
 0x50b   : > { %v1186_v8 = vpop.permute.xlu1 %1185 }
 0x50c   : > { %2431 = vpow2.f32 %v1104_v63 }
 0x50f   : > { %v1371_v9 = vpop.permute.xlu1 %1370 }
 0x513   : > { %v1369_v11 = vpop.permute.xlu1 %1368 }
 0x519   : > { %v3324_v5 = vpop.eup %2431 }
 0x51a   : > { %2197 = vmatmul.mubr.msk.f32.vlgmr.msra.gmra.mxu1 %vm1099_vm6, %v3324_v5  ;;  %v1106_v35 = vsel %vm1099_vm6, %v3324_v5, 0.0  ;;  %v1726_v5 = vld [vmem:[#allocation17 + $0x8] sm:$0xff] }
 0x51b   : > { %2200 = vmatpush3.xpose.msk.msra.mxu1 %vm1015_vm3, %v1190_v60  ;;  %2203 = vmatprep.mubr.msk.f32.mxu1 %vm2816_vm2, %v2815_v26  ;;  %v1727_v60 = vld [vmem:[#allocation17 + $0x10] sm:$0xff] }
 0x51c   : > { %2201 = vmatprep.subr.mxu1 %v2815_v26 }
 0x51f   : > { %2202 = vmatpush3.xpose.msk.msra.mxu1 %vm1015_vm3, %v1188_v6  ;;  %v1725_v6 = vld [vmem:[#allocation17] sm:$0xff] }
 0x520   : > { %2213 = vmatprep.subr.mxu1 %v2815_v26 }
 0x522   : > { %2204 = vmatmul.mubr.msk.f32.vlgmr.msra.gmra.mxu1 %vm1015_vm3, %v1186_v8 }
 0x523   : > { %2214 = vmatpush3.xpose.msk.msra.mxu1 %vm1015_vm3, %v1371_v9  ;;  %2217 = vmatprep.mubr.msk.f32.mxu1 %vm2816_vm2, %v2815_v26 }
 0x524   : > { %2215 = vmatprep.subr.mxu1 %v2815_v26 }
 0x527   : > { %2216 = vmatpush3.xpose.msk.msra.mxu1 %vm1015_vm3, %v1369_v11 }
 0x528   : > { %2220 = vmatprep.subr.mxu1 %v2815_v26 }
 0x52a   : > { %2218 = vmatmul.mubr.msk.f32.vlgmr.msra.gmra.mxu1 %vm1015_vm3, %v1367_v10 }
 0x52b   : > { %2221 = vmatpush3.msra.mxu1 %v1461_v12  ;;  %2224 = vmatprep.mubr.msk.f32.mxu1 %vm2816_vm2, %v2815_v26 }
 0x52c   : > { %2222 = vmatprep.subr.mxu1 %v2815_v26 }
 0x52d   : > { %2223 = vmatpush3.msra.mxu1 %v1459_v13 }
 0x52e   : > { %2227 = vmatprep.subr.mxu1 %v2815_v26 }
 0x5da   : > { %v1178_v7 = vpop.f32.mrf.mxu1 }
 0x5dc   : > { %v2198_v14 = vpop.f32.mrf.mxu1 }
 0x5e2   : > { %v1263_v15 = vpop.f32.mrf.mxu1 }
 0x5e3   : > { %v1267_v3 = vsel %vm3314_vm5, -1e+09, %v1263_v15 }
 0x5e4   : > { %v2205_v16 = vpop.f32.mrf.mxu1  ;;  %v1268_v17 = vsel %vm1099_vm6, %v1267_v3, -inf }
 0x5e5   : > { %1269 = vmax.xlane.f32.xlu0 %v1268_v17 }
 0x5ea   : > { %v1444_v18 = vpop.f32.mrf.mxu1 }
 0x5eb   : > { %v1448_v4 = vsel %vm3314_vm5, -1e+09, %v1444_v18 }
 0x5ec   : > { %v2219_v2 = vpop.f32.mrf.mxu1  ;;  %v1449_v19 = vsel %vm1099_vm6, %v1448_v4, -inf }
 0x5ed   : > { %1450 = vmax.xlane.f32.xlu1 %v1449_v19 }
 0x5fb   : > { %1279 = vrot.lane.b32.xlu0 %v3301_v1, %s2817_s8 }
 0x5fe   : > { %1281 = vrot.lane.b32.xlu1 %v3296_v50, %s2817_s8  ;;  %s1823_s8 = scalar_lea.sflag [#allocation7], %s3160_s7 }
 0x602   : > { %1639 = vrot.lane.b32.xlu1 %v3296_v50, %s2819_s23 }
 0x66e   : > { %v1270_v23 = vpop.xlane.xlu0 %1269 }
 0x66f   : > { %v1271_v24 = vsub.f32 %v1267_v3, %v1270_v23 }
 0x671   : > { %v1272_v25 = vmul.f32 1.442695, %v1271_v24 }
 0x672   : > { %v1280_v31 = vpop.permute.xlu0 %1279 }
 0x673   : > { %2433 = vpow2.f32 %v1272_v25 }
 0x676   : > { %v1451_v27 = vpop.xlane.xlu1 %1450 }
 0x677   : > { %v1452_v28 = vsub.f32 %v1448_v4, %v1451_v27 }
 0x679   : > { %v1453_v29 = vmul.f32 1.442695, %v1452_v28 }
 0x67a   : > { %v1282_v30 = vpop.permute.xlu1 %1281 }
 0x67b   : > { %2435 = vpow2.f32 %v1453_v29  ;;  %2207 = vmatpush3.msra.mxu0 %v1282_v30 }
 0x67c   : > { %2208 = vmatprep.subr.mxu0 %v2815_v26 }
 0x67d   : > { %2209 = vmatpush3.msra.mxu0 %v1280_v31 }
 0x67e   : > { %2234 = vmatprep.subr.mxu0 %v2815_v26  ;;  %v1640_v36 = vpop.permute.xlu1 %1639 }
 0x680   : > { %v2434_v32 = vpop.eup %2433 }
 0x681   : > { %2211 = vmatmul.mubr.msk.f32.vlgmr.msra.gmra.mxu0 %vm1099_vm6, %v2434_v32  ;;  %v1274_v0 = vsel %vm1099_vm6, %v2434_v32, 0.0 }
 0x682   : > { %2238 = vmatprep.mubr.msk.f32.mxu0 %vm2816_vm2, %v2815_v26  ;;  %2235 = vmatpush3.msra.mxu0 %v1640_v36 }
 0x683   : > { %2236 = vmatprep.subr.mxu0 %v2815_v26 }
 0x688   : > { %v2436_v33 = vpop.eup %2435 }
 0x689   : > { %2225 = vmatmul.mubr.msk.f32.vlgmr.msra.gmra.mxu1 %vm1099_vm6, %v2436_v33  ;;  %v1455_v34 = vsel %vm1099_vm6, %v2436_v33, 0.0 }
 0x68a   : > { %2228 = vmatpush3.xpose.msk.msra.mxu1 %vm1015_vm3, %v1550_v20  ;;  %1456 = vadd.xlane.f32.xlu0 %v1455_v34 }
 0x68b   : > { %2229 = vmatprep.subr.mxu1 %v2815_v26  ;;  %2231 = vmatprep.mubr.msk.f32.mxu1 %vm2816_vm2, %v2815_v26 }
 0x68e   : > { %2230 = vmatpush3.xpose.msk.msra.mxu1 %vm1015_vm3, %v1548_v21  ;;  %1107 = vadd.xlane.f32.xlu0 %v1106_v35 }
 0x691   : > { %2232 = vmatmul.mubr.msk.f32.vlgmr.msra.gmra.mxu1 %vm1015_vm3, %v1546_v22 }
 0x713   : > { %v1457_v37 = vpop.xlane.xlu0 %1456 }
 0x717   : > { %v1108_v38 = vpop.xlane.xlu0 %1107 }
 0x718   : > { %2437 = vrcp.f32 %v1108_v38 }
 0x719   : > { %2439 = vrcp.f32 %v1457_v37 }
 0x725   : > { %v2438_v39 = vpop.eup %2437 }
 0x726   : > { %v1183_v40 = vmul.f32 %v2438_v39, %v1178_v7  ;;  %v2440_v43 = vpop.eup %2439 }
 0x728   : > { %1184 = vst.msk [vmem:[#allocation4] sm:$0xff] %vm1015_vm3, %v1183_v40 }
 0x741   : > { %v1354_v41 = vpop.f32.mrf.mxu0 }
 0x743   : > { %v2212_v42 = vpop.f32.mrf.mxu0 }
 0x749   : > { %v1533_v44 = vpop.f32.mrf.mxu1 }
 0x74a   : > { %v1538_v45 = vmul.f32 %v2440_v43, %v1533_v44 }
 0x74b   : > { %v2226_v46 = vpop.f32.mrf.mxu1 }
 0x74c   : > { %1540 = vrot.lane.b32.xlu0 %v1538_v45, %s2821_s9 }
 0x751   : > { %v1623_v47 = vpop.f32.mrf.mxu1 }
 0x752   : > { %v1627_v48 = vsel %vm3314_vm5, -1e+09, %v1623_v47 }
 0x753   : > { %v2233_v49 = vpop.f32.mrf.mxu1  ;;  %v1628_v50 = vsel %vm1099_vm6, %v1627_v48, -inf }
 0x754   : > { %1629 = vmax.xlane.f32.xlu1 %v1628_v50 }
 0x765   : > { %1637 = vrot.lane.b32.xlu1 %v3301_v1, %s2819_s23  ;;  %s2824_s23 = smov [#allocation19]  }
 0x766   : > { %s2667_s9 = sshll.u32 %s2824_s23, 4  ;;  %s2668_s9 = int_to_ptr.vmem [resolvable:$false] %s2667_s9 }
 0x767   : > { %p2670_p12 = scmp.lt.s32.totalorder %s1839_s13, %s2668_s9 }
 0x789   : > { %1275 = vadd.xlane.f32.xlu1 %v1274_v0 }
 0x7be   : > { %v1541_v63 = vpop.permute.xlu0 %1540 }
 0x7dd   : > { %v1630_v51 = vpop.xlane.xlu1 %1629 }
 0x7de   : > { %v1631_v52 = vsub.f32 %v1627_v48, %v1630_v51 }
 0x7e0   : > { %v1632_v53 = vmul.f32 1.442695, %v1631_v52 }
 0x7e1   : > { %v1638_v54 = vpop.permute.xlu1 %1637 }
 0x7e2   : > { %2441 = vpow2.f32 %v1632_v53  ;;  %2237 = vmatpush3.msra.mxu0 %v1638_v54 }
 0x7e3   : > { %2241 = vmatprep.subr.mxu0 %v2815_v26 }
 0x7ef   : > { %v2442_v55 = vpop.eup %2441 }
 0x7f0   : > { %2239 = vmatmul.mubr.msk.f32.vlgmr.msra.gmra.mxu0 %vm1099_vm6, %v2442_v55  ;;  %v1634_v56 = vsel %vm1099_vm6, %v2442_v55, 0.0 }
 0x7f1   : > { %1635 = vadd.xlane.f32.xlu1 %v1634_v56  ;;  %2249 = vmatprep.mubr.msk.f32.mxu0 %vm2816_vm2, %v2815_v26 }
 0x7f2   : > { %2242 = vmatpush3.xpose.msk.msra.mxu0 %vm889_vm1, %v1728_v59 }
 0x7f3   : > { %2243 = vmatprep.subr.mxu0 %v2815_v26 }
 0x7f6   : > { %2244 = vmatpush3.xpose.msk.msra.mxu0 %vm889_vm1, %v1727_v60 }
 0x7f7   : > { %2245 = vmatprep.subr.mxu0 %v2815_v26 }
 0x7fa   : > { %2246 = vmatpush3.xpose.msk.msra.mxu0 %vm889_vm1, %v1726_v5 }
 0x7fb   : > { %2247 = vmatprep.subr.mxu0 %v2815_v26  ;;  %v2093_v26 = vld [vmem:[%s3557_s15] ss:$0 sm:$0xff] }
 0x7fe   : > { %2248 = vmatpush3.xpose.msk.msra.mxu0 %vm889_vm1, %v1725_v6 }
 0x812   : > { %v1276_v1 = vpop.xlane.xlu1 %1275 }
 0x813   : > { %2443 = vrcp.f32 %v1276_v1 }
 0x820   : > { %v2444_v57 = vpop.eup %2443 }
 0x821   : > { %v1359_v58 = vmul.f32 %v2444_v57, %v1354_v41 }
 0x823   : > { %1361 = vrot.lane.b32.xlu1 %v1359_v58, %s2822_s29  ;;  %s2669_s29 = scalar_lea.vmem %s2668_s9, 256 }
 0x824   : > { %p2671_p1 = scmp.lt.s32.totalorder %s2669_s29, %s2663_s11 }
 0x826   : > { %p2672_p13 = por %p2671_p1, %p2670_p12 }
 0x828   : > { %p2673_p3 = pnand %p2672_p13, %p2666_p7 }
 0x87a   : > { %v1636_v61 = vpop.xlane.xlu1 %1635 }
 0x87b   : > { %2445 = vrcp.f32 %v1636_v61 }
 0x888   : > { %v2446_v8 = vpop.eup %2445 }
 0x895   : > { %v1362_v62 = vpop.permute.xlu1 %1361 }
 0x896   : > { %1365 = vst.msk [vmem:[#allocation4] sm:$0xff] %vm1364_vm7, %v1362_v62 }
 0x897   : > { %1544 = vst.msk [vmem:[#allocation4] sm:$0xff] %vm1543_vm8, %v1541_v63 }
 0x8b0   : > { %v1712_v9 = vpop.f32.mrf.mxu0 }
 0x8b1   : > { %v1717_v10 = vmul.f32 %v2446_v8, %v1712_v9 }
 0x8b2   : > { %v2240_v11 = vpop.f32.mrf.mxu0 }
 0x8b3   : > { %1719 = vrot.lane.b32.xlu1 %v1717_v10, %s2823_s26 }
 0x925   : > { %v1720_v12 = vpop.permute.xlu1 %1719 }
 0x926   : > { %1723 = vst.msk [vmem:[#allocation4] sm:$0xff] %vm1722_vm9, %v1720_v12 }
 0x92d   : > { %v1724_v13 = vld [vmem:[#allocation4] sm:$0xff] }
 0x92e   : > { %2250 = vmatmul.mubr.msk.f32.vlgmr.msra.gmra.mxu0 %vm889_vm1, %v1724_v13 }
 0x9ee   : > { %v1817_v7 = vpop.f32.mrf.mxu0 }
 0x9ef   : > { %v1818_v14 = vadd.f32 %v2093_v26, %v1817_v7 }
 0x9f0   : > { %v2251_v15 = vpop.f32.mrf.mxu0 }
 0x9f1   : > { %1821 = vst.msk [vmem:[%s3205_s24] sm:$0xff] %vm889_vm1, %v1818_v14 }
 0x9f2   : > { %2676 = shalt.err (!%p2673_p3)
}
 0x9f3   : > { %s2677_s24 = scalar_lea.hbm %s3403_s12, 128  ;;  %s2681_s5 = scalar_lea.hbm %s3558_s4, 512 }
 0x9f4   : > { %p2678_p0 = scmp.ne.s32.totalorder %s3403_s12, %s2677_s24  ;;  %p2682_p5 = scmp.lt.s32.totalorder %s3403_s12, %s3558_s4 }
 0x9f5   : > { %p2683_p6 = scmp.lt.s32.totalorder %s2681_s5, %s2677_s24 }
 0x9f6   : > { %p2679_p4 = pnand %p2678_p0, %p3559_p9 }
 0x9f7   : > { %p2684_p2 = por %p2683_p6, %p2682_p5 }
 0x9f8   : > { %p2680_p11 = pneg %p2679_p4 }
 0x9fa   : > { %p2685_p8 = pnand %p2684_p2, %p2680_p11 }
 0x9fc   : > { %2688 = shalt.err (!%p2685_p8)
}
 0x9fd   : > { %2276 = dma.vmem_to_hbm [thread:$0]  (%p3559_p9), %s1839_s13, 128, %s3403_s12, %s1823_s8  }
 0x9fe PF: > { %s3560_s14 = sld [smem:[#allocation28_spill]]  ;;  %p2317_p10 = scmp.ge.s32.totalorder %s2803_s27, 2 }
 0x9ff   : > { %s3561_s16 = sld [smem:[#allocation37_spill]] }
 0xa04   : > { %s1850_s17 = sand.u32 1, %s3560_s14  }
 0xa05   : > { %p3562_p7 = scmp.ne.s32.totalorder %s3561_s16, 0  ;;  %s1851_s15 = scalar_lea.sflag [#allocation7], %s1850_s17 }
 0xa07   : > { %p2305_p12 = pnand %p2317_p10, %p3562_p7 }
 0xa09   : > { %p2306_p1 = pneg %p2305_p12 }
 0xa0b   : > { %2758 = dma.done.wait (%p2306_p1), %s1851_s15, 128  }
 0xa0c   : > { %2760 = vsyncadd (%p2306_p1), %s1851_s15, 4294967168  ;;  %s35_s27 = sadd.s32 1, %s2803_s27   ;;  %s3563_s17 = sld [smem:[#allocation27_spill]] }
 0xa0d   : > { %p32_p13 = scmp.ge.s32.totalorder %s35_s27, 6   ;;  %s3564_s28 = smov %s3100_s20 }
 0xa0e   : > { %s3565_s24 = sld [smem:[#allocation31_spill]]  ;;  %s3568_s18 = smov %s2771_s19 }
 0xa0f   : > { %s3566_s2 = sld [smem:[#allocation34_spill]]  ;;  %s3569_s19 = smov %s3097_s6 }
 0xa10   : > { %s3567_s26 = sld [smem:[#allocation35_spill]]  ;;  %s3570_s20 = smov %s2779_s21 }
 0xa11   : > { %s3571_s21 = smov %s2783_s22  ;;  %s3572_s22 = smov %s3564_s28 }
 0xa12   : > { %s3573_s23 = smov %s2795_s25  ;;  %34 = sbr.rel (!%p32_p13) target bundleno = 26 (0x1a), region = 166 }
 0xa15   : > { %s3574_s25 = smov %s3566_s2 }
 0xa17   :  { %1856 = vsyncpa [#allocation6], 1 }
 0xa18   :  { %1858 = vsyncpa [#allocation6 + $0x1], 1 }
 0xa19   :  { %1859 = vsyncpa [#allocation9], 1 }
 0xa1a   :  { %1861 = vsyncpa [#allocation9 + $0x1], 1 }
 0xa1b   :  { %1862 = vsyncpa [#allocation12], 1 }
 0xa1c   :  { %1864 = vsyncpa [#allocation12 + $0x1], 1 }
 0xa1d   :  { %1865 = vsyncpa [#allocation15], 1 }
 0xa1e   :  { %1866 = vsyncpa [#allocation18], 1 }
 0xa1f   :  { %1867 = vsyncpa [#allocation7], 1 }
 0xa20   :  { %1869 = vsyncpa [#allocation7 + $0x1], 1 }

</bundles_post_ra>
